<compile_context>
chip_gen: v5e
topology: v5e:2x2
jax: 0.10.0
libtpu: 0.0.40
codegen_flags: <defaults>
</compile_context>

<pallas_src>
import math
from functools import partial

import numpy as np
import jax
import jax.numpy as jnp
from jax.experimental import pallas as pl
from jax.experimental.pallas import tpu as pltpu


# ----------------------------------------------------------------------------
# static fold geometry / indicator matrix (plain numpy glue, computed once)
# ----------------------------------------------------------------------------
def _fold_geometry(output_size, kernel_size, stride, padding):
    H_img, W_img = output_size
    kH, kW = kernel_size
    sH, sW = stride
    pH, pW = padding
    nH = (H_img + 2 * pH - kH) // sH + 1
    nW = (W_img + 2 * pW - kW) // sW + 1
    return nH, nW, H_img * W_img, kH * kW


def _build_fold_indicator(output_size, kernel_size, stride, padding, n_vecs_pad):
    """A[p, l, pix] = 1 iff kernel position p of window l lands on (in-bounds) pixel pix."""
    H_img, W_img = output_size
    kH, kW = kernel_size
    sH, sW = stride
    pH, pW = padding
    nH, nW, npix, k_shape = _fold_geometry(output_size, kernel_size, stride, padding)
    A = np.zeros((k_shape, n_vecs_pad, npix), np.float32)
    for l in range(nH * nW):
        oi, oj = divmod(l, nW)
        top, left = oi * sH - pH, oj * sW - pW
        for ki in range(kH):
            for kj in range(kW):
                i, j = top + ki, left + kj
                if 0 <= i < H_img and 0 <= j < W_img:
                    A[ki * kW + kj, l, i * W_img + j] = 1.0
    return A


# ----------------------------------------------------------------------------
# Pallas kernel: stage frames -> embedding matmul -> permute slabs -> ONE fold matmul
# ----------------------------------------------------------------------------
def soft_comp_kernel(x_ref, w_ref, at_ref, bias_ref, o_ref, xbuf_ref, yflat_ref, *,
                     tg, n_vecs, nvp, k_shape, npix, channel):
    # x_ref:     (tg, n_vecs, hidden)       unpadded tokens of tg frames
    # w_ref:     (hidden, k_shape*channel)  embedding weight, columns kernel-pos major
    # at_ref:    (npix, k_shape*nvp)        0/1 fold scatter matrix
    # bias_ref:  (npix, tg*channel)         folded emb bias + module bias, tiled (f32)
    # o_ref:     (npix, tg*channel)         folded frames, channel-last, tg in lanes
    # xbuf_ref:  (tg*nvp, hidden)           VMEM scratch: 8-aligned frame slots
    # yflat_ref: (k_shape*nvp, tg*channel)  VMEM scratch: permuted fold operand
    hidden = xbuf_ref.shape[1]

    # Stage tg frames into sublane-aligned slots; zero the nvp-padding rows every step
    # (no program_id==0 init -> safe under megacore sharding, no stale-VMEM NaN hazard).
    if nvp > n_vecs:
        pad_zeros = jnp.zeros((nvp - n_vecs, hidden), dtype=xbuf_ref.dtype)
    for g in range(tg):
        xbuf_ref[g * nvp:g * nvp + n_vecs, :] = x_ref[g].astype(xbuf_ref.dtype)
        if nvp > n_vecs:
            xbuf_ref[g * nvp + n_vecs:(g + 1) * nvp, :] = pad_zeros

    # One embedding matmul for all tg frames (M = tg*nvp, K = hidden, N = k*channel).
    y = jnp.dot(xbuf_ref[...], w_ref[...], preferred_element_type=jnp.float32)

    # "permute": move the kernel-position factor from lanes to rows with fully
    # (8,128)-aligned slab copies (nvp % 8 == 0, slices at multiples of `channel`).
    for g in range(tg):
        for p in range(k_shape):
            yflat_ref[p * nvp:(p + 1) * nvp, g * channel:(g + 1) * channel] = (
                y[g * nvp:(g + 1) * nvp, p * channel:(p + 1) * channel]
                .astype(yflat_ref.dtype))

    # ONE fused fold matmul for all tg frames: N = tg*channel lanes fills the MXU and the
    # per-step output is a single wide unmasked store (one vst-friendly slab).
    img = jnp.dot(at_ref[...], yflat_ref[...], preferred_element_type=jnp.float32)
    o_ref[...] = (img + bias_ref[...]).astype(o_ref.dtype)


# ----------------------------------------------------------------------------
# Wrapper: parameter/activation re-layout + pallas_call
# ----------------------------------------------------------------------------
def soft_comp_forward(x, t, w_emb, b_emb, bias_chw, *, output_size, kernel_size,
                      stride, padding, compute_dtype=jnp.bfloat16, out_dtype=None,
                      groups_per_step=None, vmem_block_budget=24 << 20,
                      channels_last=False):
    b, n, hidden = x.shape
    c_out = w_emb.shape[1]
    nH, nW, npix, k_shape = _fold_geometry(output_size, kernel_size, stride, padding)
    n_vecs = nH * nW
    channel = c_out // k_shape
    assert channel * k_shape == c_out
    assert n % t == 0 and n // t == n_vecs, "tokens per frame must equal the fold window count"
    H_img, W_img = output_size
    BT = b * t
    out_dtype = x.dtype if out_dtype is None else out_dtype

    nvp = ((n_vecs + 7) // 8) * 8          # pad tokens per frame to a sublane multiple
    K = k_shape * nvp
    csize = np.dtype(compute_dtype).itemsize
    osize = np.dtype(out_dtype).itemsize

    # ---- pick tg (frames per grid step): raise until the VMEM block budget is hit,
    #      prefer an even grid length so the "parallel" axis shards across 2 TCs ----
    def _footprint(tg):
        return (2 * tg * n_vecs * hidden * csize           # x block (double buffered)
                + 2 * hidden * k_shape * channel * csize   # W
                + 2 * npix * K * csize                     # AT
                + 2 * npix * tg * channel * 4              # bias (f32)
                + 2 * npix * tg * channel * osize          # out block
                + tg * nvp * hidden * csize                # xbuf scratch
                + K * tg * channel * csize                 # yflat scratch
                + tg * nvp * k_shape * channel * 4         # f32 embedding result temp
                + npix * tg * channel * 4)                 # f32 fold result temp

    divisors = [d for d in range(1, BT + 1) if BT % d == 0]
    if groups_per_step is not None:
        divisors = [d for d in divisors if d <= groups_per_step] or [1]
    fitting = [d for d in divisors if _footprint(d) <= vmem_block_budget] or [1]
    even = [d for d in fitting if (BT // d) % 2 == 0]
    tg = max(even) if even else max(fitting)
    G = BT // tg

    # ---- wrapper-side layout plumbing (XLA) — no jnp.pad of x anymore ----
    x2 = x.reshape(BT, n_vecs, hidden).astype(compute_dtype)

    # Embedding weight with columns permuted to (kernel_pos, channel).
    w_r = (w_emb.reshape(hidden, channel, k_shape)
           .transpose(0, 2, 1)
           .reshape(hidden, k_shape * channel)
           .astype(compute_dtype))

    # Single de-duplicated 0/1 fold matrix (exact in bf16); column index = p*nvp + l.
    A = _build_fold_indicator(output_size, kernel_size, stride, padding, nvp)
    at_flat = jnp.asarray(np.transpose(A, (2, 0, 1)).reshape(npix, K)).astype(compute_dtype)

    # Fold of the (input independent) embedding bias + module bias, channel-last, f32,
    # tiled across the tg lane groups so the kernel does one wide add.
    cnt = jnp.asarray(A.sum(axis=1).T, jnp.float32)                       # (npix, k_shape)
    b_emb_r = jnp.transpose(b_emb.astype(jnp.float32).reshape(channel, k_shape))
    bias_total = (cnt @ b_emb_r
                  + jnp.transpose(bias_chw, (1, 2, 0)).reshape(npix, channel)
                  ).astype(jnp.float32)
    bias_tiled = jnp.tile(bias_total, (1, tg))

    kernel = partial(soft_comp_kernel, tg=tg, n_vecs=n_vecs, nvp=nvp, k_shape=k_shape,
                     npix=npix, channel=channel)

    flops = (2 * BT * nvp * hidden * k_shape * channel    # embedding matmuls
             + 2 * BT * npix * K * channel)                # fold matmuls
    bytes_accessed = (BT * n_vecs * hidden * csize
                      + hidden * k_shape * channel * csize
                      + npix * K * csize
                      + npix * tg * channel * 4
                      + BT * npix * channel * osize)

    out2d = pl.pallas_call(
        kernel,
        out_shape=jax.ShapeDtypeStruct((G * npix, tg * channel), out_dtype),
        grid=(G,),
        in_specs=[
            pl.BlockSpec((tg, n_vecs, hidden), lambda i: (i, 0, 0)),
            pl.BlockSpec((hidden, k_shape * channel), lambda i: (0, 0)),
            pl.BlockSpec((npix, K), lambda i: (0, 0)),
            pl.BlockSpec((npix, tg * channel), lambda i: (0, 0)),
        ],
        out_specs=pl.BlockSpec((npix, tg * channel), lambda i: (i, 0)),
        scratch_shapes=[
            pltpu.VMEM((tg * nvp, hidden), compute_dtype),        # xbuf
            pltpu.VMEM((K, tg * channel), compute_dtype),         # yflat
        ],
        compiler_params=pltpu.CompilerParams(
            dimension_semantics=("parallel",),
            vmem_limit_bytes=64 * 1024 * 1024),
        cost_estimate=pl.CostEstimate(flops=int(flops), transcendentals=0,
                                      bytes_accessed=int(bytes_accessed)),
    )(x2, w_r, at_flat, bias_tiled)

    # Restore the module's output layout. channels_last=True skips the NCHW transpose
    # (one full HBM round trip of the output) for consumers that can take NHWC.
    out = out2d.reshape(G, H_img, W_img, tg, channel)
    if channels_last:
        return out.transpose(0, 3, 1, 2, 4).reshape(BT, H_img, W_img, channel)
    return out.transpose(0, 3, 4, 1, 2).reshape(BT, channel, H_img, W_img)


# ----------------------------------------------------------------------------
# Pure numpy reference (literal translation of Linear -> view/permute -> F.fold -> +bias)
# ----------------------------------------------------------------------------
def reference_soft_comp(x, t, w_emb, b_emb, bias_chw, *, output_size, kernel_size,
                        stride, padding):
    x64 = np.asarray(x, np.float64)
    W = np.asarray(w_emb, np.float64)
    bb = np.asarray(b_emb, np.float64)
    bias = np.asarray(bias_chw, np.float64)
    b, n, hidden = x64.shape
    kH, kW = kernel_size
    sH, sW = stride
    pH, pW = padding
    H_img, W_img = output_size
    k_shape = kH * kW
    c_out = W.shape[1]
    channel = c_out // k_shape
    nH = (H_img + 2 * pH - kH) // sH + 1
    nW_ = (W_img + 2 * pW - kW) // sW + 1
    n_vecs = nH * nW_

    feat = x64.reshape(-1, hidden) @ W + bb                 # (b*n, c_out)
    feat = feat.reshape(b * t, n_vecs, c_out)
    out = np.zeros((b * t, channel, H_img, W_img))
    for f in range(b * t):
        for l in range(n_vecs):
            oi, oj = divmod(l, nW_)
            patch = feat[f, l].reshape(channel, k_shape)    # fold channel layout c*k + p
            for ki in range(kH):
                for kj in range(kW):
                    i, j = oi * sH - pH + ki, oj * sW - pW + kj
                    if 0 <= i < H_img and 0 <= j < W_img:
                        out[f, :, i, j] += patch[:, ki * kW + kj]
    out = out + bias[None]
    return out.astype(np.float32)


# ----------------------------------------------------------------------------
if __name__ == "__main__":
    # t2t params: kernel 3x3, stride 2, padding 1, image 12x12 -> 6*6 = 36 windows/frame
    b, t = 2, 2
    channel, hidden = 128, 512          # channel = 128 keeps every kernel array lane dense
    kernel_size, stride, padding = (3, 3), (2, 2), (1, 1)
    output_size = (12, 12)
    k_shape = kernel_size[0] * kernel_size[1]
    c_out = channel * k_shape           # 1152
    nH = (output_size[0] + 2 * padding[0] - kernel_size[0]) // stride[0] + 1
    nW = (output_size[1] + 2 * padding[1] - kernel_size[1]) // stride[1] + 1
    n = t * nH * nW                     # tokens per batch element

    key = jax.random.PRNGKey(0)
    k1, k2, k3, k4 = jax.random.split(key, 4)
    x = jax.random.normal(k1, (b, n, hidden), jnp.float32)
    # nn.Linear(hidden, c_out): torch weight is (c_out, hidden); stored transposed here.
    w_emb = jax.random.normal(k2, (hidden, c_out), jnp.float32) * (1.0 / math.sqrt(hidden))
    b_emb = jax.random.normal(k3, (c_out,), jnp.float32) * 0.02
    bias_chw = jax.random.normal(k4, (channel,) + output_size, jnp.float32) * 0.1

    ref = reference_soft_comp(x, t, w_emb, b_emb, bias_chw, output_size=output_size,
                              kernel_size=kernel_size, stride=stride, padding=padding)

    # exact float32 compute path (tight tolerance)
    out_f32 = soft_comp_forward(x, t, w_emb, b_emb, bias_chw, output_size=output_size,
                                kernel_size=kernel_size, stride=stride, padding=padding,
                                compute_dtype=jnp.float32)
    out_f32 = jax.block_until_ready(out_f32)
    np.testing.assert_allclose(np.asarray(out_f32), ref, rtol=5e-4, atol=5e-4)

    # default path: bf16 operands / f32 MXU accumulation (looser tolerance; the Linear
    # output is cast to bf16 before the fold, bounded by <= kH*kW f32-accumulated terms).
    out_bf16 = soft_comp_forward(x, t, w_emb, b_emb, bias_chw, output_size=output_size,
                                 kernel_size=kernel_size, stride=stride, padding=padding)
    out_bf16 = jax.block_until_ready(out_bf16)
    np.testing.assert_allclose(np.asarray(out_bf16), ref, rtol=3e-2, atol=1e-1)

    print("KERNEL_OK")
</pallas_src>

<mosaic_0001>
module attributes {stable_mosaic.version = 11 : i64} {
  func.func @soft_comp_kernel(%arg0: i32, %arg1: memref<2x36x512xf32, #tpu.memory_space<vmem>>, %arg2: memref<512x1152xf32, #tpu.memory_space<vmem>>, %arg3: memref<144x360xf32, #tpu.memory_space<vmem>>, %arg4: memref<144x256xf32, #tpu.memory_space<vmem>>, %arg5: memref<144x256xf32, #tpu.memory_space<vmem>>, %arg6: memref<80x512xf32, #tpu.memory_space<vmem>>, %arg7: memref<360x256xf32, #tpu.memory_space<vmem>>) attributes {dimension_semantics = [#tpu.dimension_semantics<parallel>], iteration_bounds = array<i64: 2>, scalar_prefetch = 0 : i64, scratch_operands = 2 : i64, tpu.core_type = #tpu.core_type<tc>, window_params = [{transform_indices = @transform_0, window_bounds = array<i64: 2, 36, 512>}, {pipeline_mode = #tpu.pipeline_mode<synchronous>, transform_indices = @transform_1, window_bounds = array<i64: 512, 1152>}, {pipeline_mode = #tpu.pipeline_mode<synchronous>, transform_indices = @transform_2, window_bounds = array<i64: 144, 360>}, {pipeline_mode = #tpu.pipeline_mode<synchronous>, transform_indices = @transform_3, window_bounds = array<i64: 144, 256>}, {transform_indices = @transform_4, window_bounds = array<i64: 144, 256>}]} {
    %cst = arith.constant 0.000000e+00 : f32
    %0 = vector.broadcast %cst : f32 to vector<4x512xf32>
    %c0 = arith.constant 0 : index
    %c0_0 = arith.constant 0 : index
    %c0_1 = arith.constant 0 : index
    %1 = vector.load %arg1[%c0, %c0_0, %c0_1] : memref<2x36x512xf32, #tpu.memory_space<vmem>>, vector<1x36x512xf32>
    %2 = vector.shape_cast %1 : vector<1x36x512xf32> to vector<36x512xf32>
    %c0_2 = arith.constant 0 : index
    %c0_3 = arith.constant 0 : index
    %3 = vector.load %arg6[%c0_2, %c0_3] : memref<80x512xf32, #tpu.memory_space<vmem>>, vector<36x512xf32>
    tpu.vector_store %arg6[%c0_2, %c0_3], %2 {strides = array<i32>} : memref<80x512xf32, #tpu.memory_space<vmem>>, vector<36x512xf32>,
    %c36 = arith.constant 36 : index
    %c0_4 = arith.constant 0 : index
    %4 = vector.load %arg6[%c36, %c0_4] : memref<80x512xf32, #tpu.memory_space<vmem>>, vector<4x512xf32>
    tpu.vector_store %arg6[%c36, %c0_4], %0 {strides = array<i32>} : memref<80x512xf32, #tpu.memory_space<vmem>>, vector<4x512xf32>,
    %c1 = arith.constant 1 : index
    %c0_5 = arith.constant 0 : index
    %c0_6 = arith.constant 0 : index
    %5 = vector.load %arg1[%c1, %c0_5, %c0_6] : memref<2x36x512xf32, #tpu.memory_space<vmem>>, vector<1x36x512xf32>
    %6 = vector.shape_cast %5 : vector<1x36x512xf32> to vector<36x512xf32>
    %c40 = arith.constant 40 : index
    %c0_7 = arith.constant 0 : index
    %7 = vector.load %arg6[%c40, %c0_7] : memref<80x512xf32, #tpu.memory_space<vmem>>, vector<36x512xf32>
    tpu.vector_store %arg6[%c40, %c0_7], %6 {strides = array<i32>} : memref<80x512xf32, #tpu.memory_space<vmem>>, vector<36x512xf32>,
    %c76 = arith.constant 76 : index
    %c0_8 = arith.constant 0 : index
    %8 = vector.load %arg6[%c76, %c0_8] : memref<80x512xf32, #tpu.memory_space<vmem>>, vector<4x512xf32>
    tpu.vector_store %arg6[%c76, %c0_8], %0 {strides = array<i32>} : memref<80x512xf32, #tpu.memory_space<vmem>>, vector<4x512xf32>,
    %c0_9 = arith.constant 0 : index
    %c0_10 = arith.constant 0 : index
    %9 = vector.load %arg6[%c0_9, %c0_10] : memref<80x512xf32, #tpu.memory_space<vmem>>, vector<80x512xf32>
    %c0_11 = arith.constant 0 : index
    %c0_12 = arith.constant 0 : index
    %10 = vector.load %arg2[%c0_11, %c0_12] : memref<512x1152xf32, #tpu.memory_space<vmem>>, vector<512x1152xf32>
    %cst_13 = arith.constant dense<0.000000e+00> : vector<80x1152xf32>
    %11 = tpu.matmul %9, %10, %cst_13 {dimension_numbers = #tpu.dot_dimension_numbers<[1], [0], [0], [1], [0, 0, 1, 1], [], []>} : vector<80x512xf32>, vector<512x1152xf32>, vector<80x1152xf32> -> vector<80x1152xf32>
    %12 = vector.extract_strided_slice %11 {offsets = [0, 0], sizes = [40, 128], strides = [1, 1]} : vector<80x1152xf32> to vector<40x128xf32>
    %c0_14 = arith.constant 0 : index
    %c0_15 = arith.constant 0 : index
    %13 = vector.load %arg7[%c0_14, %c0_15] : memref<360x256xf32, #tpu.memory_space<vmem>>, vector<40x128xf32>
    tpu.vector_store %arg7[%c0_14, %c0_15], %12 {strides = array<i32>} : memref<360x256xf32, #tpu.memory_space<vmem>>, vector<40x128xf32>,
    %14 = vector.extract_strided_slice %11 {offsets = [0, 128], sizes = [40, 128], strides = [1, 1]} : vector<80x1152xf32> to vector<40x128xf32>
    %c40_16 = arith.constant 40 : index
    %c0_17 = arith.constant 0 : index
    %15 = vector.load %arg7[%c40_16, %c0_17] : memref<360x256xf32, #tpu.memory_space<vmem>>, vector<40x128xf32>
    tpu.vector_store %arg7[%c40_16, %c0_17], %14 {strides = array<i32>} : memref<360x256xf32, #tpu.memory_space<vmem>>, vector<40x128xf32>,
    %16 = vector.extract_strided_slice %11 {offsets = [0, 256], sizes = [40, 128], strides = [1, 1]} : vector<80x1152xf32> to vector<40x128xf32>
    %c80 = arith.constant 80 : index
    %c0_18 = arith.constant 0 : index
    %17 = vector.load %arg7[%c80, %c0_18] : memref<360x256xf32, #tpu.memory_space<vmem>>, vector<40x128xf32>
    tpu.vector_store %arg7[%c80, %c0_18], %16 {strides = array<i32>} : memref<360x256xf32, #tpu.memory_space<vmem>>, vector<40x128xf32>,
    %18 = vector.extract_strided_slice %11 {offsets = [0, 384], sizes = [40, 128], strides = [1, 1]} : vector<80x1152xf32> to vector<40x128xf32>
    %c120 = arith.constant 120 : index
    %c0_19 = arith.constant 0 : index
    %19 = vector.load %arg7[%c120, %c0_19] : memref<360x256xf32, #tpu.memory_space<vmem>>, vector<40x128xf32>
    tpu.vector_store %arg7[%c120, %c0_19], %18 {strides = array<i32>} : memref<360x256xf32, #tpu.memory_space<vmem>>, vector<40x128xf32>,
    %20 = vector.extract_strided_slice %11 {offsets = [0, 512], sizes = [40, 128], strides = [1, 1]} : vector<80x1152xf32> to vector<40x128xf32>
    %c160 = arith.constant 160 : index
    %c0_20 = arith.constant 0 : index
    %21 = vector.load %arg7[%c160, %c0_20] : memref<360x256xf32, #tpu.memory_space<vmem>>, vector<40x128xf32>
    tpu.vector_store %arg7[%c160, %c0_20], %20 {strides = array<i32>} : memref<360x256xf32, #tpu.memory_space<vmem>>, vector<40x128xf32>,
    %22 = vector.extract_strided_slice %11 {offsets = [0, 640], sizes = [40, 128], strides = [1, 1]} : vector<80x1152xf32> to vector<40x128xf32>
    %c200 = arith.constant 200 : index
    %c0_21 = arith.constant 0 : index
    %23 = vector.load %arg7[%c200, %c0_21] : memref<360x256xf32, #tpu.memory_space<vmem>>, vector<40x128xf32>
    tpu.vector_store %arg7[%c200, %c0_21], %22 {strides = array<i32>} : memref<360x256xf32, #tpu.memory_space<vmem>>, vector<40x128xf32>,
    %24 = vector.extract_strided_slice %11 {offsets = [0, 768], sizes = [40, 128], strides = [1, 1]} : vector<80x1152xf32> to vector<40x128xf32>
    %c240 = arith.constant 240 : index
    %c0_22 = arith.constant 0 : index
    %25 = vector.load %arg7[%c240, %c0_22] : memref<360x256xf32, #tpu.memory_space<vmem>>, vector<40x128xf32>
    tpu.vector_store %arg7[%c240, %c0_22], %24 {strides = array<i32>} : memref<360x256xf32, #tpu.memory_space<vmem>>, vector<40x128xf32>,
    %26 = vector.extract_strided_slice %11 {offsets = [0, 896], sizes = [40, 128], strides = [1, 1]} : vector<80x1152xf32> to vector<40x128xf32>
    %c280 = arith.constant 280 : index
    %c0_23 = arith.constant 0 : index
    %27 = vector.load %arg7[%c280, %c0_23] : memref<360x256xf32, #tpu.memory_space<vmem>>, vector<40x128xf32>
    tpu.vector_store %arg7[%c280, %c0_23], %26 {strides = array<i32>} : memref<360x256xf32, #tpu.memory_space<vmem>>, vector<40x128xf32>,
    %28 = vector.extract_strided_slice %11 {offsets = [0, 1024], sizes = [40, 128], strides = [1, 1]} : vector<80x1152xf32> to vector<40x128xf32>
    %c320 = arith.constant 320 : index
    %c0_24 = arith.constant 0 : index
    %29 = vector.load %arg7[%c320, %c0_24] : memref<360x256xf32, #tpu.memory_space<vmem>>, vector<40x128xf32>
    tpu.vector_store %arg7[%c320, %c0_24], %28 {strides = array<i32>} : memref<360x256xf32, #tpu.memory_space<vmem>>, vector<40x128xf32>,
    %30 = vector.extract_strided_slice %11 {offsets = [40, 0], sizes = [40, 128], strides = [1, 1]} : vector<80x1152xf32> to vector<40x128xf32>
    %c0_25 = arith.constant 0 : index
    %c128 = arith.constant 128 : index
    %31 = vector.load %arg7[%c0_25, %c128] : memref<360x256xf32, #tpu.memory_space<vmem>>, vector<40x128xf32>
    tpu.vector_store %arg7[%c0_25, %c128], %30 {strides = array<i32>} : memref<360x256xf32, #tpu.memory_space<vmem>>, vector<40x128xf32>,
    %32 = vector.extract_strided_slice %11 {offsets = [40, 128], sizes = [40, 128], strides = [1, 1]} : vector<80x1152xf32> to vector<40x128xf32>
    %c40_26 = arith.constant 40 : index
    %c128_27 = arith.constant 128 : index
    %33 = vector.load %arg7[%c40_26, %c128_27] : memref<360x256xf32, #tpu.memory_space<vmem>>, vector<40x128xf32>
    tpu.vector_store %arg7[%c40_26, %c128_27], %32 {strides = array<i32>} : memref<360x256xf32, #tpu.memory_space<vmem>>, vector<40x128xf32>,
    %34 = vector.extract_strided_slice %11 {offsets = [40, 256], sizes = [40, 128], strides = [1, 1]} : vector<80x1152xf32> to vector<40x128xf32>
    %c80_28 = arith.constant 80 : index
    %c128_29 = arith.constant 128 : index
    %35 = vector.load %arg7[%c80_28, %c128_29] : memref<360x256xf32, #tpu.memory_space<vmem>>, vector<40x128xf32>
    tpu.vector_store %arg7[%c80_28, %c128_29], %34 {strides = array<i32>} : memref<360x256xf32, #tpu.memory_space<vmem>>, vector<40x128xf32>,
    %36 = vector.extract_strided_slice %11 {offsets = [40, 384], sizes = [40, 128], strides = [1, 1]} : vector<80x1152xf32> to vector<40x128xf32>
    %c120_30 = arith.constant 120 : index
    %c128_31 = arith.constant 128 : index
    %37 = vector.load %arg7[%c120_30, %c128_31] : memref<360x256xf32, #tpu.memory_space<vmem>>, vector<40x128xf32>
    tpu.vector_store %arg7[%c120_30, %c128_31], %36 {strides = array<i32>} : memref<360x256xf32, #tpu.memory_space<vmem>>, vector<40x128xf32>,
    %38 = vector.extract_strided_slice %11 {offsets = [40, 512], sizes = [40, 128], strides = [1, 1]} : vector<80x1152xf32> to vector<40x128xf32>
    %c160_32 = arith.constant 160 : index
    %c128_33 = arith.constant 128 : index
    %39 = vector.load %arg7[%c160_32, %c128_33] : memref<360x256xf32, #tpu.memory_space<vmem>>, vector<40x128xf32>
    tpu.vector_store %arg7[%c160_32, %c128_33], %38 {strides = array<i32>} : memref<360x256xf32, #tpu.memory_space<vmem>>, vector<40x128xf32>,
    %40 = vector.extract_strided_slice %11 {offsets = [40, 640], sizes = [40, 128], strides = [1, 1]} : vector<80x1152xf32> to vector<40x128xf32>
    %c200_34 = arith.constant 200 : index
    %c128_35 = arith.constant 128 : index
    %41 = vector.load %arg7[%c200_34, %c128_35] : memref<360x256xf32, #tpu.memory_space<vmem>>, vector<40x128xf32>
    tpu.vector_store %arg7[%c200_34, %c128_35], %40 {strides = array<i32>} : memref<360x256xf32, #tpu.memory_space<vmem>>, vector<40x128xf32>,
    %42 = vector.extract_strided_slice %11 {offsets = [40, 768], sizes = [40, 128], strides = [1, 1]} : vector<80x1152xf32> to vector<40x128xf32>
    %c240_36 = arith.constant 240 : index
    %c128_37 = arith.constant 128 : index
    %43 = vector.load %arg7[%c240_36, %c128_37] : memref<360x256xf32, #tpu.memory_space<vmem>>, vector<40x128xf32>
    tpu.vector_store %arg7[%c240_36, %c128_37], %42 {strides = array<i32>} : memref<360x256xf32, #tpu.memory_space<vmem>>, vector<40x128xf32>,
    %44 = vector.extract_strided_slice %11 {offsets = [40, 896], sizes = [40, 128], strides = [1, 1]} : vector<80x1152xf32> to vector<40x128xf32>
    %c280_38 = arith.constant 280 : index
    %c128_39 = arith.constant 128 : index
    %45 = vector.load %arg7[%c280_38, %c128_39] : memref<360x256xf32, #tpu.memory_space<vmem>>, vector<40x128xf32>
    tpu.vector_store %arg7[%c280_38, %c128_39], %44 {strides = array<i32>} : memref<360x256xf32, #tpu.memory_space<vmem>>, vector<40x128xf32>,
    %46 = vector.extract_strided_slice %11 {offsets = [40, 1024], sizes = [40, 128], strides = [1, 1]} : vector<80x1152xf32> to vector<40x128xf32>
    %c320_40 = arith.constant 320 : index
    %c128_41 = arith.constant 128 : index
    %47 = vector.load %arg7[%c320_40, %c128_41] : memref<360x256xf32, #tpu.memory_space<vmem>>, vector<40x128xf32>
    tpu.vector_store %arg7[%c320_40, %c128_41], %46 {strides = array<i32>} : memref<360x256xf32, #tpu.memory_space<vmem>>, vector<40x128xf32>,
    %c0_42 = arith.constant 0 : index
    %c0_43 = arith.constant 0 : index
    %48 = vector.load %arg3[%c0_42, %c0_43] : memref<144x360xf32, #tpu.memory_space<vmem>>, vector<144x360xf32>
    %c0_44 = arith.constant 0 : index
    %c0_45 = arith.constant 0 : index
    %49 = vector.load %arg7[%c0_44, %c0_45] : memref<360x256xf32, #tpu.memory_space<vmem>>, vector<360x256xf32>
    %cst_46 = arith.constant dense<0.000000e+00> : vector<144x256xf32>
    %50 = tpu.matmul %48, %49, %cst_46 {dimension_numbers = #tpu.dot_dimension_numbers<[1], [0], [0], [1], [0, 0, 1, 1], [], []>} : vector<144x360xf32>, vector<360x256xf32>, vector<144x256xf32> -> vector<144x256xf32>
    %c0_47 = arith.constant 0 : index
    %c0_48 = arith.constant 0 : index
    %51 = vector.load %arg4[%c0_47, %c0_48] : memref<144x256xf32, #tpu.memory_space<vmem>>, vector<144x256xf32>
    %52 = arith.addf %50, %51 : vector<144x256xf32>
    %c0_49 = arith.constant 0 : index
    %c0_50 = arith.constant 0 : index
    %53 = vector.load %arg5[%c0_49, %c0_50] : memref<144x256xf32, #tpu.memory_space<vmem>>, vector<144x256xf32>
    tpu.vector_store %arg5[%c0_49, %c0_50], %52 {strides = array<i32>} : memref<144x256xf32, #tpu.memory_space<vmem>>, vector<144x256xf32>,
    return
  }
  func.func @transform_0(%arg0: i32) -> (i32, i32, i32) {
    %c0_i32 = arith.constant 0 : i32
    %c0_i32_0 = arith.constant 0 : i32
    %c0_i32_1 = arith.constant 0 : i32
    return %arg0, %c0_i32, %c0_i32_0 : i32, i32, i32
  }
  func.func @transform_1(%arg0: i32) -> (i32, i32) {
    %c0_i32 = arith.constant 0 : i32
    %c0_i32_0 = arith.constant 0 : i32
    %c0_i32_1 = arith.constant 0 : i32
    return %c0_i32, %c0_i32_0 : i32, i32
  }
  func.func @transform_2(%arg0: i32) -> (i32, i32) {
    %c0_i32 = arith.constant 0 : i32
    %c0_i32_0 = arith.constant 0 : i32
    %c0_i32_1 = arith.constant 0 : i32
    return %c0_i32, %c0_i32_0 : i32, i32
  }
  func.func @transform_3(%arg0: i32) -> (i32, i32) {
    %c0_i32 = arith.constant 0 : i32
    %c0_i32_0 = arith.constant 0 : i32
    %c0_i32_1 = arith.constant 0 : i32
    return %c0_i32, %c0_i32_0 : i32, i32
  }
  func.func @transform_4(%arg0: i32) -> (i32, i32) {
    %c0_i32 = arith.constant 0 : i32
    %c0_i32_0 = arith.constant 0 : i32
    return %arg0, %c0_i32 : i32, i32
  }
}

</mosaic_0001>

<bundles_post_ra>
// kernel: tpu_custom_call.1
= control target key start
LH: loop header
LB: loop body
LE: loop exit
PB: predicated region body
PF: predicated region fallthrough
CT: control target
= control target key end

     0   :  { %s5619_s0 = inlined_call_operand.vmem [shape: f32[4,36,512], index: 0, kind: input, shape index: {}]   ;;  %s5620_s1 = inlined_call_operand.hbm [shape: f32[512,1152], index: 1, kind: input, shape index: {}]   ;;  %s5621_s2 = inlined_call_operand.hbm [shape: f32[144,360], index: 2, kind: input, shape index: {}]   ;;  %s5622_s3 = inlined_call_operand.hbm [shape: f32[144,256], index: 3, kind: input, shape index: {}]   ;;  %s5623_s4 = inlined_call_operand.hbm [shape: f32[288,256], index: 4, kind: output, shape index: {}]  }
   0x1   :  { %5665 = sst [smem:[#allocation61_spill]] %s5620_s1 }
   0x2   :  { %9 = vsyncpa [#allocation5], 0 }
   0x3   :  { %10 = vsyncpa [#allocation8], 0 }
   0x4   :  { %11 = vsyncpa [#allocation6], 0 }
   0x5   :  { %13 = vsyncpa [#allocation6 + $0x1], 0  ;;  %s4028_s15 = smov 0   ;;  %s4030_s16 = smov 0  }
   0x6   :  { %s4032_s17 = smov 0   ;;  %s4034_s18 = smov 0  }
   0x7 LB: > { %s4049_s19 = sadd.s32 4294967295, %s3989_s18   ;;  %s3546_s20 = sadd.s32 4294967294, %s3989_s18   ;;  %s3989_s18 = sphi %s4034_s18, %s5867_s18   ;;  %s3985_s17 = sphi %s4032_s17, %s5866_s17   ;;  %s3981_s16 = sphi %s4030_s16, %s5865_s16   ;;  %s3977_s15 = sphi %s4028_s15, %s5864_s15  }
   0x8   : > { %s4053_s21 = sadd.s32 1, %s3989_s18   ;;  %s115_s22 = sadd.s32 1, %s3985_s17 }
   0x9   : > { %s112_s23 = ssub.s32 %s3989_s18, %s4053_s21  ;;  %p125_p0 = scmp.ne.s32.totalorder %s3985_s17, %s3981_s16 }
   0xa   : > { %p113_p1 = scmp.eq.s32.totalorder %s112_s23, 0  ;;  %p126_p2 = scmp.eq.s32.totalorder %s4049_s19, 1 }
   0xb   : > { %p131_p3 = scmp.ne.s32.totalorder %s3981_s16, %s3977_s15  ;;  %p132_p4 = scmp.eq.s32.totalorder %s3546_s20, 1 }
   0xc   : > { %s4064_s24 = scalar_select %p113_p1, %s3985_s17, %s115_s22  }
   0xd   : > { %p4066_p5 = por %p126_p2, %p125_p0  ;;  %p4070_p6 = por %p132_p4, %p131_p3 }
   0xe   : > { %p3547_p7 = scmp.ge.s32.totalorder %s3989_s18, 1  ;;  %p139_p8 = scmp.lt.s32.totalorder %s3989_s18, 3 }
   0xf   : > { %p3683_p9 = scmp.eq.s32.totalorder %s4049_s19, 0  ;;  %s164_s30 = sshll.u32 %s5621_s2, 4  ;;  %s165_s30 = int_to_ptr.hbm [resolvable:$true] %s164_s30 }
  0x10   : > { %p4077_p10 = pnand %p3547_p7, %p139_p8  ;;  %s3991_s5 = smov [#allocation7]  }
  0x11   : > { %s166_s6 = sshll.u32 %s3991_s5, 4  ;;  %s5670_s1 = sld [smem:[#allocation61_spill]]  ;;  %s167_s6 = int_to_ptr.vmem [resolvable:$true] %s166_s6 }
  0x12   : > { %p3669_p11 = pneg %p4077_p10  ;;  %s3992_s11 = smov 384  }
  0x13   : > { %s3993_s12 = smov 24   ;;  %s3994_s13 = smov [#allocation4]  }
  0x14   : > { %p4088_p12 = pnand %p3683_p9, %p3669_p11  ;;  %s152_s14 = sshll.u32 %s3994_s13, 4  ;;  %s153_s14 = int_to_ptr.vmem [resolvable:$true] %s152_s14 }
  0x15   : > { %s3995_s20 = smov 1152   ;;  %s3996_s22 = smov 72  }
  0x16   : > { %3675 = dma.hbm_to_vmem [thread:$0]  (!%p4088_p12), %s165_s30, 6912, %s167_s6, [#allocation8], %s3992_s11, %s3992_s11, %s3993_s12  }
  0x17   : > { %s150_s10 = sshll.u32 %s5670_s1, 4  ;;  %s178_s29 = sshll.u32 %s5622_s3, 4  ;;  %s151_s10 = int_to_ptr.hbm [resolvable:$true] %s150_s10  ;;  %s179_s29 = int_to_ptr.hbm [resolvable:$true] %s178_s29 }
  0x18   : > { %3672 = dma.hbm_to_vmem [thread:$0]  (!%p4088_p12), %s151_s10, 73728, %s153_s14, [#allocation5], %s3995_s20, %s3995_s20, %s3996_s22  }
  0x19   : > { %s3997_s5 = smov [#allocation9]   ;;  %s3998_s9 = smov 256  }
  0x1a   : > { %s180_s8 = sshll.u32 %s3997_s5, 4  ;;  %s3999_s1 = smov 16   ;;  %s181_s8 = int_to_ptr.vmem [resolvable:$true] %s180_s8 }
  0x1b   : > { %3678 = dma.hbm_to_vmem [thread:$0]  (!%p4088_p12), %s179_s29, 4608, %s181_s8, [#allocation8], %s3998_s9, %s3998_s9, %s3999_s1  }
  0x1c   : > { %206 = sbr.rel (%p4077_p10) target bundleno = 1210 (0x4ba), region = 36 }
  0x21   : > { %3964 = dma.done.wait (%p3683_p9), [#allocation5], 73728  }
  0x22   : > { %3966 = vsyncadd (%p3683_p9), [#allocation5], 4294893568 }
  0x23   : > { %3968 = dma.done.wait (%p3683_p9), [#allocation8], 11520  }
  0x24   : > { %3970 = vsyncadd (%p3683_p9), [#allocation8], 4294955776  ;;  %v516_v0 = vld [vmem:[#allocation4 + $0x438] sm:$0xff]  ;;  %v507_v2 = vld [vmem:[#allocation4 + $0x3f0] sm:$0xff]  ;;  %s3556_s1 = sshll.u32 %s4049_s19, 1  ;;  %vm2919_vm0 = vcmask 850944  }
  0x25   : > { %v804_v1 = vld [vmem:[#allocation4 + $0xd38] sm:$0xff]  ;;  %957 = vmatpush.msra.mxu0 %v516_v0  ;;  %v795_v3 = vld [vmem:[#allocation4 + $0xcf0] sm:$0xff]  ;;  %v498_v5 = vld [vmem:[#allocation4 + $0x3a8] sm:$0xff]  ;;  %p4117_p13 = scmp.lt.s32.totalorder %s3556_s1, 3  ;;  %s241_s11 = sand.u32 1, %s3981_s16  }
  0x26   : > { %1051 = vmatpush.msra.mxu2 %v804_v1  ;;  %v948_v4 = vld [vmem:[#allocation4 + $0x11b8] sm:$0xff]  ;;  %v786_v7 = vld [vmem:[#allocation4 + $0xca8] sm:$0xff]  ;;  %v939_v8 = vld [vmem:[#allocation4 + $0x1170] sm:$0xff]  ;;  %s3653_s12 = smul.u32 288, %s241_s11  ;;  %s3939_s27 = scalar_lea.hbm %s5623_s4, 576 }
  0x27   : > { %1098 = vmatpush.msra.mxu3 %v948_v4  ;;  %v660_v6 = vld [vmem:[#allocation4 + $0x8b8] sm:$0xff]  ;;  %958 = vmatpush.msra.mxu0 %v507_v2  ;;  %v651_v9 = vld [vmem:[#allocation4 + $0x870] sm:$0xff]  ;;  %v489_v10 = vld [vmem:[#allocation4 + $0x360] sm:$0xff]  ;;  %s5869_s1 = smov (!%p4117_p13, %s3556_s1), 3  ;;  %s3620_s14 = smul.u32 288, %s4049_s19 }
  0x28   : > { %1052 = vmatpush.msra.mxu2 %v795_v3  ;;  %1004 = vmatpush.msra.mxu1 %v660_v6  ;;  %v777_v11 = vld [vmem:[#allocation4 + $0xc60] sm:$0xff]  ;;  %v930_v12 = vld [vmem:[#allocation4 + $0x1128] sm:$0xff]  ;;  %v480_v15 = vld [vmem:[#allocation4 + $0x318] sm:$0xff]  ;;  %s3654_s30 = smul.u32 160, %s5869_s1  ;;  %s5496_s13 = scalar_lea.vmem [#allocation10], %s3653_s12 }
  0x29   : > { %1099 = vmatpush.msra.mxu3 %v939_v8  ;;  %959 = vmatpush.msra.mxu0 %v498_v5  ;;  %v642_v13 = vld [vmem:[#allocation4 + $0x828] sm:$0xff]  ;;  %v921_v14 = vld [vmem:[#allocation4 + $0x10e0] sm:$0xff]  ;;  %v768_v16 = vld [vmem:[#allocation4 + $0xc18] sm:$0xff]  ;;  %s3449_s23 = scalar_lea.hbm %s5623_s4, %s3620_s14  ;;  %s3450_s28 = sshll.u32 %s5496_s13, 4  ;;  %s3451_s28 = int_to_ptr.vmem [resolvable:$true] %s3450_s28 }
  0x2a   : > { %1053 = vmatpush.msra.mxu2 %v786_v7  ;;  %1005 = vmatpush.msra.mxu1 %v651_v9  ;;  %v633_v17 = vld [vmem:[#allocation4 + $0x7e0] sm:$0xff]  ;;  %v912_v18 = vld [vmem:[#allocation4 + $0x1098] sm:$0xff]  ;;  %v471_v19 = vld [vmem:[#allocation4 + $0x2d0] sm:$0xff]  ;;  %s4131_s10 = scalar_lea.vmem %s5619_s0, %s3654_s30  ;;  %s3452_s29 = sshll.u32 %s3449_s23, 4  ;;  %s3453_s29 = int_to_ptr.hbm [resolvable:$true] %s3452_s29 }
  0x2b   : > { %1100 = vmatpush.msra.mxu3 %v930_v12  ;;  %960 = vmatpush.msra.mxu0 %v489_v10  ;;  %v759_v20 = vld [vmem:[#allocation4 + $0xbd0] sm:$0xff]  ;;  %v624_v21 = vld [vmem:[#allocation4 + $0x798] sm:$0xff]  ;;  %v462_v23 = vld [vmem:[#allocation4 + $0x288] sm:$0xff]  ;;  %s3437_s19 = scalar_lea.sflag [#allocation6], %s241_s11  ;;  %s3933_s5 = sshra.s32 %s3453_s29, 4  ;;  %s3934_s5 = int_to_ptr.hbm [resolvable:$true] %s3933_s5 }
  0x2c   : > { %1054 = vmatpush.msra.mxu2 %v777_v11  ;;  %1006 = vmatpush.msra.mxu1 %v642_v13  ;;  %v903_v22 = vld [vmem:[#allocation4 + $0x1050] sm:$0xff]  ;;  %v750_v24 = vld [vmem:[#allocation4 + $0xb88] sm:$0xff]  ;;  %v453_v27 = vld [vmem:[#allocation4 + $0x240] sm:$0xff]  ;;  %s3935_s8 = scalar_lea.hbm %s3934_s5, 288  ;;  %p3940_p3 = scmp.lt.s32.totalorder %s3934_s5, %s5623_s4 }
  0x2d   : > { %1101 = vmatpush.msra.mxu3 %v921_v14  ;;  %961 = vmatpush.msra.mxu0 %v480_v15  ;;  %v615_v25 = vld [vmem:[#allocation4 + $0x750] sm:$0xff]  ;;  %v894_v26 = vld [vmem:[#allocation4 + $0x1008] sm:$0xff]  ;;  %v741_v28 = vld [vmem:[#allocation4 + $0xb40] sm:$0xff]  ;;  %p3936_p0 = scmp.ne.s32.totalorder %s3934_s5, %s3935_s8  ;;  %p3941_p4 = scmp.lt.s32.totalorder %s3939_s27, %s3935_s8 }
  0x2e   : > { %1055 = vmatpush.msra.mxu2 %v768_v16  ;;  %1007 = vmatpush.msra.mxu1 %v633_v17  ;;  %v606_v29 = vld [vmem:[#allocation4 + $0x708] sm:$0xff]  ;;  %v885_v30 = vld [vmem:[#allocation4 + $0xfc0] sm:$0xff]  ;;  %v444_v31 = vld [vmem:[#allocation4 + $0x1f8] sm:$0xff]  ;;  %v4000_v17 = vmov 0.0  }
  0x2f   : > { %1102 = vmatpush.msra.mxu3 %v912_v18  ;;  %962 = vmatpush.msra.mxu0 %v471_v19  ;;  %v732_v32 = vld [vmem:[#allocation4 + $0xaf8] sm:$0xff]  ;;  %v597_v33 = vld [vmem:[#allocation4 + $0x6c0] sm:$0xff]  ;;  %v435_v35 = vld [vmem:[#allocation4 + $0x1b0] sm:$0xff]  ;;  %292 = vst [vmem:[#allocation2 + $0x128] sm:$0xf0] %v4000_v17  ;;  %p3937_p1 = pnand %p3936_p0, %p4066_p5  ;;  %p3942_p7 = por %p3941_p4, %p3940_p3 }
  0x30   : > { %1056 = vmatpush.msra.mxu2 %v759_v20  ;;  %1008 = vmatpush.msra.mxu1 %v624_v21  ;;  %v876_v34 = vld [vmem:[#allocation4 + $0xf78] sm:$0xff]  ;;  %v723_v36 = vld [vmem:[#allocation4 + $0xab0] sm:$0xff]  ;;  %v426_v39 = vld [vmem:[#allocation4 + $0x168] sm:$0xff]  ;;  %293 = vst [vmem:[#allocation2 + $0x110] sm:$0xf0] %v4000_v17 }
  0x31   : > { %1103 = vmatpush.msra.mxu3 %v903_v22  ;;  %963 = vmatpush.msra.mxu0 %v462_v23  ;;  %v588_v37 = vld [vmem:[#allocation4 + $0x678] sm:$0xff]  ;;  %v867_v38 = vld [vmem:[#allocation4 + $0xf30] sm:$0xff]  ;;  %v714_v40 = vld [vmem:[#allocation4 + $0xa68] sm:$0xff]  ;;  %294 = vst [vmem:[#allocation2 + $0x8] sm:$0xf0] %v4000_v17  ;;  %p3938_p2 = pneg %p3937_p1 }
  0x32   : > { %1057 = vmatpush.msra.mxu2 %v750_v24  ;;  %1009 = vmatpush.msra.mxu1 %v615_v25  ;;  %v579_v41 = vld [vmem:[#allocation4 + $0x630] sm:$0xff]  ;;  %v858_v42 = vld [vmem:[#allocation4 + $0xee8] sm:$0xff]  ;;  %v417_v43 = vld [vmem:[#allocation4 + $0x120] sm:$0xff]  ;;  %295 = vst [vmem:[#allocation2 + $0x98] sm:$0xf0] %v4000_v17 }
  0x33   : > { %1104 = vmatpush.msra.mxu3 %v894_v26  ;;  %964 = vmatpush.msra.mxu0 %v453_v27  ;;  %v705_v44 = vld [vmem:[#allocation4 + $0xa20] sm:$0xff]  ;;  %v570_v46 = vld [vmem:[#allocation4 + $0x5e8] sm:$0xff]  ;;  %v4138_v48 = vld [vmem:[%s4131_s10 + $0x10] sm:$0xff]  ;;  %337 = vst [vmem:[#allocation2 + $0x28] sm:$0xf0] %v4000_v17  ;;  %p3943_p8 = pnand %p3942_p7, %p3938_p2 }
  0x34   : > { %1058 = vmatpush.msra.mxu2 %v741_v28  ;;  %1010 = vmatpush.msra.mxu1 %v606_v29  ;;  %v4134_v45 = vld [vmem:[%s4131_s10] sm:$0xff]  ;;  %v408_v49 = vld [vmem:[#allocation4 + $0xd8] sm:$0xff]  ;;  %274 = vst [vmem:[#allocation2 + $0x10] sm:$0xff] %v4138_v48  ;;  %v4146_v54 = vld [vmem:[%s4131_s10 + $0x8] sm:$0xff] }
  0x35   : > { %1105 = vmatpush.msra.mxu3 %v885_v30  ;;  %965 = vmatpush.msra.mxu0 %v444_v31  ;;  %v849_v47 = vld [vmem:[#allocation4 + $0xea0] sm:$0xff]  ;;  %272 = vst [vmem:[#allocation2 + $0xb0] sm:$0xff] %v4134_v45  ;;  %v696_v50 = vld [vmem:[#allocation4 + $0x9d8] sm:$0xff]  ;;  %v399_v55 = vld [vmem:[#allocation4 + $0x90] sm:$0xff] }
  0x36   : > { %1059 = vmatpush.msra.mxu2 %v732_v32  ;;  %1011 = vmatpush.msra.mxu1 %v597_v33  ;;  %v4142_v51 = vld [vmem:[%s4131_s10 + $0x18] sm:$0xff]  ;;  %v561_v52 = vld [vmem:[#allocation4 + $0x5a0] sm:$0xff]  ;;  %v687_v56 = vld [vmem:[#allocation4 + $0x990] sm:$0xff]  ;;  %273 = vst [vmem:[#allocation2 + $0xd0] sm:$0xff] %v4146_v54 }
  0x37   : > { %1106 = vmatpush.msra.mxu3 %v876_v34  ;;  %966 = vmatpush.msra.mxu0 %v435_v35  ;;  %v840_v53 = vld [vmem:[#allocation4 + $0xe58] sm:$0xff]  ;;  %275 = vst [vmem:[#allocation2 + $0x48] sm:$0xff] %v4142_v51  ;;  %v4150_v57 = vld [vmem:[%s4131_s10 + $0x20] sm:$0xff]  ;;  %v831_v59 = vld [vmem:[#allocation4 + $0xe10] sm:$0xff] }
  0x38   : > { %1060 = vmatpush.msra.mxu2 %v723_v36  ;;  %1012 = vmatpush.msra.mxu1 %v588_v37  ;;  %v552_v58 = vld [vmem:[#allocation4 + $0x558] sm:$0xff]  ;;  %276 = vst [vmem:[#allocation2 + $0x120] sm:$0xff] %v4150_v57  ;;  %v4154_v60 = vld [vmem:[%s4131_s10 + $0x30] sm:$0xff]  ;;  %v390_v61 = vld [vmem:[#allocation4 + $0x48] sm:$0xff] }
  0x39   : > { %1107 = vmatpush.msra.mxu3 %v867_v38  ;;  %967 = vmatpush.msra.mxu0 %v426_v39  ;;  %v678_v62 = vld [vmem:[#allocation4 + $0x948] sm:$0xff]  ;;  %278 = vst [vmem:[#allocation2 + $0xf8] sm:$0xff] %v4154_v60  ;;  %v4158_v63 = vld [vmem:[%s4131_s10 + $0x38] sm:$0xff]  ;;  %v543_v0 = vld [vmem:[#allocation4 + $0x510] sm:$0xff] }
  0x3a   : > { %1061 = vmatpush.msra.mxu2 %v714_v40  ;;  %1013 = vmatpush.msra.mxu1 %v579_v41  ;;  %v822_v1 = vld [vmem:[#allocation4 + $0xdc8] sm:$0xff]  ;;  %279 = vst [vmem:[#allocation2 + $0x100] sm:$0xff] %v4158_v63  ;;  %v381_v3 = vld [vmem:[#allocation4] sm:$0xff]  ;;  %v4170_v6 = vld [vmem:[%s4131_s10 + $0x50] sm:$0xff] }
  0x3b   : > { %1108 = vmatpush.msra.mxu3 %v858_v42  ;;  %968 = vmatpush.msra.mxu0 %v417_v43  ;;  %v4162_v2 = vld [vmem:[%s4131_s10 + $0x28] sm:$0xff]  ;;  %v669_v4 = vld [vmem:[#allocation4 + $0x900] sm:$0xff]  ;;  %282 = vst [vmem:[#allocation2 + $0x138] sm:$0xff] %v4170_v6  ;;  %v4174_v9 = vld [vmem:[%s4131_s10 + $0x58] sm:$0xff] }
  0x3c   : > { %1062 = vmatpush.msra.mxu2 %v705_v44  ;;  %1014 = vmatpush.msra.mxu1 %v570_v46  ;;  %277 = vst [vmem:[#allocation2 + $0x38] sm:$0xff] %v4162_v2  ;;  %v4166_v5 = vld [vmem:[%s4131_s10 + $0x40] sm:$0xff]  ;;  %v534_v7 = vld [vmem:[#allocation4 + $0x4c8] sm:$0xff]  ;;  %v4188_v13 = vld [vmem:[%s4131_s10 + $0x70] sm:$0xff] }
  0x3d   : > { %1109 = vmatpush.msra.mxu3 %v849_v47  ;;  %969 = vmatpush.msra.mxu0 %v408_v49  ;;  %280 = vst [vmem:[#allocation2 + $0x80] sm:$0xff] %v4166_v5  ;;  %v813_v8 = vld [vmem:[#allocation4 + $0xd80] sm:$0xff]  ;;  %v4178_v10 = vld [vmem:[%s4131_s10 + $0x48] sm:$0xff]  ;;  %v4193_v14 = vld [vmem:[%s4131_s10 + $0x78] sm:$0xff] }
  0x3e   : > { %1063 = vmatpush.msra.mxu2 %v696_v50  ;;  %1015 = vmatpush.msra.mxu1 %v561_v52  ;;  %283 = vst [vmem:[#allocation2 + $0xf0] sm:$0xff] %v4174_v9  ;;  %v525_v11 = vld [vmem:[#allocation4 + $0x480] sm:$0xff]  ;;  %v4198_v16 = vld [vmem:[%s4131_s10 + $0x68] sm:$0xff]  ;;  %v270_v18 = vld [vmem:[%s4131_s10 + $0x90] sm:$0xf] }
  0x3f   : > { %1110 = vmatpush.msra.mxu3 %v840_v53  ;;  %970 = vmatpush.msra.mxu0 %v399_v55  ;;  %281 = vst [vmem:[#allocation2 + $0x108] sm:$0xff] %v4178_v10  ;;  %v4184_v12 = vld [vmem:[%s4131_s10 + $0x60] sm:$0xff]  ;;  %v271_v19 = vld [vmem:[%s4131_s10 + $0x98] sm:$0xf]  ;;  %v269_v21 = vld [vmem:[%s4131_s10 + $0x88] sm:$0xf] }
  0x40   : > { %1064 = vmatpush.msra.mxu2 %v687_v56  ;;  %1016 = vmatpush.msra.mxu1 %v552_v58  ;;  %284 = vst [vmem:[#allocation2 + $0x18] sm:$0xff] %v4184_v12  ;;  %v268_v15 = vld [vmem:[%s4131_s10 + $0x80] sm:$0xf]  ;;  %v4216_v25 = vld [vmem:[%s4131_s10 + $0xb0] sm:$0xff]  ;;  %v4219_v26 = vld [vmem:[%s4131_s10 + $0xb8] sm:$0xff] }
  0x41   : > { %1111 = vmatpush.msra.mxu3 %v831_v59  ;;  %971 = vmatpush.msra.mxu0 %v390_v61  ;;  %286 = vst [vmem:[#allocation2 + $0x70] sm:$0xff] %v4188_v13  ;;  %v805_v20 = vld [vmem:[#allocation4 + $0xd40] sm:$0xff]  ;;  %v508_v27 = vld [vmem:[#allocation4 + $0x3f8] sm:$0xff]  ;;  %v4225_v30 = vld [vmem:[%s4131_s10 + $0xa8] sm:$0xff] }
  0x42   : > { %1065 = vmatpush.msra.mxu2 %v678_v62  ;;  %1017 = vmatpush.msra.mxu1 %v543_v0  ;;  %287 = vst [vmem:[#allocation2 + $0x20] sm:$0xff] %v4193_v14  ;;  %v4212_v22 = vld [vmem:[%s4131_s10 + $0xa0] sm:$0xff]  ;;  %v796_v29 = vld [vmem:[#allocation4 + $0xcf8] sm:$0xff]  ;;  %v499_v32 = vld [vmem:[#allocation4 + $0x3b0] sm:$0xff] }
  0x43   : > { %1112 = vmatpush.msra.mxu3 %v822_v1  ;;  %972 = vmatpush.msra.mxu0 %v381_v3  ;;  %285 = vst [vmem:[#allocation2 + $0xc8] sm:$0xff] %v4198_v16  ;;  %v517_v23 = vld [vmem:[#allocation4 + $0x440] sm:$0xff]  ;;  %v787_v33 = vld [vmem:[#allocation4 + $0xcb0] sm:$0xff]  ;;  %v940_v34 = vld [vmem:[#allocation4 + $0x1178] sm:$0xff] }
  0x44   : > { %1066 = vmatpush.msra.mxu2 %v669_v4  ;;  %973 = vmatmul.f32.vlgmr.msra.gmra.mxu0 %v4134_v45  ;;  %288 = vst [vmem:[#allocation2 + $0x128] sm:$0xf] %v268_v15  ;;  %v949_v24 = vld [vmem:[#allocation4 + $0x11c0] sm:$0xff]  ;;  %v4234_v35 = vld [vmem:[%s4131_s10 + $0xd0] sm:$0xff]  ;;  %v490_v36 = vld [vmem:[#allocation4 + $0x368] sm:$0xff] }
  0x45   : > { %1067 = vmatmul.f32.vlgmr.msra.gmra.mxu2 %v4138_v48  ;;  %1018 = vmatpush.msra.mxu1 %v534_v7  ;;  %338 = vst [vmem:[#allocation2] sm:$0xf0] %v4000_v17  ;;  %v661_v28 = vld [vmem:[#allocation4 + $0x8c0] sm:$0xff]  ;;  %v652_v37 = vld [vmem:[#allocation4 + $0x878] sm:$0xff]  ;;  %v778_v39 = vld [vmem:[#allocation4 + $0xc68] sm:$0xff] }
  0x46   : > { %1113 = vmatpush.msra.mxu3 %v813_v8  ;;  %339 = vst [vmem:[#allocation2 + $0xb8] sm:$0xf0] %v4000_v17  ;;  %1239 = vmatpush.msrb.mxu2 %v805_v20  ;;  %v4228_v31 = vld [vmem:[%s4131_s10 + $0xc0] sm:$0xff]  ;;  %v4238_v38 = vld [vmem:[%s4131_s10 + $0xd8] sm:$0xff]  ;;  %v931_v40 = vld [vmem:[#allocation4 + $0x1130] sm:$0xff] }
  0x47   : > { %1114 = vmatmul.f32.vlgmr.msra.gmra.mxu3 %v4142_v51  ;;  %1019 = vmatpush.msra.mxu1 %v525_v11  ;;  %340 = vst [vmem:[#allocation2 + $0x60] sm:$0xf0] %v4000_v17  ;;  %v4242_v41 = vld [vmem:[%s4131_s10 + $0xc8] sm:$0xff]  ;;  %v4245_v42 = vld [vmem:[%s4131_s10 + $0xe0] sm:$0xff]  ;;  %v643_v44 = vld [vmem:[#allocation4 + $0x830] sm:$0xff] }
  0x48   : > { %1020 = vmatmul.f32.vlgmr.msra.gmra.mxu1 %v4146_v54  ;;  %290 = vst [vmem:[#allocation2 + $0x8] sm:$0xf] %v270_v18  ;;  %1145 = vmatpush.msrb.mxu0 %v517_v23  ;;  %v481_v43 = vld [vmem:[#allocation4 + $0x320] sm:$0xff]  ;;  %v4252_v47 = vld [vmem:[%s4131_s10 + $0xf0] sm:$0xff]  ;;  %v922_v49 = vld [vmem:[#allocation4 + $0x10e8] sm:$0xff] }
  0x49   : > { %291 = vst [vmem:[#allocation2 + $0x98] sm:$0xf] %v271_v19  ;;  %1286 = vmatpush.msrb.mxu3 %v949_v24  ;;  %1192 = vmatpush.msrb.mxu1 %v661_v28  ;;  %v769_v46 = vld [vmem:[#allocation4 + $0xc20] sm:$0xff]  ;;  %v4255_v50 = vld [vmem:[%s4131_s10 + $0xf8] sm:$0xff]  ;;  %v634_v53 = vld [vmem:[#allocation4 + $0x7e8] sm:$0xff] }
  0x4a   : > { %289 = vst [vmem:[#allocation2 + $0x110] sm:$0xf] %v269_v21  ;;  %1146 = vmatpush.msrb.mxu0 %v508_v27  ;;  %1240 = vmatpush.msrb.mxu2 %v796_v29  ;;  %v472_v52 = vld [vmem:[#allocation4 + $0x2d8] sm:$0xff]  ;;  %v913_v56 = vld [vmem:[#allocation4 + $0x10a0] sm:$0xff]  ;;  %v4261_v58 = vld [vmem:[%s4131_s10 + $0xe8] sm:$0xff] }
  0x4b   : > { %317 = vst [vmem:[#allocation2 + $0xa8] sm:$0xff] %v4212_v22  ;;  %1287 = vmatpush.msrb.mxu3 %v940_v34  ;;  %1193 = vmatpush.msrb.mxu1 %v652_v37  ;;  %v760_v55 = vld [vmem:[#allocation4 + $0xbd8] sm:$0xff]  ;;  %v463_v59 = vld [vmem:[#allocation4 + $0x290] sm:$0xff]  ;;  %v625_v61 = vld [vmem:[#allocation4 + $0x7a0] sm:$0xff] }
  0x4c   : > { %976 = vmatmul.f32.gmra.mxu0 %v4150_v57  ;;  %319 = vst [vmem:[#allocation2 + $0xe0] sm:$0xff] %v4216_v25  ;;  %1241 = vmatpush.msrb.mxu2 %v787_v33  ;;  %v751_v62 = vld [vmem:[#allocation4 + $0xb90] sm:$0xff]  ;;  %v4265_v0 = vld [vmem:[#allocation2 + $0x128] sm:$0xff]  ;;  %v904_v4 = vld [vmem:[#allocation4 + $0x1058] sm:$0xff] }
  0x4d   : > { %1070 = vmatmul.f32.gmra.mxu2 %v4154_v60  ;;  %320 = vst [vmem:[#allocation2 + $0x88] sm:$0xff] %v4219_v26  ;;  %1147 = vmatpush.msrb.mxu0 %v499_v32  ;;  %v454_v7 = vld [vmem:[#allocation4 + $0x248] sm:$0xff]  ;;  %v4272_v8 = vld [vmem:[%s4131_s10 + $0x100] sm:$0xff]  ;;  %v616_v15 = vld [vmem:[#allocation4 + $0x758] sm:$0xff] }
  0x4e   : > { %318 = vst [vmem:[#allocation2 + $0x90] sm:$0xff] %v4225_v30  ;;  %1288 = vmatpush.msrb.mxu3 %v931_v40  ;;  %1242 = vmatpush.msrb.mxu2 %v778_v39  ;;  %v4278_v17 = vld [vmem:[%s4131_s10 + $0x110] sm:$0xff]  ;;  %v3574_v18 = vld [vmem:[%s4131_s10 + $0x120] sm:$0xf]  ;;  %v742_v19 = vld [vmem:[#allocation4 + $0xb48] sm:$0xff] }
  0x4f   : > { %1117 = vmatmul.f32.gmra.mxu3 %v4158_v63  ;;  %321 = vst [vmem:[#allocation2 + $0xc0] sm:$0xff] %v4228_v31  ;;  %1148 = vmatpush.msrb.mxu0 %v490_v36  ;;  %v4267_v1 = vld [vmem:[#allocation2 + $0x8] sm:$0xff]  ;;  %v895_v20 = vld [vmem:[#allocation4 + $0x1010] sm:$0xff]  ;;  %v445_v23 = vld [vmem:[#allocation4 + $0x200] sm:$0xff] }
  0x50   : > { %1023 = vmatmul.f32.gmra.mxu1 %v4162_v2  ;;  %323 = vst [vmem:[#allocation2 + $0xd8] sm:$0xff] %v4234_v35  ;;  %1243 = vmatpush.msrb.mxu2 %v769_v46  ;;  %v4269_v3 = vld [vmem:[#allocation2 + $0x98] sm:$0xff]  ;;  %v3576_v21 = vld [vmem:[%s4131_s10 + $0x130] sm:$0xf]  ;;  %v733_v28 = vld [vmem:[#allocation4 + $0xb00] sm:$0xff] }
  0x51   : > { %324 = vst [vmem:[#allocation2 + $0xa0] sm:$0xff] %v4238_v38  ;;  %1149 = vmatpush.msrb.mxu0 %v481_v43  ;;  %1194 = vmatpush.msrb.mxu1 %v643_v44  ;;  %v4274_v11 = vld [vmem:[#allocation2 + $0x110] sm:$0xff]  ;;  %v4286_v27 = vld [vmem:[%s4131_s10 + $0x118] sm:$0xff]  ;;  %v886_v29 = vld [vmem:[#allocation4 + $0xfc8] sm:$0xff] }
  0x52   : > { %322 = vst [vmem:[#allocation2 + $0x118] sm:$0xff] %v4242_v41  ;;  %1289 = vmatpush.msrb.mxu3 %v922_v49  ;;  %1244 = vmatpush.msrb.mxu2 %v760_v55  ;;  %v607_v24 = vld [vmem:[#allocation4 + $0x710] sm:$0xff]  ;;  %v3577_v32 = vld [vmem:[%s4131_s10 + $0x138] sm:$0xf]  ;;  %v4292_v34 = vld [vmem:[%s4131_s10 + $0x108] sm:$0xff] }
  0x53   : > { %325 = vst [vmem:[#allocation2 + $0x68] sm:$0xff] %v4245_v42  ;;  %1150 = vmatpush.msrb.mxu0 %v472_v52  ;;  %1195 = vmatpush.msrb.mxu1 %v634_v53  ;;  %v436_v33 = vld [vmem:[#allocation4 + $0x1b8] sm:$0xff]  ;;  %v3575_v36 = vld [vmem:[%s4131_s10 + $0x128] sm:$0xf]  ;;  %v877_v40 = vld [vmem:[#allocation4 + $0xf80] sm:$0xff] }
  0x54   : > { %979 = vmatmul.f32.gmra.mxu0 %v4166_v5  ;;  %327 = vst [vmem:[#allocation2 + $0x50] sm:$0xff] %v4252_v47  ;;  %1290 = vmatpush.msrb.mxu3 %v913_v56  ;;  %v598_v37 = vld [vmem:[#allocation4 + $0x6c8] sm:$0xff]  ;;  %v724_v39 = vld [vmem:[#allocation4 + $0xab8] sm:$0xff]  ;;  %v427_v43 = vld [vmem:[#allocation4 + $0x170] sm:$0xff] }
  0x55   : > { %1073 = vmatmul.f32.gmra.mxu2 %v4170_v6  ;;  %328 = vst [vmem:[#allocation2 + $0xe8] sm:$0xff] %v4255_v50  ;;  %1151 = vmatpush.msrb.mxu0 %v463_v59  ;;  %v589_v44 = vld [vmem:[#allocation4 + $0x680] sm:$0xff]  ;;  %v715_v46 = vld [vmem:[#allocation4 + $0xa70] sm:$0xff]  ;;  %v868_v49 = vld [vmem:[#allocation4 + $0xf38] sm:$0xff] }
  0x56   : > { %326 = vst [vmem:[#allocation2 + $0x130] sm:$0xff] %v4261_v58  ;;  %1196 = vmatpush.msrb.mxu1 %v625_v61  ;;  %1245 = vmatpush.msrb.mxu2 %v751_v62  ;;  %v418_v52 = vld [vmem:[#allocation4 + $0x128] sm:$0xff]  ;;  %v580_v53 = vld [vmem:[#allocation4 + $0x638] sm:$0xff]  ;;  %v859_v56 = vld [vmem:[#allocation4 + $0xef0] sm:$0xff] }
  0x57   : > { %1120 = vmatmul.f32.gmra.mxu3 %v4174_v9  ;;  %329 = vst [vmem:[#allocation2 + $0x58] sm:$0xff] %v4272_v8  ;;  %1152 = vmatpush.msrb.mxu0 %v454_v7  ;;  %v706_v55 = vld [vmem:[#allocation4 + $0xa28] sm:$0xff]  ;;  %v409_v59 = vld [vmem:[#allocation4 + $0xe0] sm:$0xff]  ;;  %v571_v61 = vld [vmem:[#allocation4 + $0x5f0] sm:$0xff] }
  0x58   : > { %1026 = vmatmul.f32.gmra.mxu1 %v4178_v10  ;;  %331 = vst [vmem:[#allocation2 + $0x30] sm:$0xff] %v4278_v17  ;;  %1291 = vmatpush.msrb.mxu3 %v904_v4  ;;  %v697_v62 = vld [vmem:[#allocation4 + $0x9e0] sm:$0xff]  ;;  %v850_v4 = vld [vmem:[#allocation4 + $0xea8] sm:$0xff]  ;;  %v400_v7 = vld [vmem:[#allocation4 + $0x98] sm:$0xff] }
  0x59   : > { %333 = vst [vmem:[#allocation2 + $0x28] sm:$0xf] %v3574_v18  ;;  %1197 = vmatpush.msrb.mxu1 %v616_v15  ;;  %1246 = vmatpush.msrb.mxu2 %v742_v19  ;;  %v562_v15 = vld [vmem:[#allocation4 + $0x5a8] sm:$0xff]  ;;  %v688_v18 = vld [vmem:[#allocation4 + $0x998] sm:$0xff]  ;;  %v841_v19 = vld [vmem:[#allocation4 + $0xe60] sm:$0xff] }
  0x5a   : > { %332 = vst [vmem:[#allocation2 + $0x40] sm:$0xff] %v4286_v27  ;;  %1292 = vmatpush.msrb.mxu3 %v895_v20  ;;  %1153 = vmatpush.msrb.mxu0 %v445_v23  ;;  %v391_v20 = vld [vmem:[#allocation4 + $0x50] sm:$0xff] }
  0x5b   : > { %335 = vst [vmem:[#allocation2 + $0xb8] sm:$0xf] %v3576_v21  ;;  %1198 = vmatpush.msrb.mxu1 %v607_v24  ;;  %1247 = vmatpush.msrb.mxu2 %v733_v28  ;;  %v553_v21 = vld [vmem:[#allocation4 + $0x560] sm:$0xff]  ;;  %v679_v23 = vld [vmem:[#allocation4 + $0x950] sm:$0xff]  ;;  %v832_v24 = vld [vmem:[#allocation4 + $0xe18] sm:$0xff] }
  0x5c   : > { %982 = vmatmul.f32.gmra.mxu0 %v4184_v12  ;;  %330 = vst [vmem:[#allocation2 + $0x78] sm:$0xff] %v4292_v34  ;;  %1293 = vmatpush.msrb.mxu3 %v886_v29  ;;  %v382_v28 = vld [vmem:[#allocation4 + $0x8] sm:$0xff]  ;;  %v544_v29 = vld [vmem:[#allocation4 + $0x518] sm:$0xff] }
  0x5d   : > { %1076 = vmatmul.f32.gmra.mxu2 %v4188_v13  ;;  %336 = vst [vmem:[#allocation2 + $0x60] sm:$0xf] %v3577_v32  ;;  %1154 = vmatpush.msrb.mxu0 %v436_v33  ;;  %v670_v32 = vld [vmem:[#allocation4 + $0x908] sm:$0xff]  ;;  %v823_v33 = vld [vmem:[#allocation4 + $0xdd0] sm:$0xff] }
  0x5e   : > { %334 = vst [vmem:[#allocation2] sm:$0xf] %v3575_v36  ;;  %1199 = vmatpush.msrb.mxu1 %v598_v37  ;;  %1248 = vmatpush.msrb.mxu2 %v724_v39  ;;  %v535_v36 = vld [vmem:[#allocation4 + $0x4d0] sm:$0xff]  ;;  %v814_v37 = vld [vmem:[#allocation4 + $0xd88] sm:$0xff] }
  0x5f   : > { %1123 = vmatmul.f32.gmra.mxu3 %v4193_v14  ;;  %1155 = vmatpush.msrb.mxu0 %v427_v43  ;;  %v526_v39 = vld [vmem:[#allocation4 + $0x488] sm:$0xff] }
  0x60   : > { %1029 = vmatmul.f32.gmra.mxu1 %v4198_v16  ;;  %1294 = vmatpush.msrb.mxu3 %v877_v40  ;;  %v4313_v40 = vld [vmem:[#allocation2 + $0x28] sm:$0xff] }
  0x61   : > { %1200 = vmatpush.msrb.mxu1 %v589_v44  ;;  %1249 = vmatpush.msrb.mxu2 %v715_v46 }
  0x62   : > { %1295 = vmatpush.msrb.mxu3 %v868_v49  ;;  %1156 = vmatpush.msrb.mxu0 %v418_v52  ;;  %v4315_v43 = vld [vmem:[#allocation2 + $0xb8] sm:$0xff]  ;;  %v806_v49 = vld [vmem:[#allocation4 + $0xd48] sm:$0xff] }
  0x63   : > { %1201 = vmatpush.msrb.mxu1 %v580_v53  ;;  %1250 = vmatpush.msrb.mxu2 %v706_v55  ;;  %v518_v52 = vld [vmem:[#allocation4 + $0x448] sm:$0xff]  ;;  %v509_v55 = vld [vmem:[#allocation4 + $0x400] sm:$0xff] }
  0x64   : > { %985 = vmatmul.f32.gmra.mxu0 %v4265_v0  ;;  %1296 = vmatpush.msrb.mxu3 %v859_v56  ;;  %v4317_v44 = vld [vmem:[#allocation2 + $0x60] sm:$0xff]  ;;  %v950_v53 = vld [vmem:[#allocation4 + $0x11c8] sm:$0xff] }
  0x65   : > { %1079 = vmatmul.f32.gmra.mxu2 %v4267_v1  ;;  %1157 = vmatpush.msrb.mxu0 %v409_v59  ;;  %v4321_v46 = vld [vmem:[#allocation2] sm:$0xff]  ;;  %v662_v59 = vld [vmem:[#allocation4 + $0x8c8] sm:$0xff] }
  0x66   : > { %1202 = vmatpush.msrb.mxu1 %v571_v61  ;;  %1251 = vmatpush.msrb.mxu2 %v697_v62  ;;  %v797_v56 = vld [vmem:[#allocation4 + $0xd00] sm:$0xff]  ;;  %v500_v61 = vld [vmem:[#allocation4 + $0x3b8] sm:$0xff] }
  0x67   : > { %1126 = vmatmul.f32.gmra.mxu3 %v4269_v3  ;;  %1158 = vmatpush.msrb.mxu0 %v400_v7  ;;  %v788_v62 = vld [vmem:[#allocation4 + $0xcb8] sm:$0xff]  ;;  %v491_v7 = vld [vmem:[#allocation4 + $0x370] sm:$0xff] }
  0x68   : > { %1032 = vmatmul.f32.gmra.mxu1 %v4274_v11  ;;  %1297 = vmatpush.msrb.mxu3 %v850_v4  ;;  %v941_v4 = vld [vmem:[#allocation4 + $0x1180] sm:$0xff] }
  0x69   : > { %1203 = vmatpush.msrb.mxu1 %v562_v15  ;;  %1252 = vmatpush.msrb.mxu2 %v688_v18  ;;  %v653_v15 = vld [vmem:[#allocation4 + $0x880] sm:$0xff]  ;;  %v779_v18 = vld [vmem:[#allocation4 + $0xc70] sm:$0xff] }
  0x6a   : > { %1298 = vmatpush.msrb.mxu3 %v841_v19  ;;  %1159 = vmatpush.msrb.mxu0 %v391_v20  ;;  %v932_v19 = vld [vmem:[#allocation4 + $0x1138] sm:$0xff]  ;;  %v482_v20 = vld [vmem:[#allocation4 + $0x328] sm:$0xff] }
  0x6b   : > { %1204 = vmatpush.msrb.mxu1 %v553_v21  ;;  %1253 = vmatpush.msrb.mxu2 %v679_v23  ;;  %v644_v21 = vld [vmem:[#allocation4 + $0x838] sm:$0xff]  ;;  %v770_v23 = vld [vmem:[#allocation4 + $0xc28] sm:$0xff] }
  0x6c   : > { %988 = vmatmul.f32.gmra.mxu0 %v4212_v22  ;;  %1299 = vmatpush.msrb.mxu3 %v832_v24  ;;  %v923_v24 = vld [vmem:[#allocation4 + $0x10f0] sm:$0xff] }
  0x6d   : > { %1082 = vmatmul.f32.gmra.mxu2 %v4216_v25  ;;  %1160 = vmatpush.msrb.mxu0 %v382_v28  ;;  %v473_v28 = vld [vmem:[#allocation4 + $0x2e0] sm:$0xff] }
  0x6e   : > { %1205 = vmatpush.msrb.mxu1 %v544_v29  ;;  %1254 = vmatpush.msrb.mxu2 %v670_v32  ;;  %v635_v29 = vld [vmem:[#allocation4 + $0x7f0] sm:$0xff]  ;;  %v761_v32 = vld [vmem:[#allocation4 + $0xbe0] sm:$0xff] }
  0x6f   : > { %1129 = vmatmul.f32.gmra.mxu3 %v4219_v26  ;;  %1333 = vmatpush.msra.mxu0 %v518_v52  ;;  %v455_v52 = vld [vmem:[#allocation4 + $0x250] sm:$0xff] }
  0x70   : > { %1035 = vmatmul.f32.gmra.mxu1 %v4225_v30  ;;  %1300 = vmatpush.msrb.mxu3 %v823_v33  ;;  %v914_v33 = vld [vmem:[#allocation4 + $0x10a8] sm:$0xff] }
  0x71   : > { %1206 = vmatpush.msrb.mxu1 %v535_v36  ;;  %1427 = vmatpush.msra.mxu2 %v806_v49  ;;  %v464_v36 = vld [vmem:[#allocation4 + $0x298] sm:$0xff]  ;;  %v905_v49 = vld [vmem:[#allocation4 + $0x1060] sm:$0xff] }
  0x72   : > { %1301 = vmatpush.msrb.mxu3 %v814_v37  ;;  %1334 = vmatpush.msra.mxu0 %v509_v55  ;;  %v626_v37 = vld [vmem:[#allocation4 + $0x7a8] sm:$0xff]  ;;  %v743_v55 = vld [vmem:[#allocation4 + $0xb50] sm:$0xff] }
  0x73   : > { %1207 = vmatpush.msrb.mxu1 %v526_v39  ;;  %1428 = vmatpush.msra.mxu2 %v797_v56  ;;  %v752_v39 = vld [vmem:[#allocation4 + $0xb98] sm:$0xff] }
  0x74   : > { %991 = vmatmul.f32.gmra.mxu0 %v4228_v31  ;;  %1474 = vmatpush.msra.mxu3 %v950_v53  ;;  %v617_v53 = vld [vmem:[#allocation4 + $0x760] sm:$0xff]  ;;  %v896_v56 = vld [vmem:[#allocation4 + $0x1018] sm:$0xff] }
  0x75   : > { %1085 = vmatmul.f32.gmra.mxu2 %v4234_v35  ;;  %1380 = vmatpush.msra.mxu1 %v662_v59  ;;  %v446_v59 = vld [vmem:[#allocation4 + $0x208] sm:$0xff] }
  0x76   : > { %1335 = vmatpush.msra.mxu0 %v500_v61  ;;  %1429 = vmatpush.msra.mxu2 %v788_v62  ;;  %v608_v61 = vld [vmem:[#allocation4 + $0x718] sm:$0xff]  ;;  %v734_v62 = vld [vmem:[#allocation4 + $0xb08] sm:$0xff] }
  0x77   : > { %1132 = vmatmul.f32.gmra.mxu3 %v4238_v38  ;;  %1381 = vmatpush.msra.mxu1 %v653_v15  ;;  %v599_v15 = vld [vmem:[#allocation4 + $0x6d0] sm:$0xff] }
  0x78   : > { %1038 = vmatmul.f32.gmra.mxu1 %v4242_v41  ;;  %1475 = vmatpush.msra.mxu3 %v941_v4  ;;  %v887_v4 = vld [vmem:[#allocation4 + $0xfd0] sm:$0xff] }
  0x79   : > { %1336 = vmatpush.msra.mxu0 %v491_v7  ;;  %1430 = vmatpush.msra.mxu2 %v779_v18  ;;  %v437_v7 = vld [vmem:[#allocation4 + $0x1c0] sm:$0xff] }
  0x7a   : > { %1476 = vmatpush.msra.mxu3 %v932_v19  ;;  %1382 = vmatpush.msra.mxu1 %v644_v21  ;;  %v725_v18 = vld [vmem:[#allocation4 + $0xac0] sm:$0xff]  ;;  %v878_v19 = vld [vmem:[#allocation4 + $0xf88] sm:$0xff] }
  0x7b   : > { %1337 = vmatpush.msra.mxu0 %v482_v20  ;;  %1431 = vmatpush.msra.mxu2 %v770_v23  ;;  %v428_v20 = vld [vmem:[#allocation4 + $0x178] sm:$0xff]  ;;  %v590_v21 = vld [vmem:[#allocation4 + $0x688] sm:$0xff] }
  0x7c   : > { %994 = vmatmul.f32.gmra.mxu0 %v4245_v42  ;;  %1477 = vmatpush.msra.mxu3 %v923_v24  ;;  %v716_v23 = vld [vmem:[#allocation4 + $0xa78] sm:$0xff]  ;;  %v869_v24 = vld [vmem:[#allocation4 + $0xf40] sm:$0xff] }
  0x7d   : > { %1088 = vmatmul.f32.gmra.mxu2 %v4252_v47  ;;  %1338 = vmatpush.msra.mxu0 %v473_v28  ;;  %v419_v28 = vld [vmem:[#allocation4 + $0x130] sm:$0xff] }
  0x7e   : > { %1383 = vmatpush.msra.mxu1 %v635_v29  ;;  %1432 = vmatpush.msra.mxu2 %v761_v32  ;;  %v581_v29 = vld [vmem:[#allocation4 + $0x640] sm:$0xff]  ;;  %v707_v32 = vld [vmem:[#allocation4 + $0xa30] sm:$0xff] }
  0x7f   : > { %1135 = vmatmul.f32.gmra.mxu3 %v4255_v50  ;;  %1339 = vmatpush.msra.mxu0 %v464_v36  ;;  %v572_v36 = vld [vmem:[#allocation4 + $0x5f8] sm:$0xff] }
  0x80   : > { %1041 = vmatmul.f32.gmra.mxu1 %v4261_v58  ;;  %1478 = vmatpush.msra.mxu3 %v914_v33  ;;  %v860_v33 = vld [vmem:[#allocation4 + $0xef8] sm:$0xff] }
  0x81   : > { %1384 = vmatpush.msra.mxu1 %v626_v37  ;;  %1433 = vmatpush.msra.mxu2 %v752_v39  ;;  %v698_v37 = vld [vmem:[#allocation4 + $0x9e8] sm:$0xff]  ;;  %v851_v39 = vld [vmem:[#allocation4 + $0xeb0] sm:$0xff] }
  0x82   : > { %1479 = vmatpush.msra.mxu3 %v905_v49  ;;  %1340 = vmatpush.msra.mxu0 %v455_v52  ;;  %v563_v49 = vld [vmem:[#allocation4 + $0x5b0] sm:$0xff]  ;;  %v689_v52 = vld [vmem:[#allocation4 + $0x9a0] sm:$0xff] }
  0x83   : > { %1385 = vmatpush.msra.mxu1 %v617_v53  ;;  %1434 = vmatpush.msra.mxu2 %v743_v55  ;;  %v842_v53 = vld [vmem:[#allocation4 + $0xe68] sm:$0xff] }
  0x84   : > { %997 = vmatmul.f32.gmra.mxu0 %v4272_v8  ;;  %1480 = vmatpush.msra.mxu3 %v896_v56  ;;  %v392_v56 = vld [vmem:[#allocation4 + $0x58] sm:$0xff] }
  0x85   : > { %1091 = vmatmul.f32.gmra.mxu2 %v4278_v17  ;;  %1341 = vmatpush.msra.mxu0 %v446_v59  ;;  %v554_v59 = vld [vmem:[#allocation4 + $0x568] sm:$0xff] }
  0x86   : > { %1386 = vmatpush.msra.mxu1 %v608_v61  ;;  %1435 = vmatpush.msra.mxu2 %v734_v62  ;;  %v680_v62 = vld [vmem:[#allocation4 + $0x958] sm:$0xff] }
  0x87   : > { %1138 = vmatmul.f32.gmra.mxu3 %v4286_v27  ;;  %1342 = vmatpush.msra.mxu0 %v437_v7  ;;  %v545_v7 = vld [vmem:[#allocation4 + $0x520] sm:$0xff] }
  0x88   : > { %1044 = vmatmul.f32.gmra.mxu1 %v4292_v34  ;;  %1481 = vmatpush.msra.mxu3 %v887_v4  ;;  %v833_v4 = vld [vmem:[#allocation4 + $0xe20] sm:$0xff] }
  0x89   : > { %1387 = vmatpush.msra.mxu1 %v599_v15  ;;  %1436 = vmatpush.msra.mxu2 %v725_v18 }
  0x8a   : > { %1482 = vmatpush.msra.mxu3 %v878_v19  ;;  %1343 = vmatpush.msra.mxu0 %v428_v20  ;;  %v824_v20 = vld [vmem:[#allocation4 + $0xdd8] sm:$0xff] }
  0x8b   : > { %1388 = vmatpush.msra.mxu1 %v590_v21  ;;  %1437 = vmatpush.msra.mxu2 %v716_v23  ;;  %v536_v21 = vld [vmem:[#allocation4 + $0x4d8] sm:$0xff] }
  0x8c   : > { %1000 = vmatmul.f32.gmra.mxu0 %v4313_v40  ;;  %1483 = vmatpush.msra.mxu3 %v869_v24 }
  0x8d   : > { %1094 = vmatmul.f32.gmra.mxu2 %v4315_v43  ;;  %1344 = vmatpush.msra.mxu0 %v419_v28  ;;  %v527_v28 = vld [vmem:[#allocation4 + $0x490] sm:$0xff] }
  0x8e   : > { %1389 = vmatpush.msra.mxu1 %v581_v29  ;;  %1438 = vmatpush.msra.mxu2 %v707_v32 }
  0x8f   : > { %1141 = vmatmul.f32.gmra.mxu3 %v4317_v44 }
  0x90   : > { %1047 = vmatmul.f32.gmra.mxu1 %v4321_v46  ;;  %1484 = vmatpush.msra.mxu3 %v860_v33 }
  0x91   : > { %1390 = vmatpush.msra.mxu1 %v572_v36  ;;  %1439 = vmatpush.msra.mxu2 %v698_v37 }
  0x92   : > { %1485 = vmatpush.msra.mxu3 %v851_v39 }
  0x93   : > { %1391 = vmatpush.msra.mxu1 %v563_v49  ;;  %1440 = vmatpush.msra.mxu2 %v689_v52 }
  0x94   : > { %1161 = vmatmul.f32.vlgmr.msrb.gmra.mxu0 %v4134_v45  ;;  %1486 = vmatpush.msra.mxu3 %v842_v53 }
  0x95   : > { %1255 = vmatmul.f32.vlgmr.msrb.gmra.mxu2 %v4138_v48  ;;  %1392 = vmatpush.msra.mxu1 %v554_v59 }
  0x96   : > { %1441 = vmatpush.msra.mxu2 %v680_v62  ;;  %1487 = vmatpush.msra.mxu3 %v833_v4 }
  0x97   : > { %1302 = vmatmul.f32.vlgmr.msrb.gmra.mxu3 %v4142_v51  ;;  %1393 = vmatpush.msra.mxu1 %v545_v7 }
  0x98   : > { %1208 = vmatmul.f32.vlgmr.msrb.gmra.mxu1 %v4146_v54  ;;  %1488 = vmatpush.msra.mxu3 %v824_v20  ;;  %v798_v20 = vld [vmem:[#allocation4 + $0xd08] sm:$0xff] }
  0x99   : > { %1394 = vmatpush.msra.mxu1 %v536_v21 }
  0x9b   : > { %1395 = vmatpush.msra.mxu1 %v527_v28  ;;  %v942_v28 = vld [vmem:[#allocation4 + $0x1188] sm:$0xff] }
  0x9c   : > { %1164 = vmatmul.f32.gmra.mxu0 %v4150_v57 }
  0x9d   : > { %1258 = vmatmul.f32.gmra.mxu2 %v4154_v60 }
  0x9f   : > { %1305 = vmatmul.f32.gmra.mxu3 %v4158_v63 }
  0xa0   : > { %1211 = vmatmul.f32.gmra.mxu1 %v4162_v2 }
  0xa4   : > { %1167 = vmatmul.f32.gmra.mxu0 %v4166_v5 }
  0xa5   : > { %1261 = vmatmul.f32.gmra.mxu2 %v4170_v6 }
  0xa7   : > { %1308 = vmatmul.f32.gmra.mxu3 %v4174_v9 }
  0xa8   : > { %1214 = vmatmul.f32.gmra.mxu1 %v4178_v10 }
  0xac   : > { %1170 = vmatmul.f32.gmra.mxu0 %v4184_v12 }
  0xad   : > { %1264 = vmatmul.f32.gmra.mxu2 %v4188_v13 }
  0xaf   : > { %1311 = vmatmul.f32.gmra.mxu3 %v4193_v14 }
  0xb0   : > { %1217 = vmatmul.f32.gmra.mxu1 %v4198_v16 }
  0xb4   : > { %1173 = vmatmul.f32.gmra.mxu0 %v4265_v0 }
  0xb5   : > { %1267 = vmatmul.f32.gmra.mxu2 %v4267_v1 }
  0xb7   : > { %1314 = vmatmul.f32.gmra.mxu3 %v4269_v3 }
  0xb8   : > { %1220 = vmatmul.f32.gmra.mxu1 %v4274_v11 }
  0xbc   : > { %1176 = vmatmul.f32.gmra.mxu0 %v4212_v22  ;;  %v410_v22 = vld [vmem:[#allocation4 + $0xe8] sm:$0xff] }
  0xbd   : > { %1270 = vmatmul.f32.gmra.mxu2 %v4216_v25  ;;  %1345 = vmatpush.msra.mxu0 %v410_v22 }
  0xbf   : > { %1317 = vmatmul.f32.gmra.mxu3 %v4219_v26  ;;  %v401_v26 = vld [vmem:[#allocation4 + $0xa0] sm:$0xff] }
  0xc0   : > { %1223 = vmatmul.f32.gmra.mxu1 %v4225_v30  ;;  %1346 = vmatpush.msra.mxu0 %v401_v26 }
  0xc1   : > { %v974_v25 = vpop.f32.mrf.mxu0 }
  0xc2   : > { %1347 = vmatpush.msra.mxu0 %v392_v56 }
  0xc4   : > { %1179 = vmatmul.f32.gmra.mxu0 %v4228_v31 }
  0xc5   : > { %1273 = vmatmul.f32.gmra.mxu2 %v4234_v35  ;;  %v1021_v30 = vpop.f32.mrf.mxu1  ;;  %v383_v35 = vld [vmem:[#allocation4 + $0x10] sm:$0xff] }
  0xc6   : > { %v1022_v55 = vadd.f32 %v1021_v30, %v974_v25  ;;  %1348 = vmatpush.msra.mxu0 %v383_v35 }
  0xc7   : > { %1320 = vmatmul.f32.gmra.mxu3 %v4238_v38  ;;  %v671_v38 = vld [vmem:[#allocation4 + $0x910] sm:$0xff] }
  0xc8   : > { %v1068_v61 = vpop.f32.mrf.mxu2  ;;  %1226 = vmatmul.f32.gmra.mxu1 %v4242_v41  ;;  %v815_v41 = vld [vmem:[#allocation4 + $0xd90] sm:$0xff]  ;;  %1442 = vmatpush.msra.mxu2 %v671_v38  ;;  %v510_v38 = vld [vmem:[#allocation4 + $0x408] sm:$0xff] }
  0xc9   : > { %v1069_v31 = vadd.f32 %v1068_v61, %v1022_v55  ;;  %v977_v18 = vpop.f32.mrf.mxu0  ;;  %1489 = vmatpush.msra.mxu3 %v815_v41  ;;  %v663_v41 = vld [vmem:[#allocation4 + $0x8d0] sm:$0xff] }
  0xca   : > { %v1115_v15 = vpop.f32.mrf.mxu3  ;;  %1568 = vmatpush.msrb.mxu1 %v663_v41  ;;  %v717_v41 = vld [vmem:[#allocation4 + $0xa80] sm:$0xff] }
  0xcb   : > { %v4353_v19 = vadd.f32 %v1115_v15, %v1069_v31 }
  0xcc   : > { %1182 = vmatmul.f32.gmra.mxu0 %v4245_v42 }
  0xcd   : > { %5672 = vst [vmem:[#allocation14_spill] sm:$0xff] %v4353_v19  ;;  %1276 = vmatmul.f32.gmra.mxu2 %v4252_v47  ;;  %v1024_v23 = vpop.f32.mrf.mxu1 }
  0xce   : > { %v1025_v24 = vadd.f32 %v1024_v23, %v977_v18  ;;  %v789_v23 = vld [vmem:[#allocation4 + $0xcc0] sm:$0xff] }
  0xcf   : > { %1323 = vmatmul.f32.gmra.mxu3 %v4255_v50 }
  0xd0   : > { %v1071_v29 = vpop.f32.mrf.mxu2  ;;  %1229 = vmatmul.f32.gmra.mxu1 %v4261_v58 }
  0xd1   : > { %v1072_v32 = vadd.f32 %v1071_v29, %v1025_v24  ;;  %v980_v22 = vpop.f32.mrf.mxu0 }
  0xd2   : > { %v1118_v33 = vpop.f32.mrf.mxu3 }
  0xd3   : > { %v4359_v42 = vadd.f32 %v1118_v33, %v1072_v32  ;;  %v654_v32 = vld [vmem:[#allocation4 + $0x888] sm:$0xff]  ;;  %v780_v33 = vld [vmem:[#allocation4 + $0xc78] sm:$0xff] }
  0xd4   : > { %1185 = vmatmul.f32.gmra.mxu0 %v4272_v8  ;;  %1569 = vmatpush.msrb.mxu1 %v654_v32 }
  0xd5   : > { %5673 = vst [vmem:[#allocation15_spill] sm:$0xff] %v4359_v42  ;;  %1279 = vmatmul.f32.gmra.mxu2 %v4278_v17  ;;  %v1027_v47 = vpop.f32.mrf.mxu1  ;;  %v809_v42 = vld [vmem:[#allocation4 + $0xd60] sm:$0xff] }
  0xd6   : > { %v1028_v36 = vadd.f32 %v1027_v47, %v980_v22  ;;  %v933_v22 = vld [vmem:[#allocation4 + $0x1140] sm:$0xff] }
  0xd7   : > { %1326 = vmatmul.f32.gmra.mxu3 %v4286_v27  ;;  %v645_v47 = vld [vmem:[#allocation4 + $0x840] sm:$0xff] }
  0xd8   : > { %v1074_v50 = vpop.f32.mrf.mxu2  ;;  %1232 = vmatmul.f32.gmra.mxu1 %v4292_v34 }
  0xd9   : > { %v1075_v25 = vadd.f32 %v1074_v50, %v1028_v36  ;;  %v983_v39 = vpop.f32.mrf.mxu0  ;;  %v771_v36 = vld [vmem:[#allocation4 + $0xc30] sm:$0xff]  ;;  %1570 = vmatpush.msrb.mxu1 %v645_v47 }
  0xda   : > { %v1121_v37 = vpop.f32.mrf.mxu3  ;;  %v4412_v47 = vld [vmem:[#allocation2 + $0x90] sm:$0xff] }
  0xdb   : > { %v4365_v58 = vadd.f32 %v1121_v37, %v1075_v25  ;;  %v924_v25 = vld [vmem:[#allocation4 + $0x10f8] sm:$0xff] }
  0xdc   : > { %1188 = vmatmul.f32.gmra.mxu0 %v4313_v40 }
  0xdd   : > { %5674 = vst [vmem:[#allocation16_spill] sm:$0xff] %v4365_v58  ;;  %1282 = vmatmul.f32.gmra.mxu2 %v4315_v43  ;;  %v1030_v26 = vpop.f32.mrf.mxu1 }
  0xde   : > { %v1031_v8 = vadd.f32 %v1030_v26, %v983_v39  ;;  %v474_v39 = vld [vmem:[#allocation4 + $0x2e8] sm:$0xff]  ;;  %v636_v26 = vld [vmem:[#allocation4 + $0x7f8] sm:$0xff] }
  0xdf   : > { %1329 = vmatmul.f32.gmra.mxu3 %v4317_v44  ;;  %1571 = vmatpush.msrb.mxu1 %v636_v26  ;;  %v699_v26 = vld [vmem:[#allocation4 + $0x9f0] sm:$0xff] }
  0xe0   : > { %v1077_v17 = vpop.f32.mrf.mxu2  ;;  %1235 = vmatmul.f32.gmra.mxu1 %v4321_v46 }
  0xe1   : > { %v1078_v49 = vadd.f32 %v1077_v17, %v1031_v8  ;;  %v986_v52 = vpop.f32.mrf.mxu0  ;;  %v762_v17 = vld [vmem:[#allocation4 + $0xbe8] sm:$0xff] }
  0xe2   : > { %v1124_v27 = vpop.f32.mrf.mxu3 }
  0xe3   : > { %v4371_v30 = vadd.f32 %v1124_v27, %v1078_v49  ;;  %v627_v27 = vld [vmem:[#allocation4 + $0x7b0] sm:$0xff] }
  0xe4   : > { %1349 = vmatmul.f32.vlgmr.msra.gmra.mxu0 %v4134_v45  ;;  %1572 = vmatpush.msrb.mxu1 %v627_v27  ;;  %v690_v27 = vld [vmem:[#allocation4 + $0x9a8] sm:$0xff] }
  0xe5   : > { %5675 = vst [vmem:[#allocation17_spill] sm:$0xff] %v4371_v30  ;;  %1443 = vmatmul.f32.vlgmr.msra.gmra.mxu2 %v4138_v48  ;;  %v1033_v53 = vpop.f32.mrf.mxu1 }
  0xe6   : > { %v1034_v55 = vadd.f32 %v1033_v53, %v986_v52 }
  0xe7   : > { %1490 = vmatmul.f32.vlgmr.msra.gmra.mxu3 %v4142_v51 }
  0xe8   : > { %v1080_v56 = vpop.f32.mrf.mxu2  ;;  %1396 = vmatmul.f32.vlgmr.msra.gmra.mxu1 %v4146_v54  ;;  %v807_v54 = vld [vmem:[#allocation4 + $0xd50] sm:$0xff] }
  0xe9   : > { %v1081_v59 = vadd.f32 %v1080_v56, %v1034_v55  ;;  %v989_v62 = vpop.f32.mrf.mxu0  ;;  %1615 = vmatpush.msrb.mxu2 %v807_v54  ;;  %v906_v56 = vld [vmem:[#allocation4 + $0x1068] sm:$0xff]  ;;  %v888_v54 = vld [vmem:[#allocation4 + $0xfd8] sm:$0xff] }
  0xea   : > { %v1127_v61 = vpop.f32.mrf.mxu3 }
  0xeb   : > { %v4377_v4 = vadd.f32 %v1127_v61, %v1081_v59  ;;  %1616 = vmatpush.msrb.mxu2 %v798_v20  ;;  %v456_v59 = vld [vmem:[#allocation4 + $0x258] sm:$0xff]  ;;  %v429_v20 = vld [vmem:[#allocation4 + $0x180] sm:$0xff] }
  0xec   : > { %1352 = vmatmul.f32.gmra.mxu0 %v4150_v57  ;;  %v519_v57 = vld [vmem:[#allocation4 + $0x450] sm:$0xff]  ;;  %v744_v61 = vld [vmem:[#allocation4 + $0xb58] sm:$0xff] }
  0xed   : > { %5676 = vst [vmem:[#allocation18_spill] sm:$0xff] %v4377_v4  ;;  %1446 = vmatmul.f32.gmra.mxu2 %v4154_v60  ;;  %v1036_v31 = vpop.f32.mrf.mxu1  ;;  %1521 = vmatpush.msrb.mxu0 %v519_v57  ;;  %v600_v57 = vld [vmem:[#allocation4 + $0x6d8] sm:$0xff] }
  0xee   : > { %v1037_v45 = vadd.f32 %v1036_v31, %v989_v62  ;;  %1617 = vmatpush.msrb.mxu2 %v789_v23  ;;  %v897_v31 = vld [vmem:[#allocation4 + $0x1020] sm:$0xff]  ;;  %v870_v23 = vld [vmem:[#allocation4 + $0xf48] sm:$0xff] }
  0xef   : > { %1493 = vmatmul.f32.gmra.mxu3 %v4158_v63  ;;  %v951_v63 = vld [vmem:[#allocation4 + $0x11d0] sm:$0xff]  ;;  %1522 = vmatpush.msrb.mxu0 %v510_v38 }
  0xf0   : > { %v1083_v48 = vpop.f32.mrf.mxu2  ;;  %1399 = vmatmul.f32.gmra.mxu1 %v4162_v2  ;;  %1662 = vmatpush.msrb.mxu3 %v951_v63  ;;  %v879_v38 = vld [vmem:[#allocation4 + $0xf90] sm:$0xff] }
  0xf1   : > { %v1084_v35 = vadd.f32 %v1083_v48, %v1037_v45  ;;  %v992_v7 = vpop.f32.mrf.mxu0  ;;  %1618 = vmatpush.msrb.mxu2 %v780_v33  ;;  %v447_v48 = vld [vmem:[#allocation4 + $0x210] sm:$0xff]  ;;  %v708_v33 = vld [vmem:[#allocation4 + $0xa38] sm:$0xff] }
  0xf2   : > { %v1130_v51 = vpop.f32.mrf.mxu3  ;;  %1663 = vmatpush.msrb.mxu3 %v942_v28  ;;  %v420_v28 = vld [vmem:[#allocation4 + $0x138] sm:$0xff] }
  0xf3   : > { %v4383_v15 = vadd.f32 %v1130_v51, %v1084_v35  ;;  %1619 = vmatpush.msrb.mxu2 %v771_v36  ;;  %v609_v35 = vld [vmem:[#allocation4 + $0x720] sm:$0xff]  ;;  %v411_v36 = vld [vmem:[#allocation4 + $0xf0] sm:$0xff] }
  0xf4   : > { %1355 = vmatmul.f32.gmra.mxu0 %v4166_v5  ;;  %v501_v5 = vld [vmem:[#allocation4 + $0x3c0] sm:$0xff]  ;;  %1664 = vmatpush.msrb.mxu3 %v933_v22 }
  0xf5   : > { %5677 = vst [vmem:[#allocation19_spill] sm:$0xff] %v4383_v15  ;;  %1449 = vmatmul.f32.gmra.mxu2 %v4170_v6  ;;  %v1039_v60 = vpop.f32.mrf.mxu1  ;;  %1523 = vmatpush.msrb.mxu0 %v501_v5  ;;  %v861_v22 = vld [vmem:[#allocation4 + $0xf00] sm:$0xff]  ;;  %v736_v15 = vld [vmem:[#allocation4 + $0xb18] sm:$0xff] }
  0xf6   : > { %v1040_v18 = vadd.f32 %v1039_v60, %v992_v7  ;;  %1665 = vmatpush.msrb.mxu3 %v924_v25  ;;  %1620 = vmatpush.msrb.mxu2 %v762_v17  ;;  %v735_v7 = vld [vmem:[#allocation4 + $0xb10] sm:$0xff]  ;;  %v402_v17 = vld [vmem:[#allocation4 + $0xa8] sm:$0xff] }
  0xf7   : > { %1496 = vmatmul.f32.gmra.mxu3 %v4174_v9  ;;  %v492_v9 = vld [vmem:[#allocation4 + $0x378] sm:$0xff] }
  0xf8   : > { %v1086_v2 = vpop.f32.mrf.mxu2  ;;  %1402 = vmatmul.f32.gmra.mxu1 %v4178_v10  ;;  %1524 = vmatpush.msrb.mxu0 %v492_v9  ;;  %v483_v10 = vld [vmem:[#allocation4 + $0x330] sm:$0xff]  ;;  %v582_v9 = vld [vmem:[#allocation4 + $0x648] sm:$0xff] }
  0xf9   : > { %v1087_v21 = vadd.f32 %v1086_v2, %v1040_v18  ;;  %v995_v24 = vpop.f32.mrf.mxu0  ;;  %v4403_v2 = vld [vmem:[#allocation2 + $0xa8] sm:$0xff] }
  0xfa   : > { %v1133_v6 = vpop.f32.mrf.mxu3  ;;  %1525 = vmatpush.msrb.mxu0 %v483_v10 }
  0xfb   : > { %v4389_v29 = vadd.f32 %v1133_v6, %v1087_v21  ;;  %v591_v21 = vld [vmem:[#allocation4 + $0x690] sm:$0xff] }
  0xfc   : > { %1358 = vmatmul.f32.gmra.mxu0 %v4184_v12  ;;  %v915_v12 = vld [vmem:[#allocation4 + $0x10b0] sm:$0xff] }
  0xfd   : > { %5678 = vst [vmem:[#allocation20_spill] sm:$0xff] %v4389_v29  ;;  %1452 = vmatmul.f32.gmra.mxu2 %v4188_v13  ;;  %v1042_v50 = vpop.f32.mrf.mxu1  ;;  %v465_v13 = vld [vmem:[#allocation4 + $0x2a0] sm:$0xff]  ;;  %1526 = vmatpush.msrb.mxu0 %v474_v39 }
  0xfe   : > { %v1043_v37 = vadd.f32 %v1042_v50, %v995_v24  ;;  %1666 = vmatpush.msrb.mxu3 %v915_v12  ;;  %v4409_v24 = vld [vmem:[#allocation2 + $0x88] sm:$0xff]  ;;  %v573_v50 = vld [vmem:[#allocation4 + $0x600] sm:$0xff] }
  0xff   : > { %1499 = vmatmul.f32.gmra.mxu3 %v4193_v14  ;;  %v753_v14 = vld [vmem:[#allocation4 + $0xba0] sm:$0xff]  ;;  %1527 = vmatpush.msrb.mxu0 %v465_v13  ;;  %v564_v13 = vld [vmem:[#allocation4 + $0x5b8] sm:$0xff] }
 0x100   : > { %v1089_v8 = vpop.f32.mrf.mxu2  ;;  %1405 = vmatmul.f32.gmra.mxu1 %v4198_v16  ;;  %v618_v16 = vld [vmem:[#allocation4 + $0x768] sm:$0xff]  ;;  %1621 = vmatpush.msrb.mxu2 %v753_v14  ;;  %v4417_v12 = vld [vmem:[#allocation2 + $0xc0] sm:$0xff] }
 0x101   : > { %v1090_v49 = vadd.f32 %v1089_v8, %v1043_v37  ;;  %v998_v53 = vpop.f32.mrf.mxu0  ;;  %1667 = vmatpush.msrb.mxu3 %v906_v56  ;;  %1528 = vmatpush.msrb.mxu0 %v456_v59  ;;  %v852_v8 = vld [vmem:[#allocation4 + $0xeb8] sm:$0xff]  ;;  %v4423_v56 = vld [vmem:[#allocation2 + $0xa0] sm:$0xff] }
 0x102   : > { %v1136_v52 = vpop.f32.mrf.mxu3  ;;  %1573 = vmatpush.msrb.mxu1 %v618_v16  ;;  %1622 = vmatpush.msrb.mxu2 %v744_v61  ;;  %v393_v59 = vld [vmem:[#allocation4 + $0x60] sm:$0xff]  ;;  %v555_v16 = vld [vmem:[#allocation4 + $0x570] sm:$0xff] }
 0x103   : > { %v4395_v55 = vadd.f32 %v1136_v52, %v1090_v49  ;;  %1668 = vmatpush.msrb.mxu3 %v897_v31  ;;  %1529 = vmatpush.msrb.mxu0 %v447_v48  ;;  %v4420_v49 = vld [vmem:[#allocation2 + $0xd8] sm:$0xff]  ;;  %v834_v31 = vld [vmem:[#allocation4 + $0xe28] sm:$0xff]  ;;  %v889_v29 = vld [vmem:[#allocation4 + $0xfe0] sm:$0xff] }
 0x104   : > { %1361 = vmatmul.f32.gmra.mxu0 %v4265_v0  ;;  %1574 = vmatpush.msrb.mxu1 %v609_v35  ;;  %v4426_v48 = vld [vmem:[#allocation2 + $0x118] sm:$0xff] }
 0x105   : > { %5679 = vst [vmem:[#allocation21_spill] sm:$0xff] %v4395_v55  ;;  %1455 = vmatmul.f32.gmra.mxu2 %v4267_v1  ;;  %v1045_v62 = vpop.f32.mrf.mxu1  ;;  %v438_v1 = vld [vmem:[#allocation4 + $0x1c8] sm:$0xff]  ;;  %1669 = vmatpush.msrb.mxu3 %v888_v54  ;;  %v384_v35 = vld [vmem:[#allocation4 + $0x18] sm:$0xff] }
 0x106   : > { %v1046_v45 = vadd.f32 %v1045_v62, %v998_v53  ;;  %1623 = vmatpush.msrb.mxu2 %v735_v7  ;;  %1530 = vmatpush.msrb.mxu0 %v438_v1  ;;  %v843_v53 = vld [vmem:[#allocation4 + $0xe70] sm:$0xff]  ;;  %v681_v62 = vld [vmem:[#allocation4 + $0x960] sm:$0xff]  ;;  %v672_v1 = vld [vmem:[#allocation4 + $0x918] sm:$0xff] }
 0x107   : > { %1502 = vmatmul.f32.gmra.mxu3 %v4269_v3  ;;  %v726_v3 = vld [vmem:[#allocation4 + $0xac8] sm:$0xff]  ;;  %1575 = vmatpush.msrb.mxu1 %v600_v57  ;;  %v825_v57 = vld [vmem:[#allocation4 + $0xde0] sm:$0xff] }
 0x108   : > { %v1092_v51 = vpop.f32.mrf.mxu2  ;;  %1408 = vmatmul.f32.gmra.mxu1 %v4274_v11  ;;  %v4406_v11 = vld [vmem:[#allocation2 + $0xe0] sm:$0xff]  ;;  %1624 = vmatpush.msrb.mxu2 %v726_v3  ;;  %v4434_v3 = vld [vmem:[#allocation2 + $0x50] sm:$0xff] }
 0x109   : > { %v1093_v0 = vadd.f32 %v1092_v51, %v1046_v45  ;;  %v1001_v18 = vpop.f32.mrf.mxu0  ;;  %1670 = vmatpush.msrb.mxu3 %v879_v38  ;;  %1531 = vmatpush.msrb.mxu0 %v429_v20  ;;  %v546_v51 = vld [vmem:[#allocation4 + $0x528] sm:$0xff]  ;;  %v816_v38 = vld [vmem:[#allocation4 + $0xd98] sm:$0xff] }
 0x10a   : > { %v1139_v60 = vpop.f32.mrf.mxu3  ;;  %1576 = vmatpush.msrb.mxu1 %v591_v21  ;;  %1625 = vmatpush.msrb.mxu2 %v717_v41  ;;  %v4437_v41 = vld [vmem:[#allocation2 + $0xe8] sm:$0xff] }
 0x10b   : > { %v4401_v63 = vadd.f32 %v1139_v60, %v1093_v0  ;;  %1671 = vmatpush.msrb.mxu3 %v870_v23  ;;  %1532 = vmatpush.msrb.mxu0 %v420_v28  ;;  %v537_v60 = vld [vmem:[#allocation4 + $0x4e0] sm:$0xff]  ;;  %v4440_v28 = vld [vmem:[#allocation2 + $0x130] sm:$0xff] }
 0x10c   : > { %1364 = vmatmul.f32.gmra.mxu0 %v4403_v2  ;;  %1577 = vmatpush.msrb.mxu1 %v582_v9 }
 0x10d   : > { %5680 = vst [vmem:[#allocation22_spill] sm:$0xff] %v4401_v63  ;;  %1458 = vmatmul.f32.gmra.mxu2 %v4406_v11  ;;  %v1048_v5 = vpop.f32.mrf.mxu1  ;;  %1672 = vmatpush.msrb.mxu3 %v861_v22  ;;  %v4445_v22 = vld [vmem:[#allocation2 + $0x58] sm:$0xff]  ;;  %v4528_v63 = vld [vmem:[#allocation2 + $0x110] sm:$0xff] }
 0x10e   : > { %v1049_v6 = vadd.f32 %v1048_v5, %v1001_v18  ;;  %1626 = vmatpush.msrb.mxu2 %v708_v33  ;;  %1533 = vmatpush.msrb.mxu0 %v411_v36  ;;  %v4431_v18 = vld [vmem:[#allocation2 + $0x68] sm:$0xff]  ;;  %v528_v5 = vld [vmem:[#allocation4 + $0x498] sm:$0xff] }
 0x10f   : > { %1505 = vmatmul.f32.gmra.mxu3 %v4409_v24  ;;  %1578 = vmatpush.msrb.mxu1 %v573_v50 }
 0x110   : > { %v1095_v32 = vpop.f32.mrf.mxu2  ;;  %1411 = vmatmul.f32.gmra.mxu1 %v4412_v47  ;;  %1627 = vmatpush.msrb.mxu2 %v699_v26 }
 0x111   : > { %v1096_v10 = vadd.f32 %v1095_v32, %v1049_v6  ;;  %v1162_v37 = vpop.f32.mrf.mxu0  ;;  %1673 = vmatpush.msrb.mxu3 %v852_v8  ;;  %1534 = vmatpush.msrb.mxu0 %v402_v17 }
 0x112   : > { %v1142_v25 = vpop.f32.mrf.mxu3  ;;  %1579 = vmatpush.msrb.mxu1 %v564_v13  ;;  %1628 = vmatpush.msrb.mxu2 %v690_v27 }
 0x113   : > { %v4415_v39 = vadd.f32 %v1142_v25, %v1096_v10  ;;  %1674 = vmatpush.msrb.mxu3 %v843_v53  ;;  %1535 = vmatpush.msrb.mxu0 %v393_v59  ;;  %v4448_v10 = vld [vmem:[#allocation2 + $0x30] sm:$0xff]  ;;  %v4451_v25 = vld [vmem:[#allocation2 + $0x40] sm:$0xff] }
 0x114   : > { %1367 = vmatmul.f32.gmra.mxu0 %v4417_v12  ;;  %1580 = vmatpush.msrb.mxu1 %v555_v16 }
 0x115   : > { %5681 = vst [vmem:[#allocation23_spill] sm:$0xff] %v4415_v39  ;;  %1461 = vmatmul.f32.gmra.mxu2 %v4420_v49  ;;  %v1209_v52 = vpop.f32.mrf.mxu1  ;;  %1675 = vmatpush.msrb.mxu3 %v834_v31  ;;  %v4469_v31 = vld [vmem:[#allocation2 + $0x48] sm:$0xff] }
 0x116   : > { %v1210_v14 = vadd.f32 %v1209_v52, %v1162_v37  ;;  %1629 = vmatpush.msrb.mxu2 %v681_v62  ;;  %1536 = vmatpush.msrb.mxu0 %v384_v35  ;;  %v4466_v62 = vld [vmem:[#allocation2 + $0x10] sm:$0xff] }
 0x117   : > { %1508 = vmatmul.f32.gmra.mxu3 %v4423_v56  ;;  %1581 = vmatpush.msrb.mxu1 %v546_v51 }
 0x118   : > { %v1256_v61 = vpop.f32.mrf.mxu2  ;;  %1414 = vmatmul.f32.gmra.mxu1 %v4426_v48  ;;  %1630 = vmatpush.msrb.mxu2 %v672_v1  ;;  %v4480_v1 = vld [vmem:[#allocation2 + $0xf8] sm:$0xff] }
 0x119   : > { %v1257_v45 = vadd.f32 %v1256_v61, %v1210_v14  ;;  %v1165_v54 = vpop.f32.mrf.mxu0  ;;  %1676 = vmatpush.msrb.mxu3 %v825_v57  ;;  %1582 = vmatpush.msrb.mxu1 %v537_v60 }
 0x11a   : > { %v1303_v7 = vpop.f32.mrf.mxu3 }
 0x11b   : > { %v4429_v0 = vadd.f32 %v1303_v7, %v1257_v45  ;;  %1677 = vmatpush.msrb.mxu3 %v816_v38  ;;  %1583 = vmatpush.msrb.mxu1 %v528_v5  ;;  %v4472_v45 = vld [vmem:[#allocation2 + $0xd0] sm:$0xff]  ;;  %v4483_v38 = vld [vmem:[#allocation2 + $0x100] sm:$0xff]  ;;  %v4486_v5 = vld [vmem:[#allocation2 + $0x38] sm:$0xff] }
 0x11c   : > { %1370 = vmatmul.f32.gmra.mxu0 %v4431_v18 }
 0x11d   : > { %5682 = vst [vmem:[#allocation24_spill] sm:$0xff] %v4429_v0  ;;  %1464 = vmatmul.f32.gmra.mxu2 %v4434_v3  ;;  %v1212_v20 = vpop.f32.mrf.mxu1  ;;  %v656_v0 = vld [vmem:[#allocation4 + $0x898] sm:$0xff] }
 0x11e   : > { %v1213_v21 = vadd.f32 %v1212_v20, %v1165_v54  ;;  %v4477_v54 = vld [vmem:[#allocation2 + $0x120] sm:$0xff] }
 0x11f   : > { %1511 = vmatmul.f32.gmra.mxu3 %v4437_v41 }
 0x120   : > { %v1259_v23 = vpop.f32.mrf.mxu2  ;;  %1417 = vmatmul.f32.gmra.mxu1 %v4440_v28 }
 0x121   : > { %v1260_v6 = vadd.f32 %v1259_v23, %v1213_v21  ;;  %v1168_v32 = vpop.f32.mrf.mxu0 }
 0x122   : > { %v1306_v9 = vpop.f32.mrf.mxu3 }
 0x123   : > { %v4443_v33 = vadd.f32 %v1306_v9, %v1260_v6 }
 0x124   : > { %1373 = vmatmul.f32.gmra.mxu0 %v4445_v22 }
 0x125   : > { %5683 = vst [vmem:[#allocation25_spill] sm:$0xff] %v4443_v33  ;;  %1467 = vmatmul.f32.gmra.mxu2 %v4448_v10  ;;  %v1215_v36 = vpop.f32.mrf.mxu1  ;;  %v467_v33 = vld [vmem:[#allocation4 + $0x2b0] sm:$0xff] }
 0x126   : > { %v1216_v50 = vadd.f32 %v1215_v36, %v1168_v32  ;;  %v808_v32 = vld [vmem:[#allocation4 + $0xd58] sm:$0xff]  ;;  %v4491_v36 = vld [vmem:[#allocation2 + $0x80] sm:$0xff] }
 0x127   : > { %1514 = vmatmul.f32.gmra.mxu3 %v4451_v25  ;;  %1803 = vmatpush.msra.mxu2 %v808_v32  ;;  %v4508_v32 = vld [vmem:[#allocation2 + $0x70] sm:$0xff] }
 0x128   : > { %v1262_v37 = vpop.f32.mrf.mxu2  ;;  %1420 = vmatmul.f32.gmra.mxu1 %v4292_v34  ;;  %v4463_v34 = vld [vmem:[#allocation2 + $0xb0] sm:$0xff] }
 0x129   : > { %v1263_v26 = vadd.f32 %v1262_v37, %v1216_v50  ;;  %v1171_v17 = vpop.f32.mrf.mxu0  ;;  %v4494_v50 = vld [vmem:[#allocation2 + $0x138] sm:$0xff] }
 0x12a   : > { %v1309_v8 = vpop.f32.mrf.mxu3  ;;  %v520_v37 = vld [vmem:[#allocation4 + $0x458] sm:$0xff] }
 0x12b   : > { %v4455_v13 = vadd.f32 %v1309_v8, %v1263_v26  ;;  %1709 = vmatpush.msra.mxu0 %v520_v37  ;;  %v484_v37 = vld [vmem:[#allocation4 + $0x338] sm:$0xff] }
 0x12c   : > { %1376 = vmatmul.f32.gmra.mxu0 %v4313_v40 }
 0x12d   : > { %5684 = vst [vmem:[#allocation26_spill] sm:$0xff] %v4455_v13  ;;  %1470 = vmatmul.f32.gmra.mxu2 %v4315_v43  ;;  %v1218_v27 = vpop.f32.mrf.mxu1  ;;  %v629_v13 = vld [vmem:[#allocation4 + $0x7c0] sm:$0xff] }
 0x12e   : > { %v1219_v52 = vadd.f32 %v1218_v27, %v1171_v17  ;;  %v4497_v17 = vld [vmem:[#allocation2 + $0xf0] sm:$0xff]  ;;  %v952_v27 = vld [vmem:[#allocation4 + $0x11d8] sm:$0xff] }
 0x12f   : > { %1517 = vmatmul.f32.gmra.mxu3 %v4317_v44 }
 0x130   : > { %v1265_v53 = vpop.f32.mrf.mxu2  ;;  %1423 = vmatmul.f32.gmra.mxu1 %v4321_v46  ;;  %1850 = vmatpush.msra.mxu3 %v952_v27 }
 0x131   : > { %v1266_v14 = vadd.f32 %v1265_v53, %v1219_v52  ;;  %v1174_v16 = vpop.f32.mrf.mxu0  ;;  %v511_v52 = vld [vmem:[#allocation4 + $0x410] sm:$0xff] }
 0x132   : > { %v1312_v59 = vpop.f32.mrf.mxu3  ;;  %v799_v53 = vld [vmem:[#allocation4 + $0xd10] sm:$0xff]  ;;  %1710 = vmatpush.msra.mxu0 %v511_v52  ;;  %v925_v52 = vld [vmem:[#allocation4 + $0x1100] sm:$0xff] }
 0x133   : > { %v4461_v61 = vadd.f32 %v1312_v59, %v1266_v14  ;;  %1804 = vmatpush.msra.mxu2 %v799_v53 }
 0x134   : > { %1537 = vmatmul.f32.vlgmr.msrb.gmra.mxu0 %v4463_v34 }
 0x135   : > { %1631 = vmatmul.f32.vlgmr.msrb.gmra.mxu2 %v4466_v62  ;;  %v1221_v40 = vpop.f32.mrf.mxu1 }
 0x136   : > { %v1222_v43 = vadd.f32 %v1221_v40, %v1174_v16  ;;  %v4500_v16 = vld [vmem:[#allocation2 + $0x108] sm:$0xff]  ;;  %v664_v40 = vld [vmem:[#allocation4 + $0x8d8] sm:$0xff] }
 0x137   : > { %1678 = vmatmul.f32.vlgmr.msrb.gmra.mxu3 %v4469_v31  ;;  %1756 = vmatpush.msra.mxu1 %v664_v40  ;;  %v637_v40 = vld [vmem:[#allocation4 + $0x800] sm:$0xff] }
 0x138   : > { %v1268_v44 = vpop.f32.mrf.mxu2  ;;  %1584 = vmatmul.f32.vlgmr.msrb.gmra.mxu1 %v4472_v45 }
 0x139   : > { %v1269_v46 = vadd.f32 %v1268_v44, %v1222_v43  ;;  %v1177_v51 = vpop.f32.mrf.mxu0  ;;  %v502_v43 = vld [vmem:[#allocation4 + $0x3c8] sm:$0xff] }
 0x13a   : > { %v1315_v35 = vpop.f32.mrf.mxu3  ;;  %v790_v44 = vld [vmem:[#allocation4 + $0xcc8] sm:$0xff]  ;;  %1711 = vmatpush.msra.mxu0 %v502_v43 }
 0x13b   : > { %v4475_v7 = vadd.f32 %v1315_v35, %v1269_v46  ;;  %1805 = vmatpush.msra.mxu2 %v790_v44  ;;  %v763_v44 = vld [vmem:[#allocation4 + $0xbf0] sm:$0xff] }
 0x13c   : > { %1540 = vmatmul.f32.gmra.mxu0 %v4477_v54 }
 0x13d   : > { %1634 = vmatmul.f32.gmra.mxu2 %v4480_v1  ;;  %v1224_v57 = vpop.f32.mrf.mxu1 }
 0x13e   : > { %v1225_v60 = vadd.f32 %v1224_v57, %v1177_v51  ;;  %v943_v51 = vld [vmem:[#allocation4 + $0x1190] sm:$0xff] }
 0x13f   : > { %1681 = vmatmul.f32.gmra.mxu3 %v4483_v38 }
 0x140   : > { %v1271_v20 = vpop.f32.mrf.mxu2  ;;  %1587 = vmatmul.f32.gmra.mxu1 %v4486_v5  ;;  %1851 = vmatpush.msra.mxu3 %v943_v51 }
 0x141   : > { %v1272_v21 = vadd.f32 %v1271_v20, %v1225_v60  ;;  %v1180_v6 = vpop.f32.mrf.mxu0  ;;  %v493_v60 = vld [vmem:[#allocation4 + $0x380] sm:$0xff]  ;;  %v655_v20 = vld [vmem:[#allocation4 + $0x890] sm:$0xff] }
 0x142   : > { %v1318_v23 = vpop.f32.mrf.mxu3  ;;  %1712 = vmatpush.msra.mxu0 %v493_v60  ;;  %1757 = vmatpush.msra.mxu1 %v655_v20  ;;  %v4514_v60 = vld [vmem:[#allocation2 + $0xc8] sm:$0xff] }
 0x143   : > { %v4489_v9 = vadd.f32 %v1318_v23, %v1272_v21  ;;  %v781_v21 = vld [vmem:[#allocation4 + $0xc80] sm:$0xff]  ;;  %v934_v23 = vld [vmem:[#allocation4 + $0x1148] sm:$0xff] }
 0x144   : > { %1543 = vmatmul.f32.gmra.mxu0 %v4491_v36  ;;  %1806 = vmatpush.msra.mxu2 %v781_v21  ;;  %v466_v20 = vld [vmem:[#allocation4 + $0x2a8] sm:$0xff] }
 0x145   : > { %5685 = vst [vmem:[#allocation27_spill] sm:$0xff] %v4489_v9  ;;  %1637 = vmatmul.f32.gmra.mxu2 %v4494_v50  ;;  %v1227_v26 = vpop.f32.mrf.mxu1  ;;  %1852 = vmatpush.msra.mxu3 %v934_v23  ;;  %v412_v9 = vld [vmem:[#allocation4 + $0xf8] sm:$0xff] }
 0x146   : > { %v1228_v8 = vadd.f32 %v1227_v26, %v1180_v6  ;;  %v4505_v6 = vld [vmem:[#allocation2 + $0x18] sm:$0xff]  ;;  %v646_v26 = vld [vmem:[#allocation4 + $0x848] sm:$0xff]  ;;  %1713 = vmatpush.msra.mxu0 %v484_v37 }
 0x147   : > { %1684 = vmatmul.f32.gmra.mxu3 %v4497_v17  ;;  %1758 = vmatpush.msra.mxu1 %v646_v26  ;;  %v754_v26 = vld [vmem:[#allocation4 + $0xba8] sm:$0xff] }
 0x148   : > { %v1274_v14 = vpop.f32.mrf.mxu2  ;;  %1590 = vmatmul.f32.gmra.mxu1 %v4500_v16  ;;  %1853 = vmatpush.msra.mxu3 %v925_v52  ;;  %v4522_v52 = vld [vmem:[#allocation2 + $0x8] sm:$0xff] }
 0x149   : > { %v1275_v59 = vadd.f32 %v1274_v14, %v1228_v8  ;;  %v1183_v35 = vpop.f32.mrf.mxu0  ;;  %v772_v8 = vld [vmem:[#allocation4 + $0xc38] sm:$0xff]  ;;  %v4511_v14 = vld [vmem:[#allocation2 + $0x20] sm:$0xff]  ;;  %1759 = vmatpush.msra.mxu1 %v637_v40 }
 0x14a   : > { %v1321_v46 = vpop.f32.mrf.mxu3  ;;  %1807 = vmatpush.msra.mxu2 %v772_v8  ;;  %v907_v8 = vld [vmem:[#allocation4 + $0x1070] sm:$0xff] }
 0x14b   : > { %v4503_v57 = vadd.f32 %v1321_v46, %v1275_v59  ;;  %v475_v59 = vld [vmem:[#allocation4 + $0x2f0] sm:$0xff]  ;;  %v916_v46 = vld [vmem:[#allocation4 + $0x10b8] sm:$0xff] }
 0x14c   : > { %1546 = vmatmul.f32.gmra.mxu0 %v4505_v6  ;;  %1808 = vmatpush.msra.mxu2 %v763_v44  ;;  %v898_v44 = vld [vmem:[#allocation4 + $0x1028] sm:$0xff] }
 0x14d   : > { %5686 = vst [vmem:[#allocation28_spill] sm:$0xff] %v4503_v57  ;;  %1640 = vmatmul.f32.gmra.mxu2 %v4508_v32  ;;  %v1230_v27 = vpop.f32.mrf.mxu1  ;;  %1714 = vmatpush.msra.mxu0 %v475_v59  ;;  %v745_v59 = vld [vmem:[#allocation4 + $0xb60] sm:$0xff]  ;;  %v574_v57 = vld [vmem:[#allocation4 + $0x608] sm:$0xff] }
 0x14e   : > { %v1231_v53 = vadd.f32 %v1230_v27, %v1183_v35  ;;  %v628_v35 = vld [vmem:[#allocation4 + $0x7b8] sm:$0xff]  ;;  %1854 = vmatpush.msra.mxu3 %v916_v46  ;;  %v457_v27 = vld [vmem:[#allocation4 + $0x260] sm:$0xff]  ;;  %1809 = vmatpush.msra.mxu2 %v754_v26  ;;  %v439_v26 = vld [vmem:[#allocation4 + $0x1d0] sm:$0xff] }
 0x14f   : > { %1687 = vmatmul.f32.gmra.mxu3 %v4511_v14  ;;  %1715 = vmatpush.msra.mxu0 %v466_v20  ;;  %v448_v20 = vld [vmem:[#allocation4 + $0x218] sm:$0xff] }
 0x150   : > { %v1277_v43 = vpop.f32.mrf.mxu2  ;;  %1593 = vmatmul.f32.gmra.mxu1 %v4514_v60  ;;  %1855 = vmatpush.msra.mxu3 %v907_v8 }
 0x151   : > { %v1278_v51 = vadd.f32 %v1277_v43, %v1231_v53  ;;  %v1186_v23 = vpop.f32.mrf.mxu0  ;;  %1760 = vmatpush.msra.mxu1 %v628_v35  ;;  %v4519_v53 = vld [vmem:[#allocation2 + $0x128] sm:$0xff]  ;;  %v619_v43 = vld [vmem:[#allocation4 + $0x770] sm:$0xff]  ;;  %1716 = vmatpush.msra.mxu0 %v457_v27 }
 0x152   : > { %v1324_v21 = vpop.f32.mrf.mxu3  ;;  %v610_v35 = vld [vmem:[#allocation4 + $0x728] sm:$0xff]  ;;  %1810 = vmatpush.msra.mxu2 %v745_v59  ;;  %1856 = vmatpush.msra.mxu3 %v898_v44  ;;  %v880_v59 = vld [vmem:[#allocation4 + $0xf98] sm:$0xff] }
 0x153   : > { %v4517_v37 = vadd.f32 %v1324_v21, %v1278_v51  ;;  %v4525_v51 = vld [vmem:[#allocation2 + $0x98] sm:$0xff]  ;;  %1761 = vmatpush.msra.mxu1 %v619_v43  ;;  %1717 = vmatpush.msra.mxu0 %v448_v20  ;;  %v727_v43 = vld [vmem:[#allocation4 + $0xad0] sm:$0xff] }
 0x154   : > { %1549 = vmatmul.f32.gmra.mxu0 %v4519_v53  ;;  %1811 = vmatpush.msra.mxu2 %v736_v15  ;;  %v592_v44 = vld [vmem:[#allocation4 + $0x698] sm:$0xff]  ;;  %v871_v20 = vld [vmem:[#allocation4 + $0xf50] sm:$0xff]  ;;  %v421_v15 = vld [vmem:[#allocation4 + $0x140] sm:$0xff] }
 0x155   : > { %5687 = vst [vmem:[#allocation29_spill] sm:$0xff] %v4517_v37  ;;  %1643 = vmatmul.f32.gmra.mxu2 %v4522_v52  ;;  %v1233_v40 = vpop.f32.mrf.mxu1  ;;  %1762 = vmatpush.msra.mxu1 %v610_v35  ;;  %v547_v37 = vld [vmem:[#allocation4 + $0x530] sm:$0xff] }
 0x156   : > { %v1234_v46 = vadd.f32 %v1233_v40, %v1186_v23  ;;  %v601_v23 = vld [vmem:[#allocation4 + $0x6e0] sm:$0xff]  ;;  %1857 = vmatpush.msra.mxu3 %v889_v29  ;;  %1718 = vmatpush.msra.mxu0 %v439_v26  ;;  %v583_v29 = vld [vmem:[#allocation4 + $0x650] sm:$0xff] }
 0x157   : > { %1690 = vmatmul.f32.gmra.mxu3 %v4525_v51  ;;  %1763 = vmatpush.msra.mxu1 %v601_v23  ;;  %v709_v26 = vld [vmem:[#allocation4 + $0xa40] sm:$0xff]  ;;  %v862_v23 = vld [vmem:[#allocation4 + $0xf08] sm:$0xff] }
 0x158   : > { %v1280_v21 = vpop.f32.mrf.mxu2  ;;  %1596 = vmatmul.f32.gmra.mxu1 %v4528_v63  ;;  %1812 = vmatpush.msra.mxu2 %v727_v43 }
 0x159   : > { %v1281_v55 = vadd.f32 %v1280_v21, %v1234_v46  ;;  %v1189_v40 = vpop.f32.mrf.mxu0  ;;  %v430_v46 = vld [vmem:[#allocation4 + $0x188] sm:$0xff]  ;;  %1858 = vmatpush.msra.mxu3 %v880_v59  ;;  %1764 = vmatpush.msra.mxu1 %v592_v44  ;;  %v403_v44 = vld [vmem:[#allocation4 + $0xb0] sm:$0xff] }
 0x15a   : > { %v1327_v8 = vpop.f32.mrf.mxu3  ;;  %v718_v21 = vld [vmem:[#allocation4 + $0xa88] sm:$0xff]  ;;  %1719 = vmatpush.msra.mxu0 %v430_v46  ;;  %v853_v46 = vld [vmem:[#allocation4 + $0xec0] sm:$0xff] }
 0x15b   : > { %v4531_v27 = vadd.f32 %v1327_v8, %v1281_v55  ;;  %1813 = vmatpush.msra.mxu2 %v718_v21  ;;  %1859 = vmatpush.msra.mxu3 %v871_v20  ;;  %v565_v21 = vld [vmem:[#allocation4 + $0x5c0] sm:$0xff]  ;;  %v691_v20 = vld [vmem:[#allocation4 + $0x9b0] sm:$0xff] }
 0x15c   : > { %1552 = vmatmul.f32.gmra.mxu0 %v4403_v2  ;;  %1765 = vmatpush.msra.mxu1 %v583_v29 }
 0x15d   : > { %5688 = vst [vmem:[#allocation30_spill] sm:$0xff] %v4531_v27  ;;  %1646 = vmatmul.f32.gmra.mxu2 %v4406_v11  ;;  %v1236_v39 = vpop.f32.mrf.mxu1  ;;  %1720 = vmatpush.msra.mxu0 %v421_v15  ;;  %v844_v15 = vld [vmem:[#allocation4 + $0xe78] sm:$0xff] }
 0x15e   : > { %v1237_v35 = vadd.f32 %v1236_v39, %v1189_v40  ;;  %1814 = vmatpush.msra.mxu2 %v709_v26  ;;  %1860 = vmatpush.msra.mxu3 %v862_v23  ;;  %v700_v40 = vld [vmem:[#allocation4 + $0x9f8] sm:$0xff] }
 0x15f   : > { %1693 = vmatmul.f32.gmra.mxu3 %v4409_v24  ;;  %1721 = vmatpush.msra.mxu0 %v412_v9  ;;  %v556_v26 = vld [vmem:[#allocation4 + $0x578] sm:$0xff]  ;;  %v682_v9 = vld [vmem:[#allocation4 + $0x968] sm:$0xff] }
 0x160   : > { %v1283_v55 = vpop.f32.mrf.mxu2  ;;  %1599 = vmatmul.f32.gmra.mxu1 %v4412_v47  ;;  %1815 = vmatpush.msra.mxu2 %v700_v40 }
 0x161   : > { %v1284_v8 = vadd.f32 %v1283_v55, %v1237_v35  ;;  %v1350_v59 = vpop.f32.mrf.mxu0  ;;  %1766 = vmatpush.msra.mxu1 %v574_v57  ;;  %1861 = vmatpush.msra.mxu3 %v853_v46  ;;  %v394_v55 = vld [vmem:[#allocation4 + $0x68] sm:$0xff]  ;;  %v835_v57 = vld [vmem:[#allocation4 + $0xe30] sm:$0xff] }
 0x162   : > { %v1330_v43 = vpop.f32.mrf.mxu3  ;;  %1722 = vmatpush.msra.mxu0 %v403_v44  ;;  %1816 = vmatpush.msra.mxu2 %v691_v20  ;;  %v673_v44 = vld [vmem:[#allocation4 + $0x920] sm:$0xff] }
 0x163   : > { %v4537_v39 = vadd.f32 %v1330_v43, %v1284_v8  ;;  %1767 = vmatpush.msra.mxu1 %v565_v21  ;;  %1862 = vmatpush.msra.mxu3 %v844_v15  ;;  %v385_v43 = vld [vmem:[#allocation4 + $0x20] sm:$0xff]  ;;  %v538_v21 = vld [vmem:[#allocation4 + $0x4e8] sm:$0xff] }
 0x164   : > { %1555 = vmatmul.f32.gmra.mxu0 %v4417_v12  ;;  %1817 = vmatpush.msra.mxu2 %v682_v9  ;;  %v817_v20 = vld [vmem:[#allocation4 + $0xda0] sm:$0xff] }
 0x165   : > { %5689 = vst [vmem:[#allocation31_spill] sm:$0xff] %v4537_v39  ;;  %1649 = vmatmul.f32.gmra.mxu2 %v4420_v49  ;;  %v1397_v35 = vpop.f32.mrf.mxu1  ;;  %1723 = vmatpush.msra.mxu0 %v394_v55  ;;  %v529_v55 = vld [vmem:[#allocation4 + $0x4a0] sm:$0xff] }
 0x166   : > { %v1398_v29 = vadd.f32 %v1397_v35, %v1350_v59  ;;  %1768 = vmatpush.msra.mxu1 %v556_v26  ;;  %1863 = vmatpush.msra.mxu3 %v835_v57  ;;  %v826_v35 = vld [vmem:[#allocation4 + $0xde8] sm:$0xff] }
 0x167   : > { %1696 = vmatmul.f32.gmra.mxu3 %v4423_v56  ;;  %1724 = vmatpush.msra.mxu0 %v385_v43 }
 0x168   : > { %v1444_v23 = vpop.f32.mrf.mxu2  ;;  %1602 = vmatmul.f32.gmra.mxu1 %v4426_v48  ;;  %1818 = vmatpush.msra.mxu2 %v673_v44  ;;  %v4554_v44 = vld [vmem:[#allocation2 + $0x78] sm:$0xff] }
 0x169   : > { %v1445_v8 = vadd.f32 %v1444_v23, %v1398_v29  ;;  %v1353_v46 = vpop.f32.mrf.mxu0  ;;  %1769 = vmatpush.msra.mxu1 %v547_v37  ;;  %1864 = vmatpush.msra.mxu3 %v826_v35 }
 0x16a   : > { %v1491_v40 = vpop.f32.mrf.mxu3  ;;  %1991 = vmatpush.msrb.mxu2 %v809_v42  ;;  %v665_v42 = vld [vmem:[#allocation4 + $0x8e0] sm:$0xff] }
 0x16b   : > { %v4543_v59 = vadd.f32 %v1491_v40, %v1445_v8  ;;  %1770 = vmatpush.msra.mxu1 %v538_v21  ;;  %1865 = vmatpush.msra.mxu3 %v817_v20 }
 0x16c   : > { %1558 = vmatmul.f32.gmra.mxu0 %v4431_v18 }
 0x16d   : > { %1652 = vmatmul.f32.gmra.mxu2 %v4434_v3  ;;  %v1400_v15 = vpop.f32.mrf.mxu1  ;;  %1771 = vmatpush.msra.mxu1 %v529_v55 }
 0x16e   : > { %v1401_v29 = vadd.f32 %v1400_v15, %v1353_v46  ;;  %v4559_v15 = vld [vmem:[#allocation2 + $0x28] sm:$0xff] }
 0x16f   : > { %1699 = vmatmul.f32.gmra.mxu3 %v4437_v41  ;;  %1944 = vmatpush.msrb.mxu1 %v665_v42 }
 0x170   : > { %v1447_v26 = vpop.f32.mrf.mxu2  ;;  %1605 = vmatmul.f32.gmra.mxu1 %v4440_v28 }
 0x171   : > { %v1448_v23 = vadd.f32 %v1447_v26, %v1401_v29  ;;  %v1356_v9 = vpop.f32.mrf.mxu0  ;;  %v4562_v29 = vld [vmem:[#allocation2 + $0xb8] sm:$0xff]  ;;  %1945 = vmatpush.msrb.mxu1 %v656_v0 }
 0x172   : > { %v1494_v37 = vpop.f32.mrf.mxu3  ;;  %v764_v0 = vld [vmem:[#allocation4 + $0xbf8] sm:$0xff] }
 0x173   : > { %v4549_v57 = vadd.f32 %v1494_v37, %v1448_v23  ;;  %v4565_v23 = vld [vmem:[#allocation2 + $0x60] sm:$0xff] }
 0x174   : > { %1561 = vmatmul.f32.gmra.mxu0 %v4445_v22 }
 0x175   : > { %1655 = vmatmul.f32.gmra.mxu2 %v4448_v10  ;;  %v1403_v8 = vpop.f32.mrf.mxu1 }
 0x176   : > { %v1404_v43 = vadd.f32 %v1403_v8, %v1356_v9  ;;  %v4568_v8 = vld [vmem:[#allocation2] sm:$0xff] }
 0x177   : > { %1702 = vmatmul.f32.gmra.mxu3 %v4451_v25 }
 0x178   : > { %v1450_v40 = vpop.f32.mrf.mxu2  ;;  %1608 = vmatmul.f32.gmra.mxu1 %v4554_v44 }
 0x179   : > { %v1451_v46 = vadd.f32 %v1450_v40, %v1404_v43  ;;  %v1359_v21 = vpop.f32.mrf.mxu0 }
 0x17a   : > { %v1497_v35 = vpop.f32.mrf.mxu3 }
 0x17b   : > { %v4557_v20 = vadd.f32 %v1497_v35, %v1451_v46 }
 0x17c   : > { %1564 = vmatmul.f32.gmra.mxu0 %v4559_v15 }
 0x17d   : > { %1658 = vmatmul.f32.gmra.mxu2 %v4562_v29  ;;  %v1406_v55 = vpop.f32.mrf.mxu1 }
 0x17e   : > { %v1407_v26 = vadd.f32 %v1406_v55, %v1359_v21 }
 0x17f   : > { %1705 = vmatmul.f32.gmra.mxu3 %v4565_v23 }
 0x180   : > { %v1453_v37 = vpop.f32.mrf.mxu2  ;;  %1611 = vmatmul.f32.gmra.mxu1 %v4568_v8 }
 0x181   : > { %v1454_v9 = vadd.f32 %v1453_v37, %v1407_v26  ;;  %v1362_v40 = vpop.f32.mrf.mxu0 }
 0x182   : > { %v1500_v43 = vpop.f32.mrf.mxu3 }
 0x183   : > { %v4571_v46 = vadd.f32 %v1500_v43, %v1454_v9 }
 0x184   : > { %1725 = vmatmul.f32.vlgmr.msra.gmra.mxu0 %v4463_v34 }
 0x185   : > { %1819 = vmatmul.f32.vlgmr.msra.gmra.mxu2 %v4466_v62  ;;  %v1409_v35 = vpop.f32.mrf.mxu1 }
 0x186   : > { %v1410_v21 = vadd.f32 %v1409_v35, %v1362_v40 }
 0x187   : > { %1866 = vmatmul.f32.vlgmr.msra.gmra.mxu3 %v4469_v31 }
 0x188   : > { %v1456_v55 = vpop.f32.mrf.mxu2  ;;  %1772 = vmatmul.f32.vlgmr.msra.gmra.mxu1 %v4472_v45 }
 0x189   : > { %v1457_v27 = vadd.f32 %v1456_v55, %v1410_v21  ;;  %v1365_v37 = vpop.f32.mrf.mxu0 }
 0x18a   : > { %v1503_v26 = vpop.f32.mrf.mxu3 }
 0x18b   : > { %v4577_v39 = vadd.f32 %v1503_v26, %v1457_v27  ;;  %v521_v27 = vld [vmem:[#allocation4 + $0x460] sm:$0xff] }
 0x18c   : > { %1728 = vmatmul.f32.gmra.mxu0 %v4477_v54 }
 0x18d   : > { %1822 = vmatmul.f32.gmra.mxu2 %v4480_v1  ;;  %v1412_v9 = vpop.f32.mrf.mxu1  ;;  %1897 = vmatpush.msrb.mxu0 %v521_v27 }
 0x18e   : > { %v1413_v43 = vadd.f32 %v1412_v9, %v1365_v37  ;;  %v953_v9 = vld [vmem:[#allocation4 + $0x11e0] sm:$0xff] }
 0x18f   : > { %1869 = vmatmul.f32.gmra.mxu3 %v4483_v38 }
 0x190   : > { %v1459_v19 = vpop.f32.mrf.mxu2  ;;  %1775 = vmatmul.f32.gmra.mxu1 %v4486_v5  ;;  %2038 = vmatpush.msrb.mxu3 %v953_v9  ;;  %v782_v9 = vld [vmem:[#allocation4 + $0xc88] sm:$0xff] }
 0x191   : > { %v1460_v40 = vadd.f32 %v1459_v19, %v1413_v43  ;;  %v1368_v21 = vpop.f32.mrf.mxu0  ;;  %v512_v19 = vld [vmem:[#allocation4 + $0x418] sm:$0xff] }
 0x192   : > { %v1506_v35 = vpop.f32.mrf.mxu3  ;;  %v800_v43 = vld [vmem:[#allocation4 + $0xd18] sm:$0xff]  ;;  %1898 = vmatpush.msrb.mxu0 %v512_v19  ;;  %v647_v19 = vld [vmem:[#allocation4 + $0x850] sm:$0xff] }
 0x193   : > { %v4583_v55 = vadd.f32 %v1506_v35, %v1460_v40  ;;  %1992 = vmatpush.msrb.mxu2 %v800_v43  ;;  %v503_v35 = vld [vmem:[#allocation4 + $0x3d0] sm:$0xff]  ;;  %v773_v43 = vld [vmem:[#allocation4 + $0xc40] sm:$0xff]  ;;  %1946 = vmatpush.msrb.mxu1 %v647_v19  ;;  %v458_v19 = vld [vmem:[#allocation4 + $0x268] sm:$0xff] }
 0x194   : > { %1731 = vmatmul.f32.gmra.mxu0 %v4491_v36 }
 0x195   : > { %5690 = vst [vmem:[#allocation32_spill] sm:$0xff] %v4583_v55  ;;  %1825 = vmatmul.f32.gmra.mxu2 %v4494_v50  ;;  %v1415_v26 = vpop.f32.mrf.mxu1  ;;  %v791_v55 = vld [vmem:[#allocation4 + $0xcd0] sm:$0xff]  ;;  %1899 = vmatpush.msrb.mxu0 %v503_v35  ;;  %v638_v35 = vld [vmem:[#allocation4 + $0x808] sm:$0xff] }
 0x196   : > { %v1416_v37 = vadd.f32 %v1415_v26, %v1368_v21  ;;  %v944_v21 = vld [vmem:[#allocation4 + $0x1198] sm:$0xff]  ;;  %1993 = vmatpush.msrb.mxu2 %v791_v55  ;;  %v494_v26 = vld [vmem:[#allocation4 + $0x388] sm:$0xff]  ;;  %1947 = vmatpush.msrb.mxu1 %v638_v35 }
 0x197   : > { %1872 = vmatmul.f32.gmra.mxu3 %v4497_v17  ;;  %1900 = vmatpush.msrb.mxu0 %v494_v26  ;;  %v476_v55 = vld [vmem:[#allocation4 + $0x2f8] sm:$0xff]  ;;  %v917_v26 = vld [vmem:[#allocation4 + $0x10c0] sm:$0xff] }
 0x198   : > { %v1462_v58 = vpop.f32.mrf.mxu2  ;;  %1778 = vmatmul.f32.gmra.mxu1 %v4500_v16  ;;  %2039 = vmatpush.msrb.mxu3 %v944_v21 }
 0x199   : > { %v1463_v40 = vadd.f32 %v1462_v58, %v1416_v37  ;;  %v1371_v4 = vpop.f32.mrf.mxu0  ;;  %v935_v58 = vld [vmem:[#allocation4 + $0x1150] sm:$0xff]  ;;  %v485_v37 = vld [vmem:[#allocation4 + $0x340] sm:$0xff]  ;;  %1994 = vmatpush.msrb.mxu2 %v782_v9  ;;  %1948 = vmatpush.msrb.mxu1 %v629_v13  ;;  %v890_v13 = vld [vmem:[#allocation4 + $0xfe8] sm:$0xff] }
 0x19a   : > { %v1509_v30 = vpop.f32.mrf.mxu3  ;;  %2040 = vmatpush.msrb.mxu3 %v935_v58  ;;  %1901 = vmatpush.msrb.mxu0 %v485_v37  ;;  %v755_v37 = vld [vmem:[#allocation4 + $0xbb0] sm:$0xff] }
 0x19b   : > { %v4589_v27 = vadd.f32 %v1509_v30, %v1463_v40  ;;  %v926_v30 = vld [vmem:[#allocation4 + $0x1108] sm:$0xff]  ;;  %1995 = vmatpush.msrb.mxu2 %v773_v43  ;;  %v620_v43 = vld [vmem:[#allocation4 + $0x778] sm:$0xff] }
 0x19c   : > { %1734 = vmatmul.f32.gmra.mxu0 %v4505_v6  ;;  %2041 = vmatpush.msrb.mxu3 %v926_v30  ;;  %v746_v30 = vld [vmem:[#allocation4 + $0xb68] sm:$0xff] }
 0x19d   : > { %5691 = vst [vmem:[#allocation33_spill] sm:$0xff] %v4589_v27  ;;  %1828 = vmatmul.f32.gmra.mxu2 %v4508_v32  ;;  %v1418_v42 = vpop.f32.mrf.mxu1  ;;  %1902 = vmatpush.msrb.mxu0 %v476_v55  ;;  %v899_v55 = vld [vmem:[#allocation4 + $0x1030] sm:$0xff] }
 0x19e   : > { %v1419_v40 = vadd.f32 %v1418_v42, %v1371_v4  ;;  %1996 = vmatpush.msrb.mxu2 %v764_v0  ;;  %2042 = vmatpush.msrb.mxu3 %v917_v26  ;;  %v908_v42 = vld [vmem:[#allocation4 + $0x1078] sm:$0xff] }
 0x19f   : > { %1875 = vmatmul.f32.gmra.mxu3 %v4511_v14  ;;  %1903 = vmatpush.msrb.mxu0 %v467_v33  ;;  %v737_v33 = vld [vmem:[#allocation4 + $0xb20] sm:$0xff] }
 0x1a0   : > { %v1465_v21 = vpop.f32.mrf.mxu2  ;;  %1781 = vmatmul.f32.gmra.mxu1 %v4514_v60  ;;  %1997 = vmatpush.msrb.mxu2 %v755_v37 }
 0x1a1   : > { %v1466_v27 = vadd.f32 %v1465_v21, %v1419_v40  ;;  %v1374_v58 = vpop.f32.mrf.mxu0  ;;  %2043 = vmatpush.msrb.mxu3 %v908_v42  ;;  %1904 = vmatpush.msrb.mxu0 %v458_v19  ;;  %v611_v21 = vld [vmem:[#allocation4 + $0x730] sm:$0xff]  ;;  %v728_v19 = vld [vmem:[#allocation4 + $0xad8] sm:$0xff] }
 0x1a2   : > { %v1512_v9 = vpop.f32.mrf.mxu3  ;;  %1949 = vmatpush.msrb.mxu1 %v620_v43  ;;  %1998 = vmatpush.msrb.mxu2 %v746_v30  ;;  %v431_v43 = vld [vmem:[#allocation4 + $0x190] sm:$0xff]  ;;  %v593_v30 = vld [vmem:[#allocation4 + $0x6a0] sm:$0xff] }
 0x1a3   : > { %v4595_v4 = vadd.f32 %v1512_v9, %v1466_v27  ;;  %v449_v27 = vld [vmem:[#allocation4 + $0x220] sm:$0xff]  ;;  %2044 = vmatpush.msrb.mxu3 %v899_v55  ;;  %v440_v9 = vld [vmem:[#allocation4 + $0x1d8] sm:$0xff]  ;;  %v719_v55 = vld [vmem:[#allocation4 + $0xa90] sm:$0xff] }
 0x1a4   : > { %1737 = vmatmul.f32.gmra.mxu0 %v4519_v53  ;;  %1950 = vmatpush.msrb.mxu1 %v611_v21 }
 0x1a5   : > { %5692 = vst [vmem:[#allocation34_spill] sm:$0xff] %v4595_v4  ;;  %1831 = vmatmul.f32.gmra.mxu2 %v4522_v52  ;;  %v1421_v40 = vpop.f32.mrf.mxu1  ;;  %v602_v4 = vld [vmem:[#allocation4 + $0x6e8] sm:$0xff]  ;;  %1905 = vmatpush.msrb.mxu0 %v449_v27  ;;  %v872_v27 = vld [vmem:[#allocation4 + $0xf58] sm:$0xff] }
 0x1a6   : > { %v1422_v35 = vadd.f32 %v1421_v40, %v1374_v58  ;;  %1999 = vmatpush.msrb.mxu2 %v737_v33  ;;  %2045 = vmatpush.msrb.mxu3 %v890_v13  ;;  %v881_v40 = vld [vmem:[#allocation4 + $0xfa0] sm:$0xff]  ;;  %v584_v33 = vld [vmem:[#allocation4 + $0x658] sm:$0xff] }
 0x1a7   : > { %1878 = vmatmul.f32.gmra.mxu3 %v4525_v51  ;;  %1906 = vmatpush.msrb.mxu0 %v440_v9  ;;  %v575_v9 = vld [vmem:[#allocation4 + $0x610] sm:$0xff] }
 0x1a8   : > { %v1468_v0 = vpop.f32.mrf.mxu2  ;;  %1784 = vmatmul.f32.gmra.mxu1 %v4528_v63  ;;  %2000 = vmatpush.msrb.mxu2 %v728_v19 }
 0x1a9   : > { %v1469_v26 = vadd.f32 %v1468_v0, %v1422_v35  ;;  %v1377_v42 = vpop.f32.mrf.mxu0  ;;  %1951 = vmatpush.msrb.mxu1 %v602_v4  ;;  %2046 = vmatpush.msrb.mxu3 %v881_v40  ;;  %v422_v0 = vld [vmem:[#allocation4 + $0x148] sm:$0xff] }
 0x1aa   : > { %v1515_v37 = vpop.f32.mrf.mxu3  ;;  %1907 = vmatpush.msrb.mxu0 %v431_v43  ;;  %2001 = vmatpush.msrb.mxu2 %v719_v55  ;;  %v710_v4 = vld [vmem:[#allocation4 + $0xa48] sm:$0xff]  ;;  %v404_v43 = vld [vmem:[#allocation4 + $0xb8] sm:$0xff] }
 0x1ab   : > { %v4601_v58 = vadd.f32 %v1515_v37, %v1469_v26  ;;  %1952 = vmatpush.msrb.mxu1 %v593_v30  ;;  %v863_v26 = vld [vmem:[#allocation4 + $0xf10] sm:$0xff]  ;;  %2047 = vmatpush.msrb.mxu3 %v872_v27  ;;  %v854_v40 = vld [vmem:[#allocation4 + $0xec8] sm:$0xff]  ;;  %v692_v30 = vld [vmem:[#allocation4 + $0x9b8] sm:$0xff] }
 0x1ac   : > { %1740 = vmatmul.f32.gmra.mxu0 %v4403_v2  ;;  %2002 = vmatpush.msrb.mxu2 %v710_v4  ;;  %v836_v4 = vld [vmem:[#allocation4 + $0xe38] sm:$0xff] }
 0x1ad   : > { %5693 = vst [vmem:[#allocation35_spill] sm:$0xff] %v4601_v58  ;;  %1834 = vmatmul.f32.gmra.mxu2 %v4406_v11  ;;  %v1424_v35 = vpop.f32.mrf.mxu1  ;;  %v413_v11 = vld [vmem:[#allocation4 + $0x100] sm:$0xff]  ;;  %1908 = vmatpush.msrb.mxu0 %v422_v0 }
 0x1ae   : > { %v1425_v21 = vadd.f32 %v1424_v35, %v1377_v42  ;;  %1953 = vmatpush.msrb.mxu1 %v584_v33  ;;  %2048 = vmatpush.msrb.mxu3 %v863_v26  ;;  %v845_v35 = vld [vmem:[#allocation4 + $0xe80] sm:$0xff]  ;;  %v548_v26 = vld [vmem:[#allocation4 + $0x538] sm:$0xff] }
 0x1af   : > { %1881 = vmatmul.f32.gmra.mxu3 %v4409_v24  ;;  %v701_v24 = vld [vmem:[#allocation4 + $0xa00] sm:$0xff]  ;;  %1909 = vmatpush.msrb.mxu0 %v413_v11 }
 0x1b0   : > { %v1471_v13 = vpop.f32.mrf.mxu2  ;;  %1787 = vmatmul.f32.gmra.mxu1 %v4412_v47  ;;  %v566_v47 = vld [vmem:[#allocation4 + $0x5c8] sm:$0xff]  ;;  %2003 = vmatpush.msrb.mxu2 %v701_v24  ;;  %v557_v0 = vld [vmem:[#allocation4 + $0x580] sm:$0xff] }
 0x1b1   : > { %v1472_v2 = vadd.f32 %v1471_v13, %v1425_v21  ;;  %v1538_v19 = vpop.f32.mrf.mxu0  ;;  %1954 = vmatpush.msrb.mxu1 %v575_v9  ;;  %2049 = vmatpush.msrb.mxu3 %v854_v40  ;;  %v395_v21 = vld [vmem:[#allocation4 + $0x70] sm:$0xff] }
 0x1b2   : > { %v1518_v37 = vpop.f32.mrf.mxu3  ;;  %1910 = vmatpush.msrb.mxu0 %v404_v43  ;;  %2004 = vmatpush.msrb.mxu2 %v692_v30  ;;  %v683_v13 = vld [vmem:[#allocation4 + $0x970] sm:$0xff]  ;;  %v530_v43 = vld [vmem:[#allocation4 + $0x4a8] sm:$0xff] }
 0x1b3   : > { %v4607_v42 = vadd.f32 %v1518_v37, %v1472_v2  ;;  %1955 = vmatpush.msrb.mxu1 %v566_v47  ;;  %2050 = vmatpush.msrb.mxu3 %v845_v35  ;;  %v827_v37 = vld [vmem:[#allocation4 + $0xdf0] sm:$0xff] }
 0x1b4   : > { %1743 = vmatmul.f32.gmra.mxu0 %v4417_v12  ;;  %2005 = vmatpush.msrb.mxu2 %v683_v13 }
 0x1b5   : > { %5694 = vst [vmem:[#allocation36_spill] sm:$0xff] %v4607_v42  ;;  %1837 = vmatmul.f32.gmra.mxu2 %v4420_v49  ;;  %v1585_v55 = vpop.f32.mrf.mxu1  ;;  %v386_v49 = vld [vmem:[#allocation4 + $0x28] sm:$0xff]  ;;  %1911 = vmatpush.msrb.mxu0 %v395_v21 }
 0x1b6   : > { %v1586_v27 = vadd.f32 %v1585_v55, %v1538_v19  ;;  %1956 = vmatpush.msrb.mxu1 %v557_v0  ;;  %2051 = vmatpush.msrb.mxu3 %v836_v4  ;;  %v539_v19 = vld [vmem:[#allocation4 + $0x4f0] sm:$0xff]  ;;  %v4774_v42 = vld [vmem:[#allocation2 + $0xc8] sm:$0xff] }
 0x1b7   : > { %1884 = vmatmul.f32.gmra.mxu3 %v4423_v56  ;;  %v674_v56 = vld [vmem:[#allocation4 + $0x928] sm:$0xff]  ;;  %1912 = vmatpush.msrb.mxu0 %v386_v49 }
 0x1b8   : > { %v1632_v33 = vpop.f32.mrf.mxu2  ;;  %1790 = vmatmul.f32.gmra.mxu1 %v4426_v48  ;;  %v818_v48 = vld [vmem:[#allocation4 + $0xda8] sm:$0xff]  ;;  %2006 = vmatpush.msrb.mxu2 %v674_v56 }
 0x1b9   : > { %v1633_v12 = vadd.f32 %v1632_v33, %v1586_v27  ;;  %v1541_v11 = vpop.f32.mrf.mxu0  ;;  %1957 = vmatpush.msrb.mxu1 %v548_v26  ;;  %2052 = vmatpush.msrb.mxu3 %v827_v37 }
 0x1ba   : > { %v1679_v2 = vpop.f32.mrf.mxu3 }
 0x1bb   : > { %v4613_v9 = vadd.f32 %v1679_v2, %v1633_v12  ;;  %1958 = vmatpush.msrb.mxu1 %v539_v19  ;;  %2053 = vmatpush.msrb.mxu3 %v818_v48 }
 0x1bc   : > { %1746 = vmatmul.f32.gmra.mxu0 %v4431_v18 }
 0x1bd   : > { %1840 = vmatmul.f32.gmra.mxu2 %v4434_v3  ;;  %v1588_v24 = vpop.f32.mrf.mxu1  ;;  %1959 = vmatpush.msrb.mxu1 %v530_v43 }
 0x1be   : > { %v1589_v40 = vadd.f32 %v1588_v24, %v1541_v11 }
 0x1bf   : > { %1887 = vmatmul.f32.gmra.mxu3 %v4437_v41 }
 0x1c0   : > { %v1635_v47 = vpop.f32.mrf.mxu2  ;;  %1793 = vmatmul.f32.gmra.mxu1 %v4440_v28 }
 0x1c1   : > { %v1636_v30 = vadd.f32 %v1635_v47, %v1589_v40  ;;  %v1544_v35 = vpop.f32.mrf.mxu0 }
 0x1c2   : > { %v1682_v55 = vpop.f32.mrf.mxu3 }
 0x1c3   : > { %v4619_v18 = vadd.f32 %v1682_v55, %v1636_v30  ;;  %v513_v55 = vld [vmem:[#allocation4 + $0x420] sm:$0xff] }
 0x1c4   : > { %1749 = vmatmul.f32.gmra.mxu0 %v4445_v22 }
 0x1c5   : > { %5695 = vst [vmem:[#allocation37_spill] sm:$0xff] %v4619_v18  ;;  %1843 = vmatmul.f32.gmra.mxu2 %v4448_v10  ;;  %v1591_v3 = vpop.f32.mrf.mxu1  ;;  %v452_v18 = vld [vmem:[#allocation4 + $0x238] sm:$0xff] }
 0x1c6   : > { %v1592_v27 = vadd.f32 %v1591_v3, %v1544_v35  ;;  %v801_v35 = vld [vmem:[#allocation4 + $0xd20] sm:$0xff] }
 0x1c7   : > { %1890 = vmatmul.f32.gmra.mxu3 %v4451_v25 }
 0x1c8   : > { %v1638_v41 = vpop.f32.mrf.mxu2  ;;  %1796 = vmatmul.f32.gmra.mxu1 %v4554_v44 }
 0x1c9   : > { %v1639_v21 = vadd.f32 %v1638_v41, %v1592_v27  ;;  %v1547_v33 = vpop.f32.mrf.mxu0  ;;  %v666_v27 = vld [vmem:[#allocation4 + $0x8e8] sm:$0xff]  ;;  %v792_v41 = vld [vmem:[#allocation4 + $0xcd8] sm:$0xff] }
 0x1ca   : > { %v1685_v0 = vpop.f32.mrf.mxu3  ;;  %2132 = vmatpush.msra.mxu1 %v666_v27  ;;  %v891_v27 = vld [vmem:[#allocation4 + $0xff0] sm:$0xff] }
 0x1cb   : > { %v4625_v28 = vadd.f32 %v1685_v0, %v1639_v21  ;;  %v945_v0 = vld [vmem:[#allocation4 + $0x11a0] sm:$0xff] }
 0x1cc   : > { %1752 = vmatmul.f32.gmra.mxu0 %v4559_v15 }
 0x1cd   : > { %5696 = vst [vmem:[#allocation38_spill] sm:$0xff] %v4625_v28  ;;  %1846 = vmatmul.f32.gmra.mxu2 %v4562_v29  ;;  %v1594_v13 = vpop.f32.mrf.mxu1 }
 0x1ce   : > { %v1595_v22 = vadd.f32 %v1594_v13, %v1547_v33  ;;  %v657_v13 = vld [vmem:[#allocation4 + $0x8a0] sm:$0xff] }
 0x1cf   : > { %1893 = vmatmul.f32.gmra.mxu3 %v4565_v23  ;;  %2133 = vmatpush.msra.mxu1 %v657_v13  ;;  %v4663_v13 = vld [vmem:[#allocation2 + $0xa8] sm:$0xff] }
 0x1d0   : > { %v1641_v10 = vpop.f32.mrf.mxu2  ;;  %1799 = vmatmul.f32.gmra.mxu1 %v4568_v8 }
 0x1d1   : > { %v1642_v4 = vadd.f32 %v1641_v10, %v1595_v22  ;;  %v1550_v12 = vpop.f32.mrf.mxu0  ;;  %v783_v22 = vld [vmem:[#allocation4 + $0xc90] sm:$0xff]  ;;  %v936_v10 = vld [vmem:[#allocation4 + $0x1158] sm:$0xff] }
 0x1d2   : > { %v1688_v25 = vpop.f32.mrf.mxu3 }
 0x1d3   : > { %v4631_v49 = vadd.f32 %v1688_v25, %v1642_v4  ;;  %v648_v4 = vld [vmem:[#allocation4 + $0x858] sm:$0xff]  ;;  %v774_v25 = vld [vmem:[#allocation4 + $0xc48] sm:$0xff] }
 0x1d4   : > { %1913 = vmatmul.f32.vlgmr.msrb.gmra.mxu0 %v4463_v34  ;;  %2134 = vmatpush.msra.mxu1 %v648_v4  ;;  %v873_v4 = vld [vmem:[#allocation4 + $0xf60] sm:$0xff] }
 0x1d5   : > { %5697 = vst [vmem:[#allocation39_spill] sm:$0xff] %v4631_v49  ;;  %2007 = vmatmul.f32.vlgmr.msrb.gmra.mxu2 %v4466_v62  ;;  %v1597_v26 = vpop.f32.mrf.mxu1  ;;  %v4788_v49 = vld [vmem:[#allocation2 + $0x110] sm:$0xff] }
 0x1d6   : > { %v1598_v2 = vadd.f32 %v1597_v26, %v1550_v12  ;;  %v927_v26 = vld [vmem:[#allocation4 + $0x1110] sm:$0xff]  ;;  %5708 = vst [vmem:[#allocation50_spill] sm:$0xff] %v4788_v49 }
 0x1d7   : > { %2054 = vmatmul.f32.vlgmr.msrb.gmra.mxu3 %v4469_v31 }
 0x1d8   : > { %v1644_v11 = vpop.f32.mrf.mxu2  ;;  %1960 = vmatmul.f32.vlgmr.msrb.gmra.mxu1 %v4472_v45  ;;  %v810_v45 = vld [vmem:[#allocation4 + $0xd68] sm:$0xff] }
 0x1d9   : > { %v1645_v56 = vadd.f32 %v1644_v11, %v1598_v2  ;;  %v1553_v19 = vpop.f32.mrf.mxu0  ;;  %2179 = vmatpush.msra.mxu2 %v810_v45  ;;  %v477_v11 = vld [vmem:[#allocation4 + $0x300] sm:$0xff]  ;;  %v459_v45 = vld [vmem:[#allocation4 + $0x270] sm:$0xff] }
 0x1da   : > { %v1691_v37 = vpop.f32.mrf.mxu3 }
 0x1db   : > { %v4637_v48 = vadd.f32 %v1691_v37, %v1645_v56  ;;  %2180 = vmatpush.msra.mxu2 %v801_v35  ;;  %v639_v56 = vld [vmem:[#allocation4 + $0x810] sm:$0xff]  ;;  %v612_v35 = vld [vmem:[#allocation4 + $0x738] sm:$0xff] }
 0x1dc   : > { %1916 = vmatmul.f32.gmra.mxu0 %v4477_v54  ;;  %v522_v54 = vld [vmem:[#allocation4 + $0x468] sm:$0xff]  ;;  %2135 = vmatpush.msra.mxu1 %v639_v56  ;;  %v711_v56 = vld [vmem:[#allocation4 + $0xa50] sm:$0xff] }
 0x1dd   : > { %5698 = vst [vmem:[#allocation40_spill] sm:$0xff] %v4637_v48  ;;  %2010 = vmatmul.f32.gmra.mxu2 %v4480_v1  ;;  %v1600_v24 = vpop.f32.mrf.mxu1  ;;  %2085 = vmatpush.msra.mxu0 %v522_v54  ;;  %v747_v54 = vld [vmem:[#allocation4 + $0xb70] sm:$0xff] }
 0x1de   : > { %v1601_v34 = vadd.f32 %v1600_v24, %v1553_v19  ;;  %2181 = vmatpush.msra.mxu2 %v792_v41  ;;  %v765_v19 = vld [vmem:[#allocation4 + $0xc00] sm:$0xff] }
 0x1df   : > { %2057 = vmatmul.f32.gmra.mxu3 %v4483_v38  ;;  %v954_v38 = vld [vmem:[#allocation4 + $0x11e8] sm:$0xff]  ;;  %2086 = vmatpush.msra.mxu0 %v513_v55 }
 0x1e0   : > { %v1647_v62 = vpop.f32.mrf.mxu2  ;;  %1963 = vmatmul.f32.gmra.mxu1 %v4486_v5  ;;  %2226 = vmatpush.msra.mxu3 %v954_v38  ;;  %v450_v55 = vld [vmem:[#allocation4 + $0x228] sm:$0xff] }
 0x1e1   : > { %v1648_v40 = vadd.f32 %v1647_v62, %v1601_v34  ;;  %v1556_v43 = vpop.f32.mrf.mxu0  ;;  %2182 = vmatpush.msra.mxu2 %v783_v22  ;;  %v630_v34 = vld [vmem:[#allocation4 + $0x7c8] sm:$0xff] }
 0x1e2   : > { %v1694_v31 = vpop.f32.mrf.mxu3  ;;  %2227 = vmatpush.msra.mxu3 %v945_v0  ;;  %2136 = vmatpush.msra.mxu1 %v630_v34  ;;  %v882_v0 = vld [vmem:[#allocation4 + $0xfa8] sm:$0xff] }
 0x1e3   : > { %v4643_v47 = vadd.f32 %v1694_v31, %v1648_v40  ;;  %2183 = vmatpush.msra.mxu2 %v774_v25  ;;  %v594_v22 = vld [vmem:[#allocation4 + $0x6a8] sm:$0xff] }
 0x1e4   : > { %1919 = vmatmul.f32.gmra.mxu0 %v4491_v36  ;;  %v504_v36 = vld [vmem:[#allocation4 + $0x3d8] sm:$0xff]  ;;  %2228 = vmatpush.msra.mxu3 %v936_v10 }
 0x1e5   : > { %5699 = vst [vmem:[#allocation41_spill] sm:$0xff] %v4643_v47  ;;  %2013 = vmatmul.f32.gmra.mxu2 %v4494_v50  ;;  %v1603_v1 = vpop.f32.mrf.mxu1  ;;  %2087 = vmatpush.msra.mxu0 %v504_v36  ;;  %v603_v36 = vld [vmem:[#allocation4 + $0x6f0] sm:$0xff]  ;;  %v720_v10 = vld [vmem:[#allocation4 + $0xa98] sm:$0xff]  ;;  %v622_v47 = vld [vmem:[#allocation4 + $0x788] sm:$0xff] }
 0x1e6   : > { %v1604_v30 = vadd.f32 %v1603_v1, %v1556_v43  ;;  %2229 = vmatpush.msra.mxu3 %v927_v26  ;;  %2184 = vmatpush.msra.mxu2 %v765_v19  ;;  %v909_v43 = vld [vmem:[#allocation4 + $0x1080] sm:$0xff]  ;;  %v423_v26 = vld [vmem:[#allocation4 + $0x150] sm:$0xff] }
 0x1e7   : > { %2060 = vmatmul.f32.gmra.mxu3 %v4497_v17  ;;  %v495_v17 = vld [vmem:[#allocation4 + $0x390] sm:$0xff] }
 0x1e8   : > { %v1650_v5 = vpop.f32.mrf.mxu2  ;;  %1966 = vmatmul.f32.gmra.mxu1 %v4500_v16  ;;  %2088 = vmatpush.msra.mxu0 %v495_v17  ;;  %v486_v16 = vld [vmem:[#allocation4 + $0x348] sm:$0xff]  ;;  %v432_v17 = vld [vmem:[#allocation4 + $0x198] sm:$0xff] }
 0x1e9   : > { %v1651_v3 = vadd.f32 %v1650_v5, %v1604_v30  ;;  %v1559_v21 = vpop.f32.mrf.mxu0  ;;  %v900_v30 = vld [vmem:[#allocation4 + $0x1038] sm:$0xff] }
 0x1ea   : > { %v1697_v50 = vpop.f32.mrf.mxu3  ;;  %2089 = vmatpush.msra.mxu0 %v486_v16 }
 0x1eb   : > { %v4649_v33 = vadd.f32 %v1697_v50, %v1651_v3  ;;  %v738_v3 = vld [vmem:[#allocation4 + $0xb28] sm:$0xff] }
 0x1ec   : > { %1922 = vmatmul.f32.gmra.mxu0 %v4505_v6  ;;  %v918_v6 = vld [vmem:[#allocation4 + $0x10c8] sm:$0xff] }
 0x1ed   : > { %5700 = vst [vmem:[#allocation42_spill] sm:$0xff] %v4649_v33  ;;  %2016 = vmatmul.f32.gmra.mxu2 %v4508_v32  ;;  %v1606_v12 = vpop.f32.mrf.mxu1  ;;  %v468_v32 = vld [vmem:[#allocation4 + $0x2b8] sm:$0xff]  ;;  %2090 = vmatpush.msra.mxu0 %v477_v11  ;;  %v667_v33 = vld [vmem:[#allocation4 + $0x8f0] sm:$0xff] }
 0x1ee   : > { %v1607_v2 = vadd.f32 %v1606_v12, %v1559_v21  ;;  %2230 = vmatpush.msra.mxu3 %v918_v6  ;;  %v4669_v12 = vld [vmem:[#allocation2 + $0x88] sm:$0xff]  ;;  %v4672_v6 = vld [vmem:[#allocation2 + $0x90] sm:$0xff] }
 0x1ef   : > { %2063 = vmatmul.f32.gmra.mxu3 %v4511_v14  ;;  %v756_v14 = vld [vmem:[#allocation4 + $0xbb8] sm:$0xff]  ;;  %2091 = vmatpush.msra.mxu0 %v468_v32 }
 0x1f0   : > { %v1653_v37 = vpop.f32.mrf.mxu2  ;;  %1969 = vmatmul.f32.gmra.mxu1 %v4514_v60  ;;  %v621_v60 = vld [vmem:[#allocation4 + $0x780] sm:$0xff]  ;;  %2185 = vmatpush.msra.mxu2 %v756_v14  ;;  %v576_v32 = vld [vmem:[#allocation4 + $0x618] sm:$0xff]  ;;  %v702_v14 = vld [vmem:[#allocation4 + $0xa08] sm:$0xff] }
 0x1f1   : > { %v1654_v24 = vadd.f32 %v1653_v37, %v1607_v2  ;;  %v1562_v40 = vpop.f32.mrf.mxu0  ;;  %2231 = vmatpush.msra.mxu3 %v909_v43  ;;  %2092 = vmatpush.msra.mxu0 %v459_v45  ;;  %v585_v2 = vld [vmem:[#allocation4 + $0x660] sm:$0xff]  ;;  %v864_v37 = vld [vmem:[#allocation4 + $0xf18] sm:$0xff]  ;;  %v855_v43 = vld [vmem:[#allocation4 + $0xed0] sm:$0xff] }
 0x1f2   : > { %v1700_v62 = vpop.f32.mrf.mxu3  ;;  %2137 = vmatpush.msra.mxu1 %v621_v60  ;;  %2186 = vmatpush.msra.mxu2 %v747_v54  ;;  %v405_v45 = vld [vmem:[#allocation4 + $0xc0] sm:$0xff]  ;;  %v4680_v54 = vld [vmem:[#allocation2 + $0xd8] sm:$0xff] }
 0x1f3   : > { %v4655_v31 = vadd.f32 %v1700_v62, %v1654_v24  ;;  %2232 = vmatpush.msra.mxu3 %v900_v30  ;;  %2093 = vmatpush.msra.mxu0 %v450_v55  ;;  %v414_v24 = vld [vmem:[#allocation4 + $0x108] sm:$0xff]  ;;  %v4677_v60 = vld [vmem:[#allocation2 + $0xc0] sm:$0xff] }
 0x1f4   : > { %1925 = vmatmul.f32.gmra.mxu0 %v4519_v53  ;;  %2138 = vmatpush.msra.mxu1 %v612_v35  ;;  %v693_v30 = vld [vmem:[#allocation4 + $0x9c0] sm:$0xff]  ;;  %v846_v55 = vld [vmem:[#allocation4 + $0xe88] sm:$0xff] }
 0x1f5   : > { %5701 = vst [vmem:[#allocation43_spill] sm:$0xff] %v4655_v31  ;;  %2019 = vmatmul.f32.gmra.mxu2 %v4522_v52  ;;  %v1609_v1 = vpop.f32.mrf.mxu1  ;;  %v441_v52 = vld [vmem:[#allocation4 + $0x1e0] sm:$0xff]  ;;  %2233 = vmatpush.msra.mxu3 %v891_v27  ;;  %v558_v27 = vld [vmem:[#allocation4 + $0x588] sm:$0xff] }
 0x1f6   : > { %v1610_v38 = vadd.f32 %v1609_v1, %v1562_v40  ;;  %2187 = vmatpush.msra.mxu2 %v738_v3  ;;  %2094 = vmatpush.msra.mxu0 %v441_v52  ;;  %v567_v1 = vld [vmem:[#allocation4 + $0x5d0] sm:$0xff]  ;;  %v396_v3 = vld [vmem:[#allocation4 + $0x78] sm:$0xff]  ;;  %v794_v31 = vld [vmem:[#allocation4 + $0xce8] sm:$0xff] }
 0x1f7   : > { %2066 = vmatmul.f32.gmra.mxu3 %v4525_v51  ;;  %v729_v51 = vld [vmem:[#allocation4 + $0xae0] sm:$0xff]  ;;  %2139 = vmatpush.msra.mxu1 %v603_v36  ;;  %v684_v52 = vld [vmem:[#allocation4 + $0x978] sm:$0xff] }
 0x1f8   : > { %v1656_v5 = vpop.f32.mrf.mxu2  ;;  %1972 = vmatmul.f32.gmra.mxu1 %v4528_v63  ;;  %v4666_v63 = vld [vmem:[#allocation2 + $0xe0] sm:$0xff]  ;;  %2188 = vmatpush.msra.mxu2 %v729_v51  ;;  %v387_v51 = vld [vmem:[#allocation4 + $0x30] sm:$0xff] }
 0x1f9   : > { %v1657_v53 = vadd.f32 %v1656_v5, %v1610_v38  ;;  %v1565_v50 = vpop.f32.mrf.mxu0  ;;  %2234 = vmatpush.msra.mxu3 %v882_v0  ;;  %2095 = vmatpush.msra.mxu0 %v432_v17  ;;  %v4683_v5 = vld [vmem:[#allocation2 + $0xa0] sm:$0xff] }
 0x1fa   : > { %v1703_v41 = vpop.f32.mrf.mxu3  ;;  %2140 = vmatpush.msra.mxu1 %v594_v22  ;;  %2189 = vmatpush.msra.mxu2 %v720_v10  ;;  %v837_v36 = vld [vmem:[#allocation4 + $0xe40] sm:$0xff] }
 0x1fb   : > { %v4661_v21 = vadd.f32 %v1703_v41, %v1657_v53  ;;  %2235 = vmatpush.msra.mxu3 %v873_v4  ;;  %2096 = vmatpush.msra.mxu0 %v423_v26  ;;  %v549_v0 = vld [vmem:[#allocation4 + $0x540] sm:$0xff]  ;;  %v828_v4 = vld [vmem:[#allocation4 + $0xdf8] sm:$0xff]  ;;  %v4691_v26 = vld [vmem:[#allocation2 + $0x68] sm:$0xff] }
 0x1fc   : > { %1928 = vmatmul.f32.gmra.mxu0 %v4663_v13  ;;  %2141 = vmatpush.msra.mxu1 %v585_v2  ;;  %v4694_v2 = vld [vmem:[#allocation2 + $0x50] sm:$0xff] }
 0x1fd   : > { %5702 = vst [vmem:[#allocation44_spill] sm:$0xff] %v4661_v21  ;;  %2022 = vmatmul.f32.gmra.mxu2 %v4666_v63  ;;  %v1612_v16 = vpop.f32.mrf.mxu1  ;;  %2236 = vmatpush.msra.mxu3 %v864_v37  ;;  %v4765_v21 = vld [vmem:[#allocation2 + $0x18] sm:$0xff] }
 0x1fe   : > { %v1613_v25 = vadd.f32 %v1612_v16, %v1565_v50  ;;  %2190 = vmatpush.msra.mxu2 %v711_v56  ;;  %2097 = vmatpush.msra.mxu0 %v414_v24  ;;  %v4686_v50 = vld [vmem:[#allocation2 + $0x118] sm:$0xff]  ;;  %v675_v16 = vld [vmem:[#allocation4 + $0x930] sm:$0xff] }
 0x1ff   : > { %2069 = vmatmul.f32.gmra.mxu3 %v4669_v12  ;;  %2142 = vmatpush.msra.mxu1 %v576_v32  ;;  %v531_v24 = vld [vmem:[#allocation4 + $0x4b0] sm:$0xff] }
 0x200   : > { %v1659_v11 = vpop.f32.mrf.mxu2  ;;  %1975 = vmatmul.f32.gmra.mxu1 %v4672_v6  ;;  %2191 = vmatpush.msra.mxu2 %v702_v14 }
 0x201   : > { %v1660_v19 = vadd.f32 %v1659_v11, %v1613_v25  ;;  %v1726_v62 = vpop.f32.mrf.mxu0  ;;  %2237 = vmatpush.msra.mxu3 %v855_v43  ;;  %2098 = vmatpush.msra.mxu0 %v405_v45  ;;  %v540_v25 = vld [vmem:[#allocation4 + $0x4f8] sm:$0xff]  ;;  %v819_v11 = vld [vmem:[#allocation4 + $0xdb0] sm:$0xff] }
 0x202   : > { %v1706_v34 = vpop.f32.mrf.mxu3  ;;  %2143 = vmatpush.msra.mxu1 %v567_v1  ;;  %2192 = vmatpush.msra.mxu2 %v693_v30  ;;  %v4705_v1 = vld [vmem:[#allocation2 + $0x58] sm:$0xff]  ;;  %v4708_v30 = vld [vmem:[#allocation2 + $0x30] sm:$0xff] }
 0x203   : > { %v4675_v40 = vadd.f32 %v1706_v34, %v1660_v19  ;;  %2238 = vmatpush.msra.mxu3 %v846_v55  ;;  %2099 = vmatpush.msra.mxu0 %v396_v3  ;;  %v4697_v19 = vld [vmem:[#allocation2 + $0xe8] sm:$0xff]  ;;  %v523_v55 = vld [vmem:[#allocation4 + $0x470] sm:$0xff] }
 0x204   : > { %1931 = vmatmul.f32.gmra.mxu0 %v4677_v60  ;;  %2144 = vmatpush.msra.mxu1 %v558_v27  ;;  %v4711_v27 = vld [vmem:[#allocation2 + $0x40] sm:$0xff] }
 0x205   : > { %5703 = vst [vmem:[#allocation45_spill] sm:$0xff] %v4675_v40  ;;  %2025 = vmatmul.f32.gmra.mxu2 %v4680_v54  ;;  %v1773_v38 = vpop.f32.mrf.mxu1  ;;  %2239 = vmatpush.msra.mxu3 %v837_v36  ;;  %v802_v36 = vld [vmem:[#allocation4 + $0xd28] sm:$0xff] }
 0x206   : > { %v1774_v35 = vadd.f32 %v1773_v38, %v1726_v62  ;;  %2193 = vmatpush.msra.mxu2 %v684_v52  ;;  %2100 = vmatpush.msra.mxu0 %v387_v51  ;;  %v4700_v62 = vld [vmem:[#allocation2 + $0x130] sm:$0xff]  ;;  %v514_v52 = vld [vmem:[#allocation4 + $0x428] sm:$0xff] }
 0x207   : > { %2072 = vmatmul.f32.gmra.mxu3 %v4683_v5  ;;  %2145 = vmatpush.msra.mxu1 %v549_v0 }
 0x208   : > { %v1820_v53 = vpop.f32.mrf.mxu2  ;;  %1978 = vmatmul.f32.gmra.mxu1 %v4686_v50  ;;  %2194 = vmatpush.msra.mxu2 %v675_v16 }
 0x209   : > { %v1821_v41 = vadd.f32 %v1820_v53, %v1774_v35  ;;  %v1729_v22 = vpop.f32.mrf.mxu0  ;;  %2240 = vmatpush.msra.mxu3 %v828_v4  ;;  %2146 = vmatpush.msra.mxu1 %v540_v25  ;;  %v811_v35 = vld [vmem:[#allocation4 + $0xd70] sm:$0xff]  ;;  %v496_v4 = vld [vmem:[#allocation4 + $0x398] sm:$0xff] }
 0x20a   : > { %v1867_v17 = vpop.f32.mrf.mxu3  ;;  %2273 = vmatpush.msrb.mxu0 %v523_v55  ;;  %2367 = vmatpush.msrb.mxu2 %v811_v35  ;;  %v784_v25 = vld [vmem:[#allocation4 + $0xc98] sm:$0xff] }
 0x20b   : > { %v4689_v10 = vadd.f32 %v1867_v17, %v1821_v41  ;;  %2241 = vmatpush.msra.mxu3 %v819_v11  ;;  %2147 = vmatpush.msra.mxu1 %v531_v24  ;;  %v505_v17 = vld [vmem:[#allocation4 + $0x3e0] sm:$0xff]  ;;  %v460_v35 = vld [vmem:[#allocation4 + $0x278] sm:$0xff] }
 0x20c   : > { %1934 = vmatmul.f32.gmra.mxu0 %v4691_v26  ;;  %2368 = vmatpush.msrb.mxu2 %v802_v36  ;;  %v739_v36 = vld [vmem:[#allocation4 + $0xb30] sm:$0xff] }
 0x20d   : > { %2028 = vmatmul.f32.gmra.mxu2 %v4694_v2  ;;  %v1776_v56 = vpop.f32.mrf.mxu1  ;;  %2274 = vmatpush.msrb.mxu0 %v514_v52  ;;  %v451_v52 = vld [vmem:[#allocation4 + $0x230] sm:$0xff] }
 0x20e   : > { %v1777_v37 = vadd.f32 %v1776_v56, %v1729_v22  ;;  %v793_v22 = vld [vmem:[#allocation4 + $0xce0] sm:$0xff]  ;;  %v775_v56 = vld [vmem:[#allocation4 + $0xc50] sm:$0xff]  ;;  %2320 = vmatpush.msrb.mxu1 %v667_v33 }
 0x20f   : > { %2075 = vmatmul.f32.gmra.mxu3 %v4697_v19  ;;  %2275 = vmatpush.msrb.mxu0 %v505_v17  ;;  %v442_v17 = vld [vmem:[#allocation4 + $0x1e8] sm:$0xff]  ;;  %v649_v33 = vld [vmem:[#allocation4 + $0x860] sm:$0xff] }
 0x210   : > { %v1823_v32 = vpop.f32.mrf.mxu2  ;;  %1981 = vmatmul.f32.gmra.mxu1 %v4700_v62  ;;  %2369 = vmatpush.msrb.mxu2 %v793_v22  ;;  %v730_v22 = vld [vmem:[#allocation4 + $0xae8] sm:$0xff] }
 0x211   : > { %v1824_v34 = vadd.f32 %v1823_v32, %v1777_v37  ;;  %v1732_v43 = vpop.f32.mrf.mxu0  ;;  %2276 = vmatpush.msrb.mxu0 %v496_v4  ;;  %v478_v32 = vld [vmem:[#allocation4 + $0x308] sm:$0xff] }
 0x212   : > { %v1870_v14 = vpop.f32.mrf.mxu3  ;;  %2370 = vmatpush.msrb.mxu2 %v784_v25  ;;  %v4732_v25 = vld [vmem:[#allocation2 + $0xd0] sm:$0xff] }
 0x213   : > { %v4703_v45 = vadd.f32 %v1870_v14, %v1824_v34  ;;  %v766_v34 = vld [vmem:[#allocation4 + $0xc08] sm:$0xff] }
 0x214   : > { %1937 = vmatmul.f32.gmra.mxu0 %v4705_v1  ;;  %2371 = vmatpush.msrb.mxu2 %v775_v56  ;;  %v433_v56 = vld [vmem:[#allocation4 + $0x1a0] sm:$0xff] }
 0x215   : > { %2031 = vmatmul.f32.gmra.mxu2 %v4708_v30  ;;  %v1779_v38 = vpop.f32.mrf.mxu1 }
 0x216   : > { %v1780_v3 = vadd.f32 %v1779_v38, %v1732_v43  ;;  %2372 = vmatpush.msrb.mxu2 %v766_v34  ;;  %v757_v38 = vld [vmem:[#allocation4 + $0xbc0] sm:$0xff]  ;;  %v712_v34 = vld [vmem:[#allocation4 + $0xa58] sm:$0xff] }
 0x217   : > { %2078 = vmatmul.f32.gmra.mxu3 %v4711_v27 }
 0x218   : > { %v1826_v53 = vpop.f32.mrf.mxu2  ;;  %1984 = vmatmul.f32.gmra.mxu1 %v4554_v44  ;;  %v487_v44 = vld [vmem:[#allocation4 + $0x350] sm:$0xff]  ;;  %2373 = vmatpush.msrb.mxu2 %v757_v38 }
 0x219   : > { %v1827_v41 = vadd.f32 %v1826_v53, %v1780_v3  ;;  %v1735_v0 = vpop.f32.mrf.mxu0  ;;  %2277 = vmatpush.msrb.mxu0 %v487_v44  ;;  %v4723_v3 = vld [vmem:[#allocation2 + $0xb0] sm:$0xff] }
 0x21a   : > { %v1873_v51 = vpop.f32.mrf.mxu3  ;;  %v4726_v53 = vld [vmem:[#allocation2 + $0x10] sm:$0xff] }
 0x21b   : > { %v4715_v16 = vadd.f32 %v1873_v51, %v1827_v41  ;;  %2278 = vmatpush.msrb.mxu0 %v478_v32  ;;  %v4729_v51 = vld [vmem:[#allocation2 + $0x48] sm:$0xff]  ;;  %v424_v32 = vld [vmem:[#allocation4 + $0x158] sm:$0xff]  ;;  %v703_v38 = vld [vmem:[#allocation4 + $0xa10] sm:$0xff] }
 0x21c   : > { %1940 = vmatmul.f32.gmra.mxu0 %v4559_v15 }
 0x21d   : > { %2034 = vmatmul.f32.gmra.mxu2 %v4562_v29  ;;  %v1782_v11 = vpop.f32.mrf.mxu1  ;;  %v469_v29 = vld [vmem:[#allocation4 + $0x2c0] sm:$0xff] }
 0x21e   : > { %v1783_v37 = vadd.f32 %v1782_v11, %v1735_v0  ;;  %2279 = vmatpush.msrb.mxu0 %v469_v29  ;;  %v415_v29 = vld [vmem:[#allocation4 + $0x110] sm:$0xff] }
 0x21f   : > { %2081 = vmatmul.f32.gmra.mxu3 %v4565_v23  ;;  %v748_v23 = vld [vmem:[#allocation4 + $0xb78] sm:$0xff] }
 0x220   : > { %v1829_v24 = vpop.f32.mrf.mxu2  ;;  %1987 = vmatmul.f32.gmra.mxu1 %v4568_v8  ;;  %2280 = vmatpush.msrb.mxu0 %v460_v35 }
 0x221   : > { %v1830_v14 = vadd.f32 %v1829_v24, %v1783_v37  ;;  %v1738_v15 = vpop.f32.mrf.mxu0  ;;  %2374 = vmatpush.msrb.mxu2 %v748_v23  ;;  %v721_v37 = vld [vmem:[#allocation4 + $0xaa0] sm:$0xff] }
 0x222   : > { %v1876_v43 = vpop.f32.mrf.mxu3  ;;  %2281 = vmatpush.msrb.mxu0 %v451_v52  ;;  %v4743_v23 = vld [vmem:[#allocation2 + $0x100] sm:$0xff]  ;;  %v406_v52 = vld [vmem:[#allocation4 + $0xc8] sm:$0xff] }
 0x223   : > { %v4721_v55 = vadd.f32 %v1876_v43, %v1830_v14  ;;  %2375 = vmatpush.msrb.mxu2 %v739_v36  ;;  %v4737_v14 = vld [vmem:[#allocation2 + $0x120] sm:$0xff]  ;;  %v4740_v43 = vld [vmem:[#allocation2 + $0xf8] sm:$0xff]  ;;  %v694_v36 = vld [vmem:[#allocation4 + $0x9c8] sm:$0xff] }
 0x224   : > { %2101 = vmatmul.f32.vlgmr.msra.gmra.mxu0 %v4723_v3 }
 0x225   : > { %2195 = vmatmul.f32.vlgmr.msra.gmra.mxu2 %v4726_v53  ;;  %v1785_v8 = vpop.f32.mrf.mxu1  ;;  %2282 = vmatpush.msrb.mxu0 %v442_v17 }
 0x226   : > { %v1786_v41 = vadd.f32 %v1785_v8, %v1738_v15  ;;  %2376 = vmatpush.msrb.mxu2 %v730_v22 }
 0x227   : > { %2242 = vmatmul.f32.vlgmr.msra.gmra.mxu3 %v4729_v51  ;;  %2283 = vmatpush.msrb.mxu0 %v433_v56  ;;  %v388_v56 = vld [vmem:[#allocation4 + $0x38] sm:$0xff] }
 0x228   : > { %v1832_v0 = vpop.f32.mrf.mxu2  ;;  %2148 = vmatmul.f32.vlgmr.msra.gmra.mxu1 %v4732_v25  ;;  %2377 = vmatpush.msrb.mxu2 %v721_v37  ;;  %v676_v37 = vld [vmem:[#allocation4 + $0x938] sm:$0xff] }
 0x229   : > { %v1833_v4 = vadd.f32 %v1832_v0, %v1786_v41  ;;  %v1741_v44 = vpop.f32.mrf.mxu0  ;;  %2284 = vmatpush.msrb.mxu0 %v424_v32  ;;  %v4746_v0 = vld [vmem:[#allocation2 + $0x38] sm:$0xff]  ;;  %v4751_v32 = vld [vmem:[#allocation2 + $0x80] sm:$0xff] }
 0x22a   : > { %v1879_v11 = vpop.f32.mrf.mxu3  ;;  %2378 = vmatpush.msrb.mxu2 %v712_v34  ;;  %v4754_v34 = vld [vmem:[#allocation2 + $0x138] sm:$0xff] }
 0x22b   : > { %v4735_v24 = vadd.f32 %v1879_v11, %v1833_v4  ;;  %2285 = vmatpush.msrb.mxu0 %v415_v29  ;;  %v397_v4 = vld [vmem:[#allocation4 + $0x80] sm:$0xff]  ;;  %v812_v29 = vld [vmem:[#allocation4 + $0xd78] sm:$0xff] }
 0x22c   : > { %2104 = vmatmul.f32.gmra.mxu0 %v4737_v14  ;;  %2379 = vmatpush.msrb.mxu2 %v703_v38  ;;  %v685_v11 = vld [vmem:[#allocation4 + $0x980] sm:$0xff] }
 0x22d   : > { %2198 = vmatmul.f32.gmra.mxu2 %v4740_v43  ;;  %v1788_v15 = vpop.f32.mrf.mxu1  ;;  %2286 = vmatpush.msrb.mxu0 %v406_v52  ;;  %v955_v52 = vld [vmem:[#allocation4 + $0x11f0] sm:$0xff] }
 0x22e   : > { %v1789_v35 = vadd.f32 %v1788_v15, %v1741_v44  ;;  %2380 = vmatpush.msrb.mxu2 %v694_v36  ;;  %v524_v15 = vld [vmem:[#allocation4 + $0x478] sm:$0xff]  ;;  %v515_v36 = vld [vmem:[#allocation4 + $0x430] sm:$0xff]  ;;  %2414 = vmatpush.msrb.mxu3 %v955_v52  ;;  %v658_v52 = vld [vmem:[#allocation4 + $0x8a8] sm:$0xff] }
 0x22f   : > { %2245 = vmatmul.f32.gmra.mxu3 %v4743_v23  ;;  %2287 = vmatpush.msrb.mxu0 %v397_v4 }
 0x230   : > { %v1835_v8 = vpop.f32.mrf.mxu2  ;;  %2151 = vmatmul.f32.gmra.mxu1 %v4746_v0  ;;  %2381 = vmatpush.msrb.mxu2 %v685_v11  ;;  %v4760_v11 = vld [vmem:[#allocation2 + $0x108] sm:$0xff] }
 0x231   : > { %v1836_v41 = vadd.f32 %v1835_v8, %v1789_v35  ;;  %v1744_v22 = vpop.f32.mrf.mxu0  ;;  %2288 = vmatpush.msrb.mxu0 %v388_v56  ;;  %v4757_v8 = vld [vmem:[#allocation2 + $0xf0] sm:$0xff]  ;;  %v946_v56 = vld [vmem:[#allocation4 + $0x11a8] sm:$0xff]  ;;  %2321 = vmatpush.msrb.mxu1 %v658_v52  ;;  %v640_v52 = vld [vmem:[#allocation4 + $0x818] sm:$0xff] }
 0x232   : > { %v1882_v17 = vpop.f32.mrf.mxu3  ;;  %2382 = vmatpush.msrb.mxu2 %v676_v37  ;;  %2415 = vmatpush.msrb.mxu3 %v946_v56  ;;  %v488_v56 = vld [vmem:[#allocation4 + $0x358] sm:$0xff] }
 0x233   : > { %v4749_v44 = vadd.f32 %v1882_v17, %v1836_v41  ;;  %2461 = vmatpush.msra.mxu0 %v524_v15  ;;  %v803_v41 = vld [vmem:[#allocation4 + $0xd30] sm:$0xff]  ;;  %2322 = vmatpush.msrb.mxu1 %v649_v33  ;;  %v910_v33 = vld [vmem:[#allocation4 + $0x1088] sm:$0xff] }
 0x234   : > { %2107 = vmatmul.f32.gmra.mxu0 %v4751_v32  ;;  %2555 = vmatpush.msra.mxu2 %v812_v29  ;;  %v937_v29 = vld [vmem:[#allocation4 + $0x1160] sm:$0xff] }
 0x235   : > { %5704 = vst [vmem:[#allocation46_spill] sm:$0xff] %v4749_v44  ;;  %2201 = vmatmul.f32.gmra.mxu2 %v4754_v34  ;;  %v1791_v38 = vpop.f32.mrf.mxu1  ;;  %2462 = vmatpush.msra.mxu0 %v515_v36  ;;  %v4768_v36 = vld [vmem:[#allocation2 + $0x70] sm:$0xff] }
 0x236   : > { %v1792_v35 = vadd.f32 %v1791_v38, %v1744_v22  ;;  %v506_v22 = vld [vmem:[#allocation4 + $0x3e8] sm:$0xff]  ;;  %2556 = vmatpush.msra.mxu2 %v803_v41  ;;  %v928_v41 = vld [vmem:[#allocation4 + $0x1118] sm:$0xff]  ;;  %2416 = vmatpush.msrb.mxu3 %v937_v29  ;;  %v919_v44 = vld [vmem:[#allocation4 + $0x10d0] sm:$0xff] }
 0x237   : > { %2248 = vmatmul.f32.gmra.mxu3 %v4757_v8  ;;  %2463 = vmatpush.msra.mxu0 %v506_v22  ;;  %v767_v29 = vld [vmem:[#allocation4 + $0xc10] sm:$0xff] }
 0x238   : > { %v1838_v17 = vpop.f32.mrf.mxu2  ;;  %2154 = vmatmul.f32.gmra.mxu1 %v4760_v11  ;;  %2557 = vmatpush.msra.mxu2 %v794_v31  ;;  %v776_v31 = vld [vmem:[#allocation4 + $0xc58] sm:$0xff] }
 0x239   : > { %v1839_v4 = vadd.f32 %v1838_v17, %v1792_v35  ;;  %v1747_v38 = vpop.f32.mrf.mxu0  ;;  %v497_v35 = vld [vmem:[#allocation4 + $0x3a0] sm:$0xff]  ;;  %2417 = vmatpush.msrb.mxu3 %v928_v41  ;;  %2323 = vmatpush.msrb.mxu1 %v640_v52  ;;  %v470_v41 = vld [vmem:[#allocation4 + $0x2c8] sm:$0xff] }
 0x23a   : > { %v1885_v37 = vpop.f32.mrf.mxu3  ;;  %v785_v17 = vld [vmem:[#allocation4 + $0xca0] sm:$0xff]  ;;  %2464 = vmatpush.msra.mxu0 %v497_v35 }
 0x23b   : > { %v4763_v15 = vadd.f32 %v1885_v37, %v1839_v4  ;;  %v4771_v37 = vld [vmem:[#allocation2 + $0x20] sm:$0xff]  ;;  %2558 = vmatpush.msra.mxu2 %v785_v17  ;;  %2418 = vmatpush.msrb.mxu3 %v919_v44 }
 0x23c   : > { %2110 = vmatmul.f32.gmra.mxu0 %v4765_v21 }
 0x23d   : > { %5705 = vst [vmem:[#allocation47_spill] sm:$0xff] %v4763_v15  ;;  %2204 = vmatmul.f32.gmra.mxu2 %v4768_v36  ;;  %v1794_v4 = vpop.f32.mrf.mxu1  ;;  %v479_v15 = vld [vmem:[#allocation4 + $0x310] sm:$0xff]  ;;  %2465 = vmatpush.msra.mxu0 %v488_v56  ;;  %v4782_v56 = vld [vmem:[#allocation2 + $0x8] sm:$0xff] }
 0x23e   : > { %v1795_v22 = vadd.f32 %v1794_v4, %v1747_v38  ;;  %v631_v38 = vld [vmem:[#allocation4 + $0x7d0] sm:$0xff]  ;;  %2559 = vmatpush.msra.mxu2 %v776_v31  ;;  %v901_v31 = vld [vmem:[#allocation4 + $0x1040] sm:$0xff]  ;;  %2419 = vmatpush.msrb.mxu3 %v910_v33  ;;  %v740_v33 = vld [vmem:[#allocation4 + $0xb38] sm:$0xff] }
 0x23f   : > { %2251 = vmatmul.f32.gmra.mxu3 %v4771_v37  ;;  %2466 = vmatpush.msra.mxu0 %v479_v15  ;;  %v4785_v15 = vld [vmem:[#allocation2 + $0x98] sm:$0xff] }
 0x240   : > { %v1841_v40 = vpop.f32.mrf.mxu2  ;;  %2157 = vmatmul.f32.gmra.mxu1 %v4774_v42  ;;  %2560 = vmatpush.msra.mxu2 %v767_v29  ;;  %5707 = vst [vmem:[#allocation49_spill] sm:$0xff] %v4785_v15  ;;  %v749_v29 = vld [vmem:[#allocation4 + $0xb80] sm:$0xff] }
 0x241   : > { %v1842_v58 = vadd.f32 %v1841_v40, %v1795_v22  ;;  %v1750_v4 = vpop.f32.mrf.mxu0  ;;  %2324 = vmatpush.msrb.mxu1 %v631_v38  ;;  %v758_v40 = vld [vmem:[#allocation4 + $0xbc8] sm:$0xff]  ;;  %2467 = vmatpush.msra.mxu0 %v470_v41  ;;  %v613_v38 = vld [vmem:[#allocation4 + $0x740] sm:$0xff] }
 0x242   : > { %v1888_v35 = vpop.f32.mrf.mxu3  ;;  %v4779_v22 = vld [vmem:[#allocation2 + $0x128] sm:$0xff]  ;;  %2561 = vmatpush.msra.mxu2 %v758_v40  ;;  %2420 = vmatpush.msrb.mxu3 %v901_v31  ;;  %v443_v31 = vld [vmem:[#allocation4 + $0x1f0] sm:$0xff] }
 0x243   : > { %v4777_v17 = vadd.f32 %v1888_v35, %v1842_v58  ;;  %v461_v58 = vld [vmem:[#allocation4 + $0x280] sm:$0xff]  ;;  %2325 = vmatpush.msrb.mxu1 %v622_v47  ;;  %v883_v47 = vld [vmem:[#allocation4 + $0xfb0] sm:$0xff] }
 0x244   : > { %2113 = vmatmul.f32.gmra.mxu0 %v4779_v22  ;;  %2562 = vmatpush.msra.mxu2 %v749_v29  ;;  %v434_v29 = vld [vmem:[#allocation4 + $0x1a8] sm:$0xff] }
 0x245   : > { %5706 = vst [vmem:[#allocation48_spill] sm:$0xff] %v4777_v17  ;;  %2207 = vmatmul.f32.gmra.mxu2 %v4782_v56  ;;  %v1797_v52 = vpop.f32.mrf.mxu1  ;;  %v892_v17 = vld [vmem:[#allocation4 + $0xff8] sm:$0xff]  ;;  %2468 = vmatpush.msra.mxu0 %v461_v58  ;;  %v595_v58 = vld [vmem:[#allocation4 + $0x6b0] sm:$0xff] }
 0x246   : > { %v1798_v44 = vadd.f32 %v1797_v52, %v1750_v4  ;;  %v604_v4 = vld [vmem:[#allocation4 + $0x6f8] sm:$0xff]  ;;  %2326 = vmatpush.msrb.mxu1 %v613_v38  ;;  %2421 = vmatpush.msrb.mxu3 %v892_v17 }
 0x247   : > { %2254 = vmatmul.f32.gmra.mxu3 %v4785_v15  ;;  %2469 = vmatpush.msra.mxu0 %v452_v18  ;;  %v722_v18 = vld [vmem:[#allocation4 + $0xaa8] sm:$0xff] }
 0x248   : > { %v1844_v35 = vpop.f32.mrf.mxu2  ;;  %2160 = vmatmul.f32.gmra.mxu1 %v4788_v49  ;;  %2563 = vmatpush.msra.mxu2 %v740_v33  ;;  %v865_v33 = vld [vmem:[#allocation4 + $0xf20] sm:$0xff] }
 0x249   : > { %v1845_v28 = vadd.f32 %v1844_v35, %v1798_v44  ;;  %v1753_v52 = vpop.f32.mrf.mxu0  ;;  %2327 = vmatpush.msrb.mxu1 %v604_v4  ;;  %v731_v44 = vld [vmem:[#allocation4 + $0xaf0] sm:$0xff]  ;;  %v874_v35 = vld [vmem:[#allocation4 + $0xf68] sm:$0xff]  ;;  %2422 = vmatpush.msrb.mxu3 %v883_v47  ;;  %v425_v4 = vld [vmem:[#allocation4 + $0x160] sm:$0xff] }
 0x24a   : > { %v1891_v41 = vpop.f32.mrf.mxu3  ;;  %2470 = vmatpush.msra.mxu0 %v443_v31  ;;  %2564 = vmatpush.msra.mxu2 %v731_v44  ;;  %v704_v44 = vld [vmem:[#allocation4 + $0xa18] sm:$0xff] }
 0x24b   : > { %v4791_v40 = vadd.f32 %v1891_v41, %v1845_v28  ;;  %v586_v28 = vld [vmem:[#allocation4 + $0x668] sm:$0xff]  ;;  %2328 = vmatpush.msrb.mxu1 %v595_v58  ;;  %2423 = vmatpush.msrb.mxu3 %v874_v35  ;;  %v577_v41 = vld [vmem:[#allocation4 + $0x620] sm:$0xff]  ;;  %v847_v58 = vld [vmem:[#allocation4 + $0xe90] sm:$0xff] }
 0x24c   : > { %2116 = vmatmul.f32.gmra.mxu0 %v4663_v13  ;;  %2565 = vmatpush.msra.mxu2 %v722_v18  ;;  %v695_v18 = vld [vmem:[#allocation4 + $0x9d0] sm:$0xff] }
 0x24d   : > { %5709 = vst [vmem:[#allocation51_spill] sm:$0xff] %v4791_v40  ;;  %2210 = vmatmul.f32.gmra.mxu2 %v4666_v63  ;;  %v1800_v48 = vpop.f32.mrf.mxu1  ;;  %2471 = vmatpush.msra.mxu0 %v434_v29  ;;  %v713_v63 = vld [vmem:[#allocation4 + $0xa60] sm:$0xff]  ;;  %v407_v29 = vld [vmem:[#allocation4 + $0xd0] sm:$0xff] }
 0x24e   : > { %v1801_v38 = vadd.f32 %v1800_v48, %v1753_v52  ;;  %2329 = vmatpush.msrb.mxu1 %v586_v28  ;;  %2424 = vmatpush.msrb.mxu3 %v865_v33  ;;  %v416_v52 = vld [vmem:[#allocation4 + $0x118] sm:$0xff]  ;;  %v559_v28 = vld [vmem:[#allocation4 + $0x590] sm:$0xff]  ;;  %v838_v33 = vld [vmem:[#allocation4 + $0xe48] sm:$0xff] }
 0x24f   : > { %2257 = vmatmul.f32.gmra.mxu3 %v4669_v12  ;;  %2472 = vmatpush.msra.mxu0 %v425_v4  ;;  %v856_v12 = vld [vmem:[#allocation4 + $0xed8] sm:$0xff]  ;;  %v398_v4 = vld [vmem:[#allocation4 + $0x88] sm:$0xff] }
 0x250   : > { %v1847_v17 = vpop.f32.mrf.mxu2  ;;  %2163 = vmatmul.f32.gmra.mxu1 %v4672_v6  ;;  %2566 = vmatpush.msra.mxu2 %v713_v63  ;;  %v568_v6 = vld [vmem:[#allocation4 + $0x5d8] sm:$0xff] }
 0x251   : > { %v1848_v13 = vadd.f32 %v1847_v17, %v1801_v38  ;;  %v1914_v31 = vpop.f32.mrf.mxu0  ;;  %2330 = vmatpush.msrb.mxu1 %v577_v41  ;;  %2425 = vmatpush.msrb.mxu3 %v856_v12  ;;  %v677_v12 = vld [vmem:[#allocation4 + $0x940] sm:$0xff] }
 0x252   : > { %v1894_v47 = vpop.f32.mrf.mxu3  ;;  %2473 = vmatpush.msra.mxu0 %v416_v52  ;;  %2567 = vmatpush.msra.mxu2 %v704_v44  ;;  %v820_v52 = vld [vmem:[#allocation4 + $0xdb8] sm:$0xff] }
 0x253   : > { %v4797_v48 = vadd.f32 %v1894_v47, %v1848_v13  ;;  %2331 = vmatpush.msrb.mxu1 %v568_v6  ;;  %2426 = vmatpush.msrb.mxu3 %v847_v58  ;;  %v550_v13 = vld [vmem:[#allocation4 + $0x548] sm:$0xff]  ;;  %v532_v58 = vld [vmem:[#allocation4 + $0x4b8] sm:$0xff] }
 0x254   : > { %2119 = vmatmul.f32.gmra.mxu0 %v4677_v60  ;;  %2568 = vmatpush.msra.mxu2 %v695_v18 }
 0x255   : > { %5710 = vst [vmem:[#allocation52_spill] sm:$0xff] %v4797_v48  ;;  %2213 = vmatmul.f32.gmra.mxu2 %v4680_v54  ;;  %v1961_v35 = vpop.f32.mrf.mxu1  ;;  %2474 = vmatpush.msra.mxu0 %v407_v29  ;;  %v686_v54 = vld [vmem:[#allocation4 + $0x988] sm:$0xff]  ;;  %v4930_v48 = vld [vmem:[#allocation2 + $0x118] sm:$0xff] }
 0x256   : > { %v1962_v38 = vadd.f32 %v1961_v35, %v1914_v31  ;;  %2332 = vmatpush.msrb.mxu1 %v559_v28  ;;  %2427 = vmatpush.msrb.mxu3 %v838_v33  ;;  %v389_v31 = vld [vmem:[#allocation4 + $0x40] sm:$0xff]  ;;  %5728 = vst [vmem:[#allocation54_spill] sm:$0xff] %v4930_v48 }
 0x257   : > { %2260 = vmatmul.f32.gmra.mxu3 %v4683_v5  ;;  %2475 = vmatpush.msra.mxu0 %v398_v4  ;;  %v829_v5 = vld [vmem:[#allocation4 + $0xe00] sm:$0xff] }
 0x258   : > { %v2008_v17 = vpop.f32.mrf.mxu2  ;;  %2166 = vmatmul.f32.gmra.mxu1 %v4686_v50  ;;  %2569 = vmatpush.msra.mxu2 %v686_v54  ;;  %v541_v50 = vld [vmem:[#allocation4 + $0x500] sm:$0xff]  ;;  %v4814_v54 = vld [vmem:[#allocation2 + $0x78] sm:$0xff] }
 0x259   : > { %v2009_v60 = vadd.f32 %v2008_v17, %v1962_v38  ;;  %v1917_v41 = vpop.f32.mrf.mxu0  ;;  %2333 = vmatpush.msrb.mxu1 %v550_v13  ;;  %2428 = vmatpush.msrb.mxu3 %v829_v5  ;;  %v4819_v5 = vld [vmem:[#allocation2 + $0x28] sm:$0xff] }
 0x25a   : > { %v2055_v63 = vpop.f32.mrf.mxu3  ;;  %2476 = vmatpush.msra.mxu0 %v389_v31  ;;  %2570 = vmatpush.msra.mxu2 %v677_v12  ;;  %v4822_v31 = vld [vmem:[#allocation2 + $0xb8] sm:$0xff] }
 0x25b   : > { %v4803_v47 = vadd.f32 %v2055_v63, %v2009_v60  ;;  %2334 = vmatpush.msrb.mxu1 %v541_v50  ;;  %2429 = vmatpush.msrb.mxu3 %v820_v52  ;;  %v4825_v52 = vld [vmem:[#allocation2 + $0x60] sm:$0xff] }
 0x25c   : > { %2122 = vmatmul.f32.gmra.mxu0 %v4691_v26 }
 0x25d   : > { %2216 = vmatmul.f32.gmra.mxu2 %v4694_v2  ;;  %v1964_v44 = vpop.f32.mrf.mxu1  ;;  %2335 = vmatpush.msrb.mxu1 %v532_v58  ;;  %v4828_v58 = vld [vmem:[#allocation2] sm:$0xff] }
 0x25e   : > { %v1965_v6 = vadd.f32 %v1964_v44, %v1917_v41 }
 0x25f   : > { %2263 = vmatmul.f32.gmra.mxu3 %v4697_v19 }
 0x260   : > { %v2011_v35 = vpop.f32.mrf.mxu2  ;;  %2169 = vmatmul.f32.gmra.mxu1 %v4700_v62 }
 0x261   : > { %v2012_v29 = vadd.f32 %v2011_v35, %v1965_v6  ;;  %v1920_v18 = vpop.f32.mrf.mxu0 }
 0x262   : > { %v2058_v38 = vpop.f32.mrf.mxu3 }
 0x263   : > { %v4809_v28 = vadd.f32 %v2058_v38, %v2012_v29 }
 0x264   : > { %2125 = vmatmul.f32.gmra.mxu0 %v4705_v1 }
 0x265   : > { %2219 = vmatmul.f32.gmra.mxu2 %v4708_v30  ;;  %v1967_v17 = vpop.f32.mrf.mxu1 }
 0x266   : > { %v1968_v33 = vadd.f32 %v1967_v17, %v1920_v18  ;;  %v668_v17 = vld [vmem:[#allocation4 + $0x8f8] sm:$0xff] }
 0x267   : > { %2266 = vmatmul.f32.gmra.mxu3 %v4711_v27  ;;  %2508 = vmatpush.msra.mxu1 %v668_v17 }
 0x268   : > { %v2014_v4 = vpop.f32.mrf.mxu2  ;;  %2172 = vmatmul.f32.gmra.mxu1 %v4814_v54 }
 0x269   : > { %v2015_v60 = vadd.f32 %v2014_v4, %v1968_v33  ;;  %v1923_v63 = vpop.f32.mrf.mxu0  ;;  %v956_v33 = vld [vmem:[#allocation4 + $0x11f8] sm:$0xff] }
 0x26a   : > { %v2061_v13 = vpop.f32.mrf.mxu3  ;;  %2602 = vmatpush.msra.mxu3 %v956_v33 }
 0x26b   : > { %v4817_v41 = vadd.f32 %v2061_v13, %v2015_v60  ;;  %v659_v60 = vld [vmem:[#allocation4 + $0x8b0] sm:$0xff] }
 0x26c   : > { %2128 = vmatmul.f32.gmra.mxu0 %v4819_v5  ;;  %v947_v13 = vld [vmem:[#allocation4 + $0x11b0] sm:$0xff]  ;;  %2509 = vmatpush.msra.mxu1 %v659_v60 }
 0x26d   : > { %2222 = vmatmul.f32.gmra.mxu2 %v4822_v31  ;;  %v1970_v12 = vpop.f32.mrf.mxu1  ;;  %2603 = vmatpush.msra.mxu3 %v947_v13  ;;  %v5712_v60 = vld [vmem:[#allocation26_spill] sm:$0xff]  ;;  %v920_v13 = vld [vmem:[#allocation4 + $0x10d8] sm:$0xff] }
 0x26e   : > { %v1971_v50 = vadd.f32 %v1970_v12, %v1923_v63 }
 0x26f   : > { %2269 = vmatmul.f32.gmra.mxu3 %v4825_v52 }
 0x270   : > { %v2017_v44 = vpop.f32.mrf.mxu2  ;;  %2175 = vmatmul.f32.gmra.mxu1 %v4828_v58 }
 0x271   : > { %v2018_v6 = vadd.f32 %v2017_v44, %v1971_v50  ;;  %v4831_v29 = vpop.f32.mrf.mxu0  ;;  %v641_v44 = vld [vmem:[#allocation4 + $0x820] sm:$0xff] }
 0x272   : > { %v2064_v35 = vpop.f32.mrf.mxu3 }
 0x273   : > { %v4833_v38 = vadd.f32 %v2064_v35, %v2018_v6  ;;  %v929_v6 = vld [vmem:[#allocation4 + $0x1120] sm:$0xff] }
 0x274   : > { %2289 = vmatmul.f32.vlgmr.msrb.gmra.mxu0 %v4723_v3 }
 0x275   : > { %2383 = vmatmul.f32.vlgmr.msrb.gmra.mxu2 %v4726_v53  ;;  %2974 = vmatpush.msrb.mxu0 %v4613_v9  ;;  %v4839_v18 = vpop.f32.mrf.mxu1 }
 0x276   : > { %3621 = vmatpush.msrb.mxu2 %v4613_v9 }
 0x277   : > { %2430 = vmatmul.f32.vlgmr.msrb.gmra.mxu3 %v4729_v51  ;;  %2975 = vmatpush.msrb.mxu0 %v4577_v39 }
 0x278   : > { %3622 = vmatpush.msrb.mxu2 %v4577_v39  ;;  %v4844_v4 = vpop.f32.mrf.mxu2  ;;  %2336 = vmatmul.f32.vlgmr.msrb.gmra.mxu1 %v4732_v25  ;;  %v650_v39 = vld [vmem:[#allocation4 + $0x868] sm:$0xff] }
 0x279   : > { %2976 = vmatpush.msrb.mxu0 %v4571_v46  ;;  %v1929_v63 = vpop.f32.mrf.mxu0  ;;  %2510 = vmatpush.msra.mxu1 %v650_v39  ;;  %v5713_v39 = vld [vmem:[#allocation25_spill] sm:$0xff] }
 0x27a   : > { %3623 = vmatpush.msrb.mxu2 %v4571_v46  ;;  %v4849_v9 = vpop.f32.mrf.mxu3  ;;  %v938_v46 = vld [vmem:[#allocation4 + $0x1168] sm:$0xff] }
 0x27b   : > { %2977 = vmatpush.msrb.mxu0 %v4557_v20  ;;  %2604 = vmatpush.msra.mxu3 %v938_v46  ;;  %v911_v46 = vld [vmem:[#allocation4 + $0x1090] sm:$0xff] }
 0x27c   : > { %3624 = vmatpush.msrb.mxu2 %v4557_v20  ;;  %2292 = vmatmul.f32.gmra.mxu0 %v4737_v14 }
 0x27d   : > { %2386 = vmatmul.f32.gmra.mxu2 %v4740_v43  ;;  %2978 = vmatpush.msrb.mxu0 %v4549_v57  ;;  %v1976_v12 = vpop.f32.mrf.mxu1 }
 0x27e   : > { %3625 = vmatpush.msrb.mxu2 %v4549_v57  ;;  %v1977_v50 = vadd.f32 %v1976_v12, %v1929_v63  ;;  %2511 = vmatpush.msra.mxu1 %v641_v44  ;;  %v623_v12 = vld [vmem:[#allocation4 + $0x790] sm:$0xff] }
 0x27f   : > { %2433 = vmatmul.f32.gmra.mxu3 %v4743_v23  ;;  %2979 = vmatpush.msrb.mxu0 %v4543_v59 }
 0x280   : > { %3626 = vmatpush.msrb.mxu2 %v4543_v59  ;;  %v2023_v20 = vpop.f32.mrf.mxu2  ;;  %2339 = vmatmul.f32.gmra.mxu1 %v4746_v0  ;;  %v632_v59 = vld [vmem:[#allocation4 + $0x7d8] sm:$0xff] }
 0x281   : > { %v2024_v35 = vadd.f32 %v2023_v20, %v1977_v50  ;;  %2980 = vmatpush.msrb.mxu0 %v4475_v7  ;;  %v1932_v17 = vpop.f32.mrf.mxu0  ;;  %2605 = vmatpush.msra.mxu3 %v929_v6  ;;  %v5714_v20 = vld [vmem:[#allocation24_spill] sm:$0xff] }
 0x282   : > { %3627 = vmatpush.msrb.mxu2 %v4475_v7  ;;  %v2070_v57 = vpop.f32.mrf.mxu3  ;;  %2512 = vmatpush.msra.mxu1 %v632_v59  ;;  %v5717_v59 = vld [vmem:[#allocation17_spill] sm:$0xff] }
 0x283   : > { %v4863_v33 = vadd.f32 %v2070_v57, %v2024_v35  ;;  %2981 = vmatpush.msrb.mxu0 %v4461_v61  ;;  %2606 = vmatpush.msra.mxu3 %v920_v13  ;;  %v5716_v57 = vld [vmem:[#allocation18_spill] sm:$0xff] }
 0x284   : > { %3628 = vmatpush.msrb.mxu2 %v4461_v61  ;;  %2295 = vmatmul.f32.gmra.mxu0 %v4751_v32 }
 0x285   : > { %5711 = vst [vmem:[#allocation53_spill] sm:$0xff] %v4863_v33  ;;  %2389 = vmatmul.f32.gmra.mxu2 %v4754_v34  ;;  %2982 = vmatpush.msrb.mxu0 %v5712_v60  ;;  %v1979_v7 = vpop.f32.mrf.mxu1 }
 0x286   : > { %3629 = vmatpush.msrb.mxu2 %v5712_v60  ;;  %v1980_v63 = vadd.f32 %v1979_v7, %v1932_v17  ;;  %2513 = vmatpush.msra.mxu1 %v623_v12  ;;  %v614_v17 = vld [vmem:[#allocation4 + $0x748] sm:$0xff]  ;;  %v893_v12 = vld [vmem:[#allocation4 + $0x1000] sm:$0xff] }
 0x287   : > { %2436 = vmatmul.f32.gmra.mxu3 %v4757_v8  ;;  %2983 = vmatpush.msrb.mxu0 %v5713_v39  ;;  %v902_v7 = vld [vmem:[#allocation4 + $0x1048] sm:$0xff] }
 0x288   : > { %3630 = vmatpush.msrb.mxu2 %v5713_v39  ;;  %v2026_v61 = vpop.f32.mrf.mxu2  ;;  %2342 = vmatmul.f32.gmra.mxu1 %v4760_v11 }
 0x289   : > { %v2027_v50 = vadd.f32 %v2026_v61, %v1980_v63  ;;  %2984 = vmatpush.msrb.mxu0 %v5714_v20  ;;  %v1935_v6 = vpop.f32.mrf.mxu0  ;;  %2607 = vmatpush.msra.mxu3 %v911_v46  ;;  %v5718_v63 = vld [vmem:[#allocation16_spill] sm:$0xff] }
 0x28a   : > { %3631 = vmatpush.msrb.mxu2 %v5714_v20  ;;  %v2073_v44 = vpop.f32.mrf.mxu3  ;;  %2514 = vmatpush.msra.mxu1 %v614_v17  ;;  %v605_v61 = vld [vmem:[#allocation4 + $0x700] sm:$0xff]  ;;  %v884_v17 = vld [vmem:[#allocation4 + $0xfb8] sm:$0xff] }
 0x28b   : > { %v4877_v35 = vadd.f32 %v2073_v44, %v2027_v50  ;;  %2985 = vmatpush.msrb.mxu0 %v5716_v57  ;;  %2608 = vmatpush.msra.mxu3 %v902_v7  ;;  %v5719_v50 = vld [vmem:[#allocation15_spill] sm:$0xff]  ;;  %v875_v7 = vld [vmem:[#allocation4 + $0xf70] sm:$0xff] }
 0x28c   : > { %3632 = vmatpush.msrb.mxu2 %v5716_v57  ;;  %2298 = vmatmul.f32.gmra.mxu0 %v4765_v21  ;;  %v596_v57 = vld [vmem:[#allocation4 + $0x6b8] sm:$0xff] }
 0x28d   : > { %5715 = vst [vmem:[#allocation26_spill] sm:$0xff] %v4877_v35  ;;  %2392 = vmatmul.f32.gmra.mxu2 %v4768_v36  ;;  %2986 = vmatpush.msrb.mxu0 %v5717_v59  ;;  %v1982_v60 = vpop.f32.mrf.mxu1 }
 0x28e   : > { %3633 = vmatpush.msrb.mxu2 %v5717_v59  ;;  %v1983_v13 = vadd.f32 %v1982_v60, %v1935_v6  ;;  %2515 = vmatpush.msra.mxu1 %v605_v61  ;;  %v5720_v59 = vld [vmem:[#allocation14_spill] sm:$0xff]  ;;  %v866_v61 = vld [vmem:[#allocation4 + $0xf28] sm:$0xff] }
 0x28f   : > { %2439 = vmatmul.f32.gmra.mxu3 %v4771_v37  ;;  %2987 = vmatpush.msrb.mxu0 %v5718_v63  ;;  %v587_v60 = vld [vmem:[#allocation4 + $0x670] sm:$0xff] }
 0x290   : > { %3634 = vmatpush.msrb.mxu2 %v5718_v63  ;;  %v2029_v39 = vpop.f32.mrf.mxu2  ;;  %2345 = vmatmul.f32.gmra.mxu1 %v4774_v42 }
 0x291   : > { %v2030_v46 = vadd.f32 %v2029_v39, %v1983_v13  ;;  %2988 = vmatpush.msrb.mxu0 %v5719_v50  ;;  %v1938_v44 = vpop.f32.mrf.mxu0  ;;  %2609 = vmatpush.msra.mxu3 %v893_v12  ;;  %v578_v39 = vld [vmem:[#allocation4 + $0x628] sm:$0xff] }
 0x292   : > { %3635 = vmatpush.msrb.mxu2 %v5719_v50  ;;  %v2076_v20 = vpop.f32.mrf.mxu3  ;;  %2516 = vmatpush.msra.mxu1 %v596_v57  ;;  %v569_v50 = vld [vmem:[#allocation4 + $0x5e0] sm:$0xff] }
 0x293   : > { %v4891_v6 = vadd.f32 %v2076_v20, %v2030_v46  ;;  %2989 = vmatpush.msrb.mxu0 %v5720_v59  ;;  %2610 = vmatpush.msra.mxu3 %v884_v17  ;;  %v857_v20 = vld [vmem:[#allocation4 + $0xee0] sm:$0xff]  ;;  %v848_v17 = vld [vmem:[#allocation4 + $0xe98] sm:$0xff] }
 0x294   : > { %3636 = vmatpush.msrb.mxu2 %v5720_v59  ;;  %2301 = vmatmul.f32.gmra.mxu0 %v4779_v22 }
 0x295   : > { %2395 = vmatmul.f32.gmra.mxu2 %v4782_v56  ;;  %v1985_v13 = vpop.f32.mrf.mxu1  ;;  %2517 = vmatpush.msra.mxu1 %v587_v60  ;;  %v4906_v60 = vld [vmem:[#allocation2 + $0xa8] sm:$0xff] }
 0x296   : > { %v1986_v63 = vadd.f32 %v1985_v13, %v1938_v44  ;;  %2611 = vmatpush.msra.mxu3 %v875_v7  ;;  %v560_v44 = vld [vmem:[#allocation4 + $0x598] sm:$0xff]  ;;  %v4903_v13 = vld [vmem:[#allocation2 + $0xe0] sm:$0xff]  ;;  %5722 = vst [vmem:[#allocation24_spill] sm:$0xff] %v4906_v60  ;;  %v551_v7 = vld [vmem:[#allocation4 + $0x550] sm:$0xff] }
 0x297   : > { %2442 = vmatmul.f32.gmra.mxu3 %v4785_v15  ;;  %2518 = vmatpush.msra.mxu1 %v578_v39  ;;  %5721 = vst [vmem:[#allocation25_spill] sm:$0xff] %v4903_v13  ;;  %v4911_v39 = vld [vmem:[#allocation2 + $0x88] sm:$0xff] }
 0x298   : > { %v2032_v12 = vpop.f32.mrf.mxu2  ;;  %2348 = vmatmul.f32.gmra.mxu1 %v4788_v49  ;;  %2612 = vmatpush.msra.mxu3 %v866_v61  ;;  %5723 = vst [vmem:[#allocation18_spill] sm:$0xff] %v4911_v39  ;;  %v542_v61 = vld [vmem:[#allocation4 + $0x508] sm:$0xff] }
 0x299   : > { %v2033_v46 = vadd.f32 %v2032_v12, %v1986_v63  ;;  %v4899_v40 = vpop.f32.mrf.mxu0  ;;  %2519 = vmatpush.msra.mxu1 %v569_v50  ;;  %v839_v63 = vld [vmem:[#allocation4 + $0xe50] sm:$0xff] }
 0x29a   : > { %v2079_v59 = vpop.f32.mrf.mxu3  ;;  %2613 = vmatpush.msra.mxu3 %v857_v20  ;;  %v4916_v20 = vld [vmem:[#allocation2 + $0x90] sm:$0xff] }
 0x29b   : > { %v4901_v57 = vadd.f32 %v2079_v59, %v2033_v46  ;;  %2520 = vmatpush.msra.mxu1 %v560_v44  ;;  %v830_v46 = vld [vmem:[#allocation4 + $0xe08] sm:$0xff]  ;;  %5724 = vst [vmem:[#allocation17_spill] sm:$0xff] %v4916_v20  ;;  %v533_v59 = vld [vmem:[#allocation4 + $0x4c0] sm:$0xff] }
 0x29c   : > { %2304 = vmatmul.f32.gmra.mxu0 %v4906_v60  ;;  %2614 = vmatpush.msra.mxu3 %v848_v17  ;;  %v821_v60 = vld [vmem:[#allocation4 + $0xdc0] sm:$0xff]  ;;  %v4921_v17 = vld [vmem:[#allocation2 + $0xd8] sm:$0xff] }
 0x29d   : > { %2398 = vmatmul.f32.gmra.mxu2 %v4903_v13  ;;  %v4909_v12 = vpop.f32.mrf.mxu1  ;;  %2521 = vmatpush.msra.mxu1 %v551_v7  ;;  %5725 = vst [vmem:[#allocation16_spill] sm:$0xff] %v4921_v17 }
 0x29e   : > { %2615 = vmatpush.msra.mxu3 %v839_v63  ;;  %v4927_v63 = vld [vmem:[#allocation2 + $0xa0] sm:$0xff] }
 0x29f   : > { %2445 = vmatmul.f32.gmra.mxu3 %v4911_v39  ;;  %2522 = vmatpush.msra.mxu1 %v542_v61  ;;  %v4924_v39 = vld [vmem:[#allocation2 + $0xc0] sm:$0xff]  ;;  %5727 = vst [vmem:[#allocation14_spill] sm:$0xff] %v4927_v63 }
 0x2a0   : > { %v4914_v50 = vpop.f32.mrf.mxu2  ;;  %2351 = vmatmul.f32.gmra.mxu1 %v4916_v20  ;;  %2616 = vmatpush.msra.mxu3 %v830_v46  ;;  %5726 = vst [vmem:[#allocation15_spill] sm:$0xff] %v4924_v39 }
 0x2a1   : > { %v2102_v44 = vpop.f32.mrf.mxu0  ;;  %2523 = vmatpush.msra.mxu1 %v533_v59 }
 0x2a2   : > { %v4919_v13 = vpop.f32.mrf.mxu3  ;;  %2617 = vmatpush.msra.mxu3 %v821_v60 }
 0x2a4   : > { %2307 = vmatmul.f32.gmra.mxu0 %v4924_v39  ;;  %v1974_v39 = vadd.f32 %v4839_v18, %v4831_v29 }
 0x2a5   : > { %2401 = vmatmul.f32.gmra.mxu2 %v4921_v17  ;;  %v2149_v7 = vpop.f32.mrf.mxu1 }
 0x2a6   : > { %v2150_v46 = vadd.f32 %v2149_v7, %v2102_v44  ;;  %v2021_v44 = vadd.f32 %v4844_v4, %v1974_v39  ;;  %v5732_v39 = vld [vmem:[#allocation37_spill] sm:$0xff]  ;;  %v5734_v7 = vld [vmem:[#allocation36_spill] sm:$0xff] }
 0x2a7   : > { %2448 = vmatmul.f32.gmra.mxu3 %v4927_v63 }
 0x2a8   : > { %v2196_v20 = vpop.f32.mrf.mxu2  ;;  %2354 = vmatmul.f32.gmra.mxu1 %v4930_v48  ;;  %v2068_v29 = vadd.f32 %v4849_v9, %v2021_v44 }
 0x2a9   : > { %v2105_v60 = vpop.f32.mrf.mxu0  ;;  %v2197_v33 = vadd.f32 %v2196_v20, %v2150_v46 }
 0x2aa   : > { %v2243_v61 = vpop.f32.mrf.mxu3 }
 0x2ac   : > { %2310 = vmatmul.f32.gmra.mxu0 %v4691_v26 }
 0x2ad   : > { %2404 = vmatmul.f32.gmra.mxu2 %v4694_v2  ;;  %v2152_v59 = vpop.f32.mrf.mxu1  ;;  %v2244_v2 = vadd.f32 %v2243_v61, %v2197_v33 }
 0x2ae   : > { %v2153_v17 = vadd.f32 %v2152_v59, %v2105_v60  ;;  %v5735_v60 = vld [vmem:[#allocation35_spill] sm:$0xff] }
 0x2af   : > { %2451 = vmatmul.f32.gmra.mxu3 %v4697_v19 }
 0x2b0   : > { %v2199_v63 = vpop.f32.mrf.mxu2  ;;  %2357 = vmatmul.f32.gmra.mxu1 %v4700_v62 }
 0x2b1   : > { %v2200_v49 = vadd.f32 %v2199_v63, %v2153_v17  ;;  %v2108_v35 = vpop.f32.mrf.mxu0 }
 0x2b2   : > { %v2246_v48 = vpop.f32.mrf.mxu3 }
 0x2b3   : > { %v2247_v15 = vadd.f32 %v2246_v48, %v2200_v49 }
 0x2b4   : > { %2313 = vmatmul.f32.gmra.mxu0 %v4705_v1 }
 0x2b5   : > { %2407 = vmatmul.f32.gmra.mxu2 %v4708_v30  ;;  %3045 = vmatpush.msrb.mxu1 %v2247_v15  ;;  %v2155_v26 = vpop.f32.mrf.mxu1 }
 0x2b6   : > { %3637 = vmatpush.msrb.mxu3 %v2247_v15  ;;  %v2156_v19 = vadd.f32 %v2155_v26, %v2108_v35  ;;  %v5738_v26 = vld [vmem:[#allocation33_spill] sm:$0xff] }
 0x2b7   : > { %2454 = vmatmul.f32.gmra.mxu3 %v4711_v27  ;;  %3046 = vmatpush.msrb.mxu1 %v2244_v2 }
 0x2b8   : > { %3638 = vmatpush.msrb.mxu3 %v2244_v2  ;;  %v2202_v62 = vpop.f32.mrf.mxu2  ;;  %2360 = vmatmul.f32.gmra.mxu1 %v4814_v54  ;;  %v5737_v2 = vld [vmem:[#allocation34_spill] sm:$0xff] }
 0x2b9   : > { %v2203_v18 = vadd.f32 %v2202_v62, %v2156_v19  ;;  %3047 = vmatpush.msrb.mxu1 %v2068_v29  ;;  %v2111_v30 = vpop.f32.mrf.mxu0  ;;  %v5745_v62 = vld [vmem:[#allocation30_spill] sm:$0xff] }
 0x2ba   : > { %3639 = vmatpush.msrb.mxu3 %v2068_v29  ;;  %v2249_v49 = vpop.f32.mrf.mxu3 }
 0x2bb   : > { %v4945_v48 = vadd.f32 %v2249_v49, %v2203_v18  ;;  %3048 = vmatpush.msrb.mxu1 %v4833_v38  ;;  %v5750_v18 = vld [vmem:[#allocation26_spill] sm:$0xff] }
 0x2bc   : > { %3640 = vmatpush.msrb.mxu3 %v4833_v38  ;;  %2316 = vmatmul.f32.gmra.mxu0 %v4819_v5 }
 0x2bd   : > { %2410 = vmatmul.f32.gmra.mxu2 %v4822_v31  ;;  %3049 = vmatpush.msrb.mxu1 %v4817_v41  ;;  %v2158_v1 = vpop.f32.mrf.mxu1 }
 0x2be   : > { %3641 = vmatpush.msrb.mxu3 %v4817_v41  ;;  %v2159_v27 = vadd.f32 %v2158_v1, %v2111_v30  ;;  %v5752_v30 = vld [vmem:[#allocation27_spill] sm:$0xff]  ;;  %v5754_v1 = vld [vmem:[#allocation53_spill] sm:$0xff] }
 0x2bf   : > { %2457 = vmatmul.f32.gmra.mxu3 %v4825_v52  ;;  %3050 = vmatpush.msrb.mxu1 %v4809_v28 }
 0x2c0   : > { %3642 = vmatpush.msrb.mxu3 %v4809_v28  ;;  %v2205_v15 = vpop.f32.mrf.mxu2  ;;  %2363 = vmatmul.f32.gmra.mxu1 %v4828_v58 }
 0x2c1   : > { %v2206_v4 = vadd.f32 %v2205_v15, %v2159_v27  ;;  %3051 = vmatpush.msrb.mxu1 %v4803_v47  ;;  %v2114_v41 = vpop.f32.mrf.mxu0  ;;  %v5757_v27 = vld [vmem:[#allocation23_spill] sm:$0xff]  ;;  %v5758_v15 = vld [vmem:[#allocation52_spill] sm:$0xff] }
 0x2c2   : > { %3643 = vmatpush.msrb.mxu3 %v4803_v47  ;;  %v2252_v38 = vpop.f32.mrf.mxu3 }
 0x2c3   : > { %v4959_v9 = vadd.f32 %v2252_v38, %v2206_v4  ;;  %3052 = vmatpush.msrb.mxu1 %v4735_v24  ;;  %v5760_v4 = vld [vmem:[#allocation25_spill] sm:$0xff]  ;;  %v5761_v38 = vld [vmem:[#allocation51_spill] sm:$0xff] }
 0x2c4   : > { %3644 = vmatpush.msrb.mxu3 %v4735_v24  ;;  %2477 = vmatmul.f32.vlgmr.msra.gmra.mxu0 %v4723_v3  ;;  %v5729_v3 = vld [vmem:[#allocation40_spill] sm:$0xff] }
 0x2c5   : > { %2571 = vmatmul.f32.vlgmr.msra.gmra.mxu2 %v4726_v53  ;;  %3053 = vmatpush.msrb.mxu1 %v4721_v55  ;;  %v2161_v28 = vpop.f32.mrf.mxu1 }
 0x2c6   : > { %3645 = vmatpush.msrb.mxu3 %v4721_v55  ;;  %v2162_v33 = vadd.f32 %v2161_v28, %v2114_v41  ;;  %v5763_v28 = vld [vmem:[#allocation21_spill] sm:$0xff] }
 0x2c7   : > { %2618 = vmatmul.f32.vlgmr.msra.gmra.mxu3 %v4729_v51  ;;  %3054 = vmatpush.msrb.mxu1 %v4715_v16 }
 0x2c8   : > { %3646 = vmatpush.msrb.mxu3 %v4715_v16  ;;  %v2208_v47 = vpop.f32.mrf.mxu2  ;;  %2524 = vmatmul.f32.vlgmr.msra.gmra.mxu1 %v4732_v25  ;;  %v5731_v25 = vld [vmem:[#allocation38_spill] sm:$0xff] }
 0x2c9   : > { %v2209_v35 = vadd.f32 %v2208_v47, %v2162_v33  ;;  %3055 = vmatpush.msrb.mxu1 %v4703_v45  ;;  %v2117_v55 = vpop.f32.mrf.mxu0  ;;  %v5764_v33 = vld [vmem:[#allocation24_spill] sm:$0xff]  ;;  %v5765_v47 = vld [vmem:[#allocation18_spill] sm:$0xff] }
 0x2ca   : > { %3647 = vmatpush.msrb.mxu3 %v4703_v45  ;;  %v2255_v53 = vpop.f32.mrf.mxu3  ;;  %v5730_v45 = vld [vmem:[#allocation39_spill] sm:$0xff] }
 0x2cb   : > { %v4973_v24 = vadd.f32 %v2255_v53, %v2209_v35  ;;  %3056 = vmatpush.msrb.mxu1 %v4689_v10  ;;  %v5766_v35 = vld [vmem:[#allocation48_spill] sm:$0xff] }
 0x2cc   : > { %3648 = vmatpush.msrb.mxu3 %v4689_v10  ;;  %2480 = vmatmul.f32.gmra.mxu0 %v4737_v14 }
 0x2cd   : > { %2574 = vmatmul.f32.gmra.mxu2 %v4740_v43  ;;  %3057 = vmatpush.msrb.mxu1 %v5729_v3  ;;  %v2164_v16 = vpop.f32.mrf.mxu1 }
 0x2ce   : > { %3649 = vmatpush.msrb.mxu3 %v5729_v3  ;;  %v2165_v14 = vadd.f32 %v2164_v16, %v2117_v55  ;;  %v5768_v55 = vld [vmem:[#allocation20_spill] sm:$0xff]  ;;  %v5769_v3 = vld [vmem:[#allocation17_spill] sm:$0xff]  ;;  %v5770_v16 = vld [vmem:[#allocation47_spill] sm:$0xff] }
 0x2cf   : > { %2621 = vmatmul.f32.gmra.mxu3 %v4743_v23  ;;  %3058 = vmatpush.msrb.mxu1 %v5730_v45  ;;  %v5733_v23 = vld [vmem:[#allocation41_spill] sm:$0xff] }
 0x2d0   : > { %3650 = vmatpush.msrb.mxu3 %v5730_v45  ;;  %v2211_v51 = vpop.f32.mrf.mxu2  ;;  %2527 = vmatmul.f32.gmra.mxu1 %v4746_v0  ;;  %v1989_v0 = vadd.f32 %v4909_v12, %v4899_v40  ;;  %v5740_v12 = vld [vmem:[#allocation32_spill] sm:$0xff] }
 0x2d1   : > { %3059 = vmatpush.msrb.mxu1 %v5731_v25  ;;  %v2120_v43 = vpop.f32.mrf.mxu0  ;;  %v2212_v46 = vadd.f32 %v2211_v51, %v2165_v14  ;;  %v5776_v14 = vld [vmem:[#allocation15_spill] sm:$0xff] }
 0x2d2   : > { %3651 = vmatpush.msrb.mxu3 %v5731_v25  ;;  %v2258_v10 = vpop.f32.mrf.mxu3  ;;  %v5772_v25 = vld [vmem:[#allocation19_spill] sm:$0xff] }
 0x2d3   : > { %3060 = vmatpush.msrb.mxu1 %v5732_v39 }
 0x2d4   : > { %3652 = vmatpush.msrb.mxu3 %v5732_v39  ;;  %2483 = vmatmul.f32.gmra.mxu0 %v4751_v32  ;;  %v2036_v32 = vadd.f32 %v4914_v50, %v1989_v0  ;;  %v5742_v50 = vld [vmem:[#allocation31_spill] sm:$0xff]  ;;  %v5775_v39 = vld [vmem:[#allocation45_spill] sm:$0xff]  ;;  %v5779_v0 = vld [vmem:[#allocation54_spill] sm:$0xff] }
 0x2d5   : > { %2577 = vmatmul.f32.gmra.mxu2 %v4754_v34  ;;  %v2167_v20 = vpop.f32.mrf.mxu1 }
 0x2d6   : > { %3187 = vmatpush.msra.mxu3 %v5733_v23  ;;  %v2168_v17 = vadd.f32 %v2167_v20, %v2120_v43  ;;  %v5774_v43 = vld [vmem:[#allocation16_spill] sm:$0xff]  ;;  %v5777_v20 = vld [vmem:[#allocation14_spill] sm:$0xff] }
 0x2d7   : > { %2624 = vmatmul.f32.gmra.mxu3 %v4757_v8  ;;  %v2259_v8 = vadd.f32 %v2258_v10, %v2212_v46  ;;  %v5773_v10 = vld [vmem:[#allocation46_spill] sm:$0xff] }
 0x2d8   : > { %3188 = vmatpush.msra.mxu3 %v5734_v7  ;;  %v2214_v63 = vpop.f32.mrf.mxu2  ;;  %2530 = vmatmul.f32.gmra.mxu1 %v4760_v11  ;;  %v2083_v11 = vadd.f32 %v4919_v13, %v2036_v32  ;;  %v5748_v13 = vld [vmem:[#allocation28_spill] sm:$0xff]  ;;  %v5781_v46 = vld [vmem:[#allocation42_spill] sm:$0xff]  ;;  %v3824_v32 = vld [vmem:[#allocation2 + $0xe8] sm:$0xff] }
 0x2d9   : > { %v2215_v61 = vadd.f32 %v2214_v63, %v2168_v17  ;;  %v4998_v59 = vpop.f32.mrf.mxu0  ;;  %v5778_v17 = vld [vmem:[#allocation44_spill] sm:$0xff]  ;;  %v5780_v63 = vld [vmem:[#allocation43_spill] sm:$0xff] }
 0x2da   : > { %3189 = vmatpush.msra.mxu3 %v5735_v60  ;;  %v2261_v34 = vpop.f32.mrf.mxu3  ;;  %5736 = vst [vmem:[#allocation40_spill] sm:$0xff] %v4998_v59  ;;  %v5209_v59 = vld [vmem:[#allocation7 + $0x38] sm:$0xff] }
 0x2db   : > { %v2262_v44 = vadd.f32 %v2261_v34, %v2215_v61  ;;  %v3822_v34 = vld [vmem:[#allocation2 + $0x50] sm:$0xff]  ;;  %5810 = vst [vmem:[#allocation42_spill] sm:$0xff] %v5209_v59 }
 0x2dc   : > { %3190 = vmatpush.msra.mxu3 %v5737_v2  ;;  %2486 = vmatmul.f32.gmra.mxu0 %v4765_v21  ;;  %v5746_v21 = vld [vmem:[#allocation29_spill] sm:$0xff] }
 0x2dd   : > { %2580 = vmatmul.f32.gmra.mxu2 %v4768_v36  ;;  %3258 = vmatpush.msra.mxu0 %v2262_v44  ;;  %v5004_v40 = vpop.f32.mrf.mxu1  ;;  %v3823_v2 = vld [vmem:[#allocation2 + $0x68] sm:$0xff] }
 0x2de   : > { %3191 = vmatpush.msra.mxu3 %v5738_v26  ;;  %5739 = vst [vmem:[#allocation39_spill] sm:$0xff] %v5004_v40  ;;  %v5207_v40 = vld [vmem:[#allocation7 + $0x180] sm:$0xff] }
 0x2df   : > { %2627 = vmatmul.f32.gmra.mxu3 %v4771_v37  ;;  %3259 = vmatpush.msra.mxu0 %v2259_v8  ;;  %v3825_v8 = vld [vmem:[#allocation2 + $0x130] sm:$0xff]  ;;  %5809 = vst [vmem:[#allocation43_spill] sm:$0xff] %v5207_v40 }
 0x2e0   : > { %3192 = vmatpush.msra.mxu3 %v5740_v12  ;;  %v5010_v19 = vpop.f32.mrf.mxu2  ;;  %2533 = vmatmul.f32.gmra.mxu1 %v4774_v42  ;;  %v5749_v42 = vld [vmem:[#allocation49_spill] sm:$0xff] }
 0x2e1   : > { %5741 = vst [vmem:[#allocation38_spill] sm:$0xff] %v5010_v19  ;;  %3260 = vmatpush.msra.mxu0 %v2083_v11  ;;  %v5016_v29 = vpop.f32.mrf.mxu0  ;;  %v5195_v19 = vld [vmem:[#allocation7 + $0x20] sm:$0xff] }
 0x2e2   : > { %3193 = vmatpush.msra.mxu3 %v5742_v50  ;;  %v5014_v36 = vpop.f32.mrf.mxu3  ;;  %5744 = vst [vmem:[#allocation41_spill] sm:$0xff] %v5016_v29  ;;  %v3826_v50 = vld [vmem:[#allocation2 + $0x30] sm:$0xff]  ;;  %v5215_v29 = vld [vmem:[#allocation7 + $0x140] sm:$0xff] }
 0x2e3   : > { %5743 = vst [vmem:[#allocation37_spill] sm:$0xff] %v5014_v36  ;;  %3261 = vmatpush.msra.mxu0 %v4901_v57  ;;  %v5753_v57 = vld [vmem:[#allocation50_spill] sm:$0xff]  ;;  %v5187_v36 = vld [vmem:[#allocation7 + $0x18] sm:$0xff] }
 0x2e4   : > { %3194 = vmatpush.msra.mxu3 %v5745_v62  ;;  %2489 = vmatmul.f32.gmra.mxu0 %v4779_v22  ;;  %v5759_v22 = vld [vmem:[#allocation22_spill] sm:$0xff]  ;;  %5812 = vst [vmem:[#allocation56_spill] sm:$0xff] %v5215_v29 }
 0x2e5   : > { %2583 = vmatmul.f32.gmra.mxu2 %v4782_v56  ;;  %3262 = vmatpush.msra.mxu0 %v4891_v6  ;;  %v5023_v37 = vpop.f32.mrf.mxu1 }
 0x2e6   : > { %3195 = vmatpush.msra.mxu3 %v5746_v21  ;;  %5747 = vst [vmem:[#allocation36_spill] sm:$0xff] %v5023_v37  ;;  %v3827_v21 = vld [vmem:[#allocation2 + $0x58] sm:$0xff]  ;;  %v5213_v37 = vld [vmem:[#allocation7 + $0x48] sm:$0xff] }
 0x2e7   : > { %2630 = vmatmul.f32.gmra.mxu3 %v5749_v42  ;;  %3263 = vmatpush.msra.mxu0 %v5750_v18  ;;  %5811 = vst [vmem:[#allocation55_spill] sm:$0xff] %v5213_v37 }
 0x2e8   : > { %3196 = vmatpush.msra.mxu3 %v5748_v13  ;;  %v5029_v49 = vpop.f32.mrf.mxu2  ;;  %2536 = vmatmul.f32.gmra.mxu1 %v5753_v57  ;;  %v3828_v13 = vld [vmem:[#allocation2 + $0x40] sm:$0xff] }
 0x2e9   : > { %5751 = vst [vmem:[#allocation35_spill] sm:$0xff] %v5029_v49  ;;  %3264 = vmatpush.msra.mxu0 %v5754_v1  ;;  %v5036_v6 = vpop.f32.mrf.mxu0 }
 0x2ea   : > { %3197 = vmatpush.msra.mxu3 %v5752_v30  ;;  %v5034_v56 = vpop.f32.mrf.mxu3  ;;  %5756 = vst [vmem:[#allocation33_spill] sm:$0xff] %v5036_v6 }
 0x2eb   : > { %5755 = vst [vmem:[#allocation34_spill] sm:$0xff] %v5034_v56  ;;  %3265 = vmatpush.msra.mxu0 %v5758_v15  ;;  %v5189_v56 = vld [vmem:[#allocation7 + $0x110] sm:$0xff] }
 0x2ec   : > { %3198 = vmatpush.msra.mxu3 %v5757_v27  ;;  %2492 = vmatmul.f32.gmra.mxu0 %v5764_v33  ;;  %5806 = vst [vmem:[#allocation14_spill] sm:$0xff] %v5189_v56 }
 0x2ed   : > { %2586 = vmatmul.f32.gmra.mxu2 %v5760_v4  ;;  %3266 = vmatpush.msra.mxu0 %v5761_v38  ;;  %v5043_v41 = vpop.f32.mrf.mxu1 }
 0x2ee   : > { %3199 = vmatpush.msra.mxu3 %v5759_v22  ;;  %5762 = vst [vmem:[#allocation32_spill] sm:$0xff] %v5043_v41 }
 0x2ef   : > { %2633 = vmatmul.f32.gmra.mxu3 %v5765_v47  ;;  %3267 = vmatpush.msra.mxu0 %v5766_v35  ;;  %v5126_v47 = vld [vmem:[#allocation7 + $0xf0] sm:$0xff] }
 0x2f0   : > { %3200 = vmatpush.msra.mxu3 %v5763_v28  ;;  %v5049_v53 = vpop.f32.mrf.mxu2  ;;  %2539 = vmatmul.f32.gmra.mxu1 %v5769_v3  ;;  %5789 = vst [vmem:[#allocation23_spill] sm:$0xff] %v5126_v47 }
 0x2f1   : > { %5767 = vst [vmem:[#allocation31_spill] sm:$0xff] %v5049_v53  ;;  %3268 = vmatpush.msra.mxu0 %v5770_v16  ;;  %v5056_v51 = vpop.f32.mrf.mxu0  ;;  %v5203_v53 = vld [vmem:[#allocation7 + $0x128] sm:$0xff] }
 0x2f2   : > { %3201 = vmatpush.msra.mxu3 %v5768_v55  ;;  %v5054_v45 = vpop.f32.mrf.mxu3  ;;  %5808 = vst [vmem:[#allocation54_spill] sm:$0xff] %v5203_v53 }
 0x2f3   : > { %5771 = vst [vmem:[#allocation30_spill] sm:$0xff] %v5054_v45  ;;  %3269 = vmatpush.msra.mxu0 %v5773_v10  ;;  %v5193_v45 = vld [vmem:[#allocation7 + $0x168] sm:$0xff] }
 0x2f4   : > { %3202 = vmatpush.msra.mxu3 %v5772_v25  ;;  %2495 = vmatmul.f32.gmra.mxu0 %v5776_v14  ;;  %v5137_v25 = vld [vmem:[#allocation7 + $0x108] sm:$0xff]  ;;  %5807 = vst [vmem:[#allocation44_spill] sm:$0xff] %v5193_v45 }
 0x2f5   : > { %2589 = vmatmul.f32.gmra.mxu2 %v5774_v43  ;;  %3270 = vmatpush.msra.mxu0 %v5775_v39  ;;  %v5062_v23 = vpop.f32.mrf.mxu1  ;;  %5794 = vst [vmem:[#allocation21_spill] sm:$0xff] %v5137_v25 }
 0x2f7   : > { %2636 = vmatmul.f32.gmra.mxu3 %v5777_v20  ;;  %3271 = vmatpush.msra.mxu0 %v5778_v17  ;;  %v5148_v20 = vld [vmem:[#allocation7 + $0x120] sm:$0xff] }
 0x2f8   : > { %v5067_v7 = vpop.f32.mrf.mxu2  ;;  %2542 = vmatmul.f32.gmra.mxu1 %v5779_v0  ;;  %5797 = vst [vmem:[#allocation48_spill] sm:$0xff] %v5148_v20 }
 0x2f9   : > { %3272 = vmatpush.msra.mxu0 %v5780_v63  ;;  %v5073_v60 = vpop.f32.mrf.mxu0 }
 0x2fa   : > { %v5071_v61 = vpop.f32.mrf.mxu3 }
 0x2fb   : > { %3273 = vmatpush.msra.mxu0 %v5781_v46  ;;  %v5157_v46 = vld [vmem:[#allocation7 + $0xe0] sm:$0xff] }
 0x2fc   : > { %2498 = vmatmul.f32.gmra.mxu0 %v3823_v2  ;;  %5800 = vst [vmem:[#allocation47_spill] sm:$0xff] %v5157_v46  ;;  %v5162_v2 = vld [vmem:[#allocation7 + $0x138] sm:$0xff] }
 0x2fd   : > { %2592 = vmatmul.f32.gmra.mxu2 %v3822_v34  ;;  %v5076_v44 = vpop.f32.mrf.mxu1  ;;  %5801 = vst [vmem:[#allocation19_spill] sm:$0xff] %v5162_v2 }
 0x2ff   : > { %2639 = vmatmul.f32.gmra.mxu3 %v3824_v32 }
 0x300   : > { %v5078_v26 = vpop.f32.mrf.mxu2  ;;  %2545 = vmatmul.f32.gmra.mxu1 %v3825_v8 }
 0x301   : > { %v5082_v11 = vpop.f32.mrf.mxu0 }
 0x302   : > { %v5080_v12 = vpop.f32.mrf.mxu3 }
 0x304   : > { %2501 = vmatmul.f32.gmra.mxu0 %v3827_v21  ;;  %v5171_v21 = vld [vmem:[#allocation7] sm:$0xff] }
 0x305   : > { %2595 = vmatmul.f32.gmra.mxu2 %v3826_v50  ;;  %v5084_v62 = vpop.f32.mrf.mxu1 }
 0x307   : > { %2642 = vmatmul.f32.gmra.mxu3 %v3828_v13  ;;  %v5173_v13 = vld [vmem:[#allocation7 + $0xf8] sm:$0xff] }
 0x308   : > { %v5086_v42 = vpop.f32.mrf.mxu2  ;;  %2548 = vmatmul.f32.gmra.mxu1 %v4814_v54  ;;  %5804 = vst [vmem:[#allocation45_spill] sm:$0xff] %v5173_v13 }
 0x309   : > { %v5091_v30 = vpop.f32.mrf.mxu0 }
 0x30a   : > { %v5089_v18 = vpop.f32.mrf.mxu3 }
 0x30c   : > { %2504 = vmatmul.f32.gmra.mxu0 %v4819_v5  ;;  %v5115_v5 = vld [vmem:[#allocation7 + $0xd8] sm:$0xff] }
 0x30d   : > { %2598 = vmatmul.f32.gmra.mxu2 %v4822_v31  ;;  %v5094_v57 = vpop.f32.mrf.mxu1  ;;  %5784 = vst [vmem:[#allocation49_spill] sm:$0xff] %v5115_v5 }
 0x30f   : > { %2645 = vmatmul.f32.gmra.mxu3 %v4825_v52 }
 0x310   : > { %v5098_v1 = vpop.f32.mrf.mxu2  ;;  %2551 = vmatmul.f32.gmra.mxu1 %v4828_v58 }
 0x311   : > { %v5103_v15 = vpop.f32.mrf.mxu0 }
 0x312   : > { %v5101_v27 = vpop.f32.mrf.mxu3 }
 0x314   : > { %2990 = vmatmul.f32.vlgmr.msrb.gmra.mxu0 %v5171_v21 }
 0x315   : > { %v5105_v54 = vpop.f32.mrf.mxu1  ;;  %3017 = vmatmul.f32.vlgmr.msrb.gmra.mxu2 %v5115_v5 }
 0x317   : > { %3088 = vmatmul.f32.vlgmr.msrb.gmra.mxu3 %v5157_v46  ;;  %v5179_v46 = vld [vmem:[#allocation7 + $0x8] sm:$0xff] }
 0x318   : > { %v5107_v22 = vpop.f32.mrf.mxu2  ;;  %3061 = vmatmul.f32.vlgmr.msrb.gmra.mxu1 %v5179_v46 }
 0x319   : > { %v5111_v31 = vpop.f32.mrf.mxu0 }
 0x31a   : > { %v5109_v4 = vpop.f32.mrf.mxu3  ;;  %5782 = vst [vmem:[#allocation29_spill] sm:$0xff] %v5111_v31  ;;  %v5231_v31 = vld [vmem:[#allocation7 + $0x68] sm:$0xff] }
 0x31c   : > { %2993 = vmatmul.f32.gmra.mxu0 %v5187_v36 }
 0x31d   : > { %v5113_v38 = vpop.f32.mrf.mxu1  ;;  %3020 = vmatmul.f32.gmra.mxu2 %v5126_v47 }
 0x31e   : > { %5783 = vst [vmem:[#allocation28_spill] sm:$0xff] %v5113_v38 }
 0x31f   : > { %3091 = vmatmul.f32.gmra.mxu3 %v5173_v13 }
 0x320   : > { %v5118_v52 = vpop.f32.mrf.mxu2  ;;  %3064 = vmatmul.f32.gmra.mxu1 %v5195_v19 }
 0x321   : > { %5785 = vst [vmem:[#allocation26_spill] sm:$0xff] %v5118_v52  ;;  %v5122_v28 = vpop.f32.mrf.mxu0 }
 0x322   : > { %v5120_v58 = vpop.f32.mrf.mxu3  ;;  %5787 = vst [vmem:[#allocation50_spill] sm:$0xff] %v5122_v28 }
 0x323   : > { %5786 = vst [vmem:[#allocation27_spill] sm:$0xff] %v5120_v58 }
 0x325   : > { %v5124_v33 = vpop.f32.mrf.mxu1  ;;  %3023 = vmatmul.f32.gmra.mxu2 %v5137_v25  ;;  %v5177_v25 = vld [vmem:[#allocation7 + $0x150] sm:$0xff] }
 0x326   : > { %5788 = vst [vmem:[#allocation53_spill] sm:$0xff] %v5124_v33 }
 0x327   : > { %5805 = vst [vmem:[#allocation15_spill] sm:$0xff] %v5177_v25  ;;  %3094 = vmatmul.f32.gmra.mxu3 %v5189_v56 }
 0x328   : > { %v5129_v35 = vpop.f32.mrf.mxu2  ;;  %3067 = vmatmul.f32.gmra.mxu1 %v5209_v59 }
 0x329   : > { %5790 = vst [vmem:[#allocation52_spill] sm:$0xff] %v5129_v35  ;;  %v5133_v3 = vpop.f32.mrf.mxu0  ;;  %v5221_v35 = vld [vmem:[#allocation7 + $0x50] sm:$0xff] }
 0x32a   : > { %v5131_v55 = vpop.f32.mrf.mxu3  ;;  %5792 = vst [vmem:[#allocation25_spill] sm:$0xff] %v5133_v3 }
 0x32b   : > { %5791 = vst [vmem:[#allocation22_spill] sm:$0xff] %v5131_v55  ;;  %v5201_v55 = vld [vmem:[#allocation7 + $0x30] sm:$0xff] }
 0x32c   : > { %2996 = vmatmul.f32.gmra.mxu0 %v5201_v55  ;;  %5814 = vst [vmem:[#allocation58_spill] sm:$0xff] %v5221_v35 }
 0x32d   : > { %v5135_v16 = vpop.f32.mrf.mxu1  ;;  %3026 = vmatmul.f32.gmra.mxu2 %v5148_v20 }
 0x32e   : > { %5793 = vst [vmem:[#allocation51_spill] sm:$0xff] %v5135_v16 }
 0x32f   : > { %3097 = vmatmul.f32.gmra.mxu3 %v5203_v53 }
 0x330   : > { %v5140_v10 = vpop.f32.mrf.mxu2  ;;  %3070 = vmatmul.f32.gmra.mxu1 %v5221_v35 }
 0x331   : > { %5795 = vst [vmem:[#allocation24_spill] sm:$0xff] %v5140_v10  ;;  %v5144_v39 = vpop.f32.mrf.mxu0  ;;  %v5227_v10 = vld [vmem:[#allocation7 + $0x158] sm:$0xff] }
 0x332   : > { %v5142_v43 = vpop.f32.mrf.mxu3  ;;  %5816 = vst [vmem:[#allocation60_spill] sm:$0xff] %v5227_v10 }
 0x333   : > { %5796 = vst [vmem:[#allocation18_spill] sm:$0xff] %v5142_v43 }
 0x334   : > { %2999 = vmatmul.f32.gmra.mxu0 %v5213_v37 }
 0x335   : > { %v5146_v14 = vpop.f32.mrf.mxu1  ;;  %3029 = vmatmul.f32.gmra.mxu2 %v5162_v2 }
 0x337   : > { %3100 = vmatmul.f32.gmra.mxu3 %v5215_v29 }
 0x338   : > { %v5151_v17 = vpop.f32.mrf.mxu2  ;;  %3073 = vmatmul.f32.gmra.mxu1 %v5231_v31 }
 0x339   : > { %5798 = vst [vmem:[#allocation20_spill] sm:$0xff] %v5151_v17  ;;  %v5155_v63 = vpop.f32.mrf.mxu0 }
 0x33a   : > { %v5153_v0 = vpop.f32.mrf.mxu3 }
 0x33b   : > { %5799 = vst [vmem:[#allocation17_spill] sm:$0xff] %v5153_v0  ;;  %v5219_v0 = vld [vmem:[#allocation7 + $0x198] sm:$0xff] }
 0x33c   : > { %5813 = vst [vmem:[#allocation57_spill] sm:$0xff] %v5219_v0 }
 0x33d   : > { %v5160_v34 = vpop.f32.mrf.mxu1  ;;  %3032 = vmatmul.f32.gmra.mxu2 %v5177_v25 }
 0x33f   : > { %3103 = vmatmul.f32.gmra.mxu3 %v5227_v10  ;;  %v5237_v10 = vld [vmem:[#allocation7 + $0x78] sm:$0xff] }
 0x340   : > { %v5165_v32 = vpop.f32.mrf.mxu2 }
 0x341   : > { %5802 = vst [vmem:[#allocation46_spill] sm:$0xff] %v5165_v32  ;;  %v5169_v50 = vpop.f32.mrf.mxu0 }
 0x342   : > { %v5167_v8 = vpop.f32.mrf.mxu3 }
 0x343   : > { %5803 = vst [vmem:[#allocation16_spill] sm:$0xff] %v5167_v8  ;;  %v5225_v8 = vld [vmem:[#allocation7 + $0x60] sm:$0xff] }
 0x344   : > { %5815 = vst [vmem:[#allocation59_spill] sm:$0xff] %v5225_v8  ;;  %3002 = vmatmul.f32.gmra.mxu0 %v5225_v8 }
 0x345   : > { %v2525_v20 = vpop.f32.mrf.mxu1  ;;  %3035 = vmatmul.f32.gmra.mxu2 %v5193_v45 }
 0x346   : > { %v2526_v32 = vadd.f32 %v2525_v20, %v5169_v50  ;;  %v5295_v20 = vld [vmem:[#allocation7 + $0x10] sm:$0xff] }
 0x348   : > { %v5183_v2 = vpop.f32.mrf.mxu2 }
 0x349   : > { %v2481_v5 = vpop.f32.mrf.mxu0 }
 0x34a   : > { %v5185_v47 = vpop.f32.mrf.mxu3 }
 0x34c   : > { %3005 = vmatmul.f32.gmra.mxu0 %v5237_v10 }
 0x34d   : > { %v2528_v13 = vpop.f32.mrf.mxu1  ;;  %3038 = vmatmul.f32.gmra.mxu2 %v5207_v40 }
 0x34e   : > { %v2529_v17 = vadd.f32 %v2528_v13, %v2481_v5 }
 0x350   : > { %v2575_v25 = vpop.f32.mrf.mxu2 }
 0x351   : > { %v2484_v49 = vpop.f32.mrf.mxu0 }
 0x352   : > { %v5199_v58 = vpop.f32.mrf.mxu3 }
 0x355   : > { %v2531_v56 = vpop.f32.mrf.mxu1  ;;  %3041 = vmatmul.f32.gmra.mxu2 %v5219_v0 }
 0x356   : > { %v2532_v0 = vadd.f32 %v2531_v56, %v2484_v49  ;;  %v2576_v49 = vadd.f32 %v2575_v25, %v2529_v17  ;;  %v5247_v56 = vld [vmem:[#allocation7 + $0x80] sm:$0xff] }
 0x357   : > { %3076 = vmatmul.f32.gmra.mxu1 %v5247_v56  ;;  %v5285_v25 = vld [vmem:[#allocation7 + $0x1a0] sm:$0xff] }
 0x358   : > { %v2578_v45 = vpop.f32.mrf.mxu2  ;;  %v5297_v17 = vld [vmem:[#allocation7 + $0xc0] sm:$0xff] }
 0x359   : > { %v2487_v52 = vpop.f32.mrf.mxu0  ;;  %v2579_v16 = vadd.f32 %v2578_v45, %v2532_v0  ;;  %v5302_v0 = vld [vmem:[#allocation7 + $0xc8] sm:$0xff] }
 0x35a   : > { %v2625_v43 = vpop.f32.mrf.mxu3 }
 0x35b   : > { %v2626_v45 = vadd.f32 %v2625_v43, %v2579_v16  ;;  %v5283_v16 = vld [vmem:[#allocation7 + $0xa8] sm:$0xff] }
 0x35d   : > { %v2534_v53 = vpop.f32.mrf.mxu1 }
 0x35e   : > { %v2535_v29 = vadd.f32 %v2534_v53, %v2487_v52  ;;  %v5239_v53 = vld [vmem:[#allocation7 + $0x170] sm:$0xff]  ;;  %v2341_v52 = vadd.f32 %v5076_v44, %v5073_v60 }
 0x35f   : > { %3106 = vmatmul.f32.gmra.mxu3 %v5239_v53 }
 0x360   : > { %v2581_v40 = vpop.f32.mrf.mxu2 }
 0x361   : > { %v2490_v6 = vpop.f32.mrf.mxu0  ;;  %v2582_v33 = vadd.f32 %v2581_v40, %v2535_v29 }
 0x362   : > { %v2628_v41 = vpop.f32.mrf.mxu3 }
 0x363   : > { %v2629_v40 = vadd.f32 %v2628_v41, %v2582_v33  ;;  %v5265_v33 = vld [vmem:[#allocation7 + $0x90] sm:$0xff] }
 0x364   : > { %3008 = vmatmul.f32.gmra.mxu0 %v5265_v33 }
 0x365   : > { %v2537_v38 = vpop.f32.mrf.mxu1 }
 0x366   : > { %v2538_v59 = vadd.f32 %v2537_v38, %v2490_v6  ;;  %v2573_v6 = vadd.f32 %v5183_v2, %v2526_v32  ;;  %v5307_v32 = vld [vmem:[#allocation7 + $0x28] sm:$0xff] }
 0x368   : > { %v2584_v35 = vpop.f32.mrf.mxu2 }
 0x369   : > { %v2585_v37 = vadd.f32 %v2584_v35, %v2538_v59  ;;  %v5235_v8 = vpop.f32.mrf.mxu0  ;;  %v2350_v59 = vadd.f32 %v5105_v54, %v5103_v15  ;;  %v2344_v15 = vadd.f32 %v5084_v62, %v5082_v11  ;;  %v2623_v54 = vadd.f32 %v5199_v58, %v2576_v49  ;;  %v5267_v35 = vld [vmem:[#allocation7 + $0x188] sm:$0xff] }
 0x36a   : > { %v2631_v28 = vpop.f32.mrf.mxu3  ;;  %3109 = vmatmul.f32.gmra.mxu3 %v5267_v35  ;;  %v2338_v11 = vadd.f32 %v5062_v23, %v5056_v51 }
 0x36b   : > { %v2632_v3 = vadd.f32 %v2631_v28, %v2585_v37  ;;  %v2347_v37 = vadd.f32 %v5094_v57, %v5091_v30  ;;  %v2397_v41 = vadd.f32 %v5107_v22, %v2350_v59  ;;  %v2620_v57 = vadd.f32 %v5185_v47, %v2573_v6 }
 0x36c   : > { %v2391_v62 = vadd.f32 %v5086_v42, %v2344_v15  ;;  %v2388_v22 = vadd.f32 %v5078_v26, %v2341_v52  ;;  %3011 = vmatmul.f32.gmra.mxu0 %v5283_v16 }
 0x36d   : > { %3119 = vmatpush.msra.mxu2 %v2632_v3  ;;  %v5245_v29 = vpop.f32.mrf.mxu1  ;;  %v2394_v30 = vadd.f32 %v5098_v1, %v2347_v37  ;;  %v2444_v60 = vadd.f32 %v5109_v4, %v2397_v41  ;;  %v5275_v1 = vld [vmem:[#allocation7 + $0x98] sm:$0xff]  ;;  %v2385_v3 = vadd.f32 %v5067_v7, %v2338_v11 }
 0x36e   : > { %3079 = vmatmul.f32.gmra.mxu1 %v5275_v1  ;;  %v2438_v51 = vadd.f32 %v5089_v18, %v2391_v62  ;;  %v2435_v42 = vadd.f32 %v5080_v12, %v2388_v22 }
 0x36f   : > { %3120 = vmatpush.msra.mxu2 %v2629_v40  ;;  %v2441_v58 = vadd.f32 %v5101_v27, %v2394_v30  ;;  %v2432_v26 = vadd.f32 %v5071_v61, %v2385_v3  ;;  %v5290_v27 = vld [vmem:[#allocation7 + $0xb0] sm:$0xff]  ;;  %v5826_v3 = vld [vmem:[#allocation28_spill] sm:$0xff] }
 0x370   : > { %v5253_v38 = vpop.f32.mrf.mxu2 }
 0x371   : > { %3121 = vmatpush.msra.mxu2 %v2626_v45  ;;  %v2496_v28 = vpop.f32.mrf.mxu0  ;;  %v2541_v45 = vadd.f32 %v5245_v29, %v5235_v8  ;;  %v2362_v8 = vadd.f32 %v5146_v14, %v5144_v39  ;;  %v2750_v39 = vld [vmem:[#allocation7 + $0x58] sm:$0xff] }
 0x372   : > { %v5259_v5 = vpop.f32.mrf.mxu3  ;;  %3112 = vmatmul.f32.gmra.mxu3 %v5285_v25  ;;  %v5823_v14 = vld [vmem:[#allocation55_spill] sm:$0xff] }
 0x373   : > { %3122 = vmatpush.msra.mxu2 %v2623_v54  ;;  %v2588_v29 = vadd.f32 %v5253_v38, %v2541_v45  ;;  %v5824_v38 = vld [vmem:[#allocation42_spill] sm:$0xff] }
 0x374   : > { %3014 = vmatmul.f32.gmra.mxu0 %v5297_v17 }
 0x375   : > { %3123 = vmatpush.msra.mxu2 %v2620_v57  ;;  %v2543_v44 = vpop.f32.mrf.mxu1  ;;  %v5817_v57 = vld [vmem:[#allocation25_spill] sm:$0xff] }
 0x376   : > { %3082 = vmatmul.f32.gmra.mxu1 %v5290_v27  ;;  %v2544_v40 = vadd.f32 %v2543_v44, %v2496_v28  ;;  %v5822_v44 = vld [vmem:[#allocation20_spill] sm:$0xff] }
 0x377   : > { %3124 = vmatpush.msra.mxu2 %v2444_v60  ;;  %v2409_v22 = vadd.f32 %v5822_v44, %v2362_v8  ;;  %v5843_v8 = vld [vmem:[#allocation35_spill] sm:$0xff]  ;;  %v2756_v44 = vld [vmem:[#allocation7 + $0x88] sm:$0xff] }
 0x378   : > { %v2590_v47 = vpop.f32.mrf.mxu2 }
 0x379   : > { %3125 = vmatpush.msra.mxu2 %v2441_v58  ;;  %v2499_v4 = vpop.f32.mrf.mxu0  ;;  %v2591_v54 = vadd.f32 %v2590_v47, %v2544_v40  ;;  %v2635_v58 = vadd.f32 %v5259_v5, %v2588_v29  ;;  %v5825_v47 = vld [vmem:[#allocation29_spill] sm:$0xff]  ;;  %v5831_v5 = vld [vmem:[#allocation52_spill] sm:$0xff]  ;;  %v5838_v40 = vld [vmem:[#allocation39_spill] sm:$0xff] }
 0x37a   : > { %v2637_v23 = vpop.f32.mrf.mxu3  ;;  %3203 = vmatmul.f32.vlgmr.msra.gmra.mxu3 %v5171_v21 }
 0x37b   : > { %3126 = vmatpush.msra.mxu2 %v2438_v51  ;;  %v2638_v62 = vadd.f32 %v2637_v23, %v2591_v54  ;;  %v2353_v51 = vadd.f32 %v5826_v3, %v5825_v47  ;;  %v5828_v23 = vld [vmem:[#allocation16_spill] sm:$0xff]  ;;  %v5841_v54 = vld [vmem:[#allocation59_spill] sm:$0xff]  ;;  %v2907_v47 = vld [vmem:[#allocation9 + $0xc0] sm:$0xff] }
 0x37c   : > { %3274 = vmatmul.f32.vlgmr.msra.gmra.mxu0 %v5179_v46  ;;  %v2365_v46 = vadd.f32 %v5160_v34, %v5155_v63  ;;  %v5820_v63 = vld [vmem:[#allocation50_spill] sm:$0xff]  ;;  %v5821_v34 = vld [vmem:[#allocation53_spill] sm:$0xff]  ;;  %v5404_v3 = vld [vmem:[#allocation7 + $0x100] sm:$0xff] }
 0x37d   : > { %3127 = vmatpush.msra.mxu2 %v2435_v42  ;;  %v2546_v7 = vpop.f32.mrf.mxu1  ;;  %v2356_v60 = vadd.f32 %v5821_v34, %v5820_v63  ;;  %v5827_v42 = vld [vmem:[#allocation24_spill] sm:$0xff]  ;;  %v5848_v34 = vld [vmem:[#allocation37_spill] sm:$0xff] }
 0x37e   : > { %3085 = vmatmul.f32.gmra.mxu1 %v5302_v0  ;;  %v2547_v13 = vadd.f32 %v2546_v7, %v2499_v4  ;;  %v5829_v7 = vld [vmem:[#allocation33_spill] sm:$0xff] }
 0x37f   : > { %3128 = vmatpush.msra.mxu2 %v2432_v26 }
 0x380   : > { %v2593_v12 = vpop.f32.mrf.mxu2 }
 0x381   : > { %3129 = vmatpush.msra.mxu2 %v4973_v24  ;;  %v2502_v43 = vpop.f32.mrf.mxu0  ;;  %v2594_v15 = vadd.f32 %v2593_v12, %v2547_v13  ;;  %v5830_v12 = vld [vmem:[#allocation32_spill] sm:$0xff]  ;;  %v5836_v13 = vld [vmem:[#allocation18_spill] sm:$0xff] }
 0x382   : > { %v2640_v18 = vpop.f32.mrf.mxu3  ;;  %3206 = vmatmul.f32.gmra.mxu3 %v5187_v36  ;;  %v5315_v36 = vld [vmem:[#allocation7 + $0x40] sm:$0xff] }
 0x383   : > { %3130 = vmatpush.msra.mxu2 %v4959_v9  ;;  %v2641_v30 = vadd.f32 %v2640_v18, %v2594_v15  ;;  %v2177_v18 = vadd.f32 %v5830_v12, %v5829_v7  ;;  %v5840_v15 = vld [vmem:[#allocation22_spill] sm:$0xff]  ;;  %v2909_v7 = vld [vmem:[#allocation9 + $0xd0] sm:$0xff] }
 0x384   : > { %3277 = vmatmul.f32.gmra.mxu0 %v5195_v19  ;;  %v5819_v19 = vld [vmem:[#allocation46_spill] sm:$0xff] }
 0x385   : > { %3131 = vmatpush.msra.mxu2 %v4945_v48  ;;  %v2549_v61 = vpop.f32.mrf.mxu1  ;;  %v2412_v11 = vadd.f32 %v5819_v19, %v2365_v46  ;;  %v2753_v46 = vld [vmem:[#allocation7 + $0x70] sm:$0xff] }
 0x386   : > { %3578 = vmatmul.msk.f32.vlgmr.msra.gmra.mxu2 %vm2919_vm0, %v5295_v20  ;;  %v2550_v50 = vadd.f32 %v2549_v61, %v2502_v43  ;;  %v2403_v43 = vadd.f32 %v5831_v5, %v2356_v60  ;;  %v5832_v61 = vld [vmem:[#allocation17_spill] sm:$0xff]  ;;  %v5846_v19 = vld [vmem:[#allocation30_spill] sm:$0xff]  ;;  %v5417_v5 = vld [vmem:[#allocation7 + $0x118] sm:$0xff] }
 0x387   : > { %v2459_v26 = vadd.f32 %v5828_v23, %v2412_v11  ;;  %v5851_v23 = vld [vmem:[#allocation47_spill] sm:$0xff] }
 0x388   : > { %v2596_v9 = vpop.f32.mrf.mxu2 }
 0x389   : > { %v2505_v2 = vpop.f32.mrf.mxu0  ;;  %v2597_v37 = vadd.f32 %v2596_v9, %v2550_v50  ;;  %v2456_v9 = vadd.f32 %v5832_v61, %v2409_v22  ;;  %v5852_v61 = vld [vmem:[#allocation21_spill] sm:$0xff] }
 0x38a   : > { %v2643_v24 = vpop.f32.mrf.mxu3  ;;  %3209 = vmatmul.f32.gmra.mxu3 %v5201_v55  ;;  %v5818_v55 = vld [vmem:[#allocation51_spill] sm:$0xff] }
 0x38b   : > { %v2644_v52 = vadd.f32 %v2643_v24, %v2597_v37  ;;  %v2359_v28 = vadd.f32 %v5818_v55, %v5817_v57  ;;  %v5833_v24 = vld [vmem:[#allocation41_spill] sm:$0xff]  ;;  %v5845_v55 = vld [vmem:[#allocation38_spill] sm:$0xff] }
 0x38c   : > { %3280 = vmatmul.f32.gmra.mxu0 %v5824_v38  ;;  %v5849_v38 = vld [vmem:[#allocation49_spill] sm:$0xff] }
 0x38d   : > { %v2552_v21 = vpop.f32.mrf.mxu1  ;;  %v2406_v4 = vadd.f32 %v5827_v42, %v2359_v28 }
 0x38e   : > { %v2553_v48 = vadd.f32 %v2552_v21, %v2505_v2  ;;  %3579 = vmatmul.msk.f32.gmra.mxu2 %vm2919_vm0, %v5307_v32  ;;  %v5834_v2 = vld [vmem:[#allocation36_spill] sm:$0xff]  ;;  %v5835_v21 = vld [vmem:[#allocation26_spill] sm:$0xff] }
 0x38f   : > { %v2174_v50 = vadd.f32 %v5834_v2, %v5833_v24 }
 0x390   : > { %v2599_v59 = vpop.f32.mrf.mxu2 }
 0x391   : > { %v2600_v49 = vadd.f32 %v2599_v59, %v2553_v48  ;;  %v2400_v48 = vadd.f32 %v5835_v21, %v2353_v51  ;;  %v2453_v59 = vadd.f32 %v5836_v13, %v2406_v4  ;;  %v2221_v29 = vadd.f32 %v5843_v8, %v2174_v50  ;;  %v5850_v4 = vld [vmem:[#allocation23_spill] sm:$0xff]  ;;  %v2911_v21 = vld [vmem:[#allocation9 + $0xe0] sm:$0xff] }
 0x392   : > { %v2646_v6 = vpop.f32.mrf.mxu3  ;;  %3212 = vmatmul.f32.gmra.mxu3 %v5823_v14  ;;  %v5428_v13 = vld [vmem:[#allocation7 + $0x130] sm:$0xff]  ;;  %v5856_v8 = vld [vmem:[#allocation19_spill] sm:$0xff] }
 0x393   : > { %v2647_v41 = vadd.f32 %v2646_v6, %v2600_v49  ;;  %v5837_v49 = vld [vmem:[#allocation40_spill] sm:$0xff]  ;;  %v5839_v6 = vld [vmem:[#allocation31_spill] sm:$0xff] }
 0x394   : > { %v2171_v37 = vadd.f32 %v5838_v40, %v5837_v49  ;;  %v2224_v45 = vadd.f32 %v5839_v6, %v2177_v18  ;;  %v5854_v40 = vld [vmem:[#allocation48_spill] sm:$0xff] }
 0x395   : > { %3332 = vmatpush.msra.mxu1 %v2647_v41  ;;  %v2450_v41 = vadd.f32 %v5840_v15, %v2403_v43 }
 0x396   : > { %3580 = vmatmul.msk.f32.gmra.mxu2 %vm2919_vm0, %v5315_v36  ;;  %v2218_v28 = vadd.f32 %v5845_v55, %v2171_v37  ;;  %v2271_v11 = vadd.f32 %v5846_v19, %v2224_v45  ;;  %v5855_v37 = vld [vmem:[#allocation14_spill] sm:$0xff] }
 0x397   : > { %3333 = vmatpush.msra.mxu1 %v2644_v52  ;;  %v5842_v52 = vld [vmem:[#allocation58_spill] sm:$0xff] }
 0x398   : > { %3283 = vmatmul.f32.gmra.mxu0 %v5842_v52  ;;  %v2265_v60 = vadd.f32 %v5848_v34, %v2218_v28  ;;  %v5361_v22 = vpop.f32.mrf.mxu2  ;;  %v2915_v28 = vld [vmem:[#allocation9 + $0x100] sm:$0xff]  ;;  %v5858_v34 = vld [vmem:[#allocation15_spill] sm:$0xff] }
 0x399   : > { %3334 = vmatpush.msra.mxu1 %v2641_v30  ;;  %v5844_v30 = vld [vmem:[#allocation27_spill] sm:$0xff] }
 0x39a   : > { %3215 = vmatmul.f32.gmra.mxu3 %v5841_v54  ;;  %v2447_v57 = vadd.f32 %v5844_v30, %v2400_v48  ;;  %v5441_v54 = vld [vmem:[#allocation7 + $0x148] sm:$0xff] }
 0x39b   : > { %3335 = vmatpush.msra.mxu1 %v2638_v62  ;;  %v5847_v62 = vld [vmem:[#allocation34_spill] sm:$0xff] }
 0x39c   : > { %v2268_v63 = vadd.f32 %v5847_v62, %v2221_v29  ;;  %v5857_v29 = vld [vmem:[#allocation54_spill] sm:$0xff]  ;;  %v5454_v62 = vld [vmem:[#allocation7 + $0x160] sm:$0xff] }
 0x39d   : > { %3336 = vmatpush.msra.mxu1 %v2635_v58  ;;  %v2759_v58 = vld [vmem:[#allocation7 + $0xa0] sm:$0xff] }
 0x39e   : > { %3581 = vmatmul.msk.f32.gmra.mxu2 %vm2919_vm0, %v2750_v39 }
 0x39f   : > { %3337 = vmatpush.msra.mxu1 %v2459_v26 }
 0x3a0   : > { %3286 = vmatmul.f32.gmra.mxu0 %v5231_v31  ;;  %v5370_v14 = vpop.f32.mrf.mxu2 }
 0x3a1   : > { %3338 = vmatpush.msra.mxu1 %v2456_v9  ;;  %v5853_v9 = vld [vmem:[#allocation45_spill] sm:$0xff] }
 0x3a2   : > { %3218 = vmatmul.f32.gmra.mxu3 %v5237_v10  ;;  %v2762_v10 = vld [vmem:[#allocation7 + $0xb8] sm:$0xff] }
 0x3a3   : > { %3339 = vmatpush.msra.mxu1 %v2453_v59 }
 0x3a5   : > { %3340 = vmatpush.msra.mxu1 %v2450_v41  ;;  %v2913_v41 = vld [vmem:[#allocation9 + $0xf0] sm:$0xff] }
 0x3a6   : > { %3582 = vmatmul.msk.f32.gmra.mxu2 %vm2919_vm0, %v2753_v46 }
 0x3a7   : > { %3341 = vmatpush.msra.mxu1 %v2447_v57 }
 0x3a8   : > { %3289 = vmatmul.f32.gmra.mxu0 %v5247_v56  ;;  %v5380_v31 = vpop.f32.mrf.mxu2  ;;  %v5382_v56 = vpop.f32.mrf.mxu3 }
 0x3a9   : > { %3342 = vmatpush.msra.mxu1 %v2271_v11 }
 0x3aa   : > { %3221 = vmatmul.f32.gmra.mxu3 %v5265_v33  ;;  %v5384_v33 = vpop.f32.mrf.mxu0 }
 0x3ab   : > { %3343 = vmatpush.msra.mxu1 %v2268_v63 }
 0x3ad   : > { %3344 = vmatpush.msra.mxu1 %v2265_v60  ;;  %v5859_v60 = vld [vmem:[#allocation56_spill] sm:$0xff] }
 0x3ae   : > { %3583 = vmatmul.msk.f32.gmra.mxu2 %vm2919_vm0, %v2756_v44  ;;  %3596 = vmatmul.msk.f32.vlgmr.msra.gmra.mxu1 %vm2919_vm0, %v5295_v20  ;;  %v2765_v20 = vld [vmem:[#allocation7 + $0xd0] sm:$0xff] }
 0x3b0   : > { %3292 = vmatmul.f32.gmra.mxu0 %v5275_v1  ;;  %v5390_v1 = vpop.f32.mrf.mxu3 }
 0x3b2   : > { %3224 = vmatmul.f32.gmra.mxu3 %v5283_v16  ;;  %v3027_v16 = vpop.f32.mrf.mxu2 }
 0x3b3   : > { %v3028_v42 = vadd.f32 %v3027_v16, %v2907_v47 }
 0x3b6   : > { %3584 = vmatmul.msk.f32.gmra.mxu2 %vm2919_vm0, %v2759_v58  ;;  %3597 = vmatmul.msk.f32.gmra.mxu1 %vm2919_vm0, %v5307_v32  ;;  %v5392_v32 = vpop.f32.mrf.mxu0 }
 0x3b8   : > { %3295 = vmatmul.f32.gmra.mxu0 %v5290_v27  ;;  %v5400_v27 = vpop.f32.mrf.mxu1 }
 0x3ba   : > { %3227 = vmatmul.f32.gmra.mxu3 %v5297_v17  ;;  %v5398_v17 = vpop.f32.mrf.mxu3  ;;  %v3030_v51 = vpop.f32.mrf.mxu2 }
 0x3bb   : > { %v3031_v43 = vadd.f32 %v3030_v51, %v2909_v7 }
 0x3be   : > { %3585 = vmatmul.msk.f32.gmra.mxu2 %vm2919_vm0, %v2762_v10  ;;  %3598 = vmatmul.msk.f32.gmra.mxu1 %vm2919_vm0, %v5315_v36  ;;  %v2768_v36 = vld [vmem:[#allocation7 + $0xe8] sm:$0xff] }
 0x3c0   : > { %3298 = vmatmul.f32.gmra.mxu0 %v5302_v0  ;;  %v5415_v18 = vpop.f32.mrf.mxu1 }
 0x3c2   : > { %3230 = vmatmul.f32.gmra.mxu3 %v5849_v38  ;;  %v3098_v0 = vpop.f32.mrf.mxu3  ;;  %v3033_v24 = vpop.f32.mrf.mxu2  ;;  %v5467_v38 = vld [vmem:[#allocation7 + $0x178] sm:$0xff] }
 0x3c3   : > { %v5411_v26 = vadd.f32 %v3098_v0, %v3028_v42  ;;  %v3034_v59 = vadd.f32 %v3033_v24, %v2911_v21  ;;  %v5860_v42 = vld [vmem:[#allocation44_spill] sm:$0xff]  ;;  %v2883_v0 = vld [vmem:[#allocation9] sm:$0xff]  ;;  %v5862_v24 = vld [vmem:[#allocation43_spill] sm:$0xff] }
 0x3c6   : > { %3586 = vmatmul.msk.f32.gmra.mxu2 %vm2919_vm0, %v2765_v20  ;;  %3599 = vmatmul.msk.f32.gmra.mxu1 %vm2919_vm0, %v2750_v39  ;;  %v5402_v39 = vpop.f32.mrf.mxu0 }
 0x3c8   : > { %3301 = vmatmul.f32.gmra.mxu0 %v5851_v23  ;;  %v5430_v49 = vpop.f32.mrf.mxu1 }
 0x3ca   : > { %3233 = vmatmul.f32.gmra.mxu3 %v5850_v4  ;;  %v3101_v2 = vpop.f32.mrf.mxu3  ;;  %v3036_v6 = vpop.f32.mrf.mxu2  ;;  %v5861_v4 = vld [vmem:[#allocation60_spill] sm:$0xff] }
 0x3cb   : > { %v5424_v50 = vadd.f32 %v3101_v2, %v3031_v43  ;;  %v3037_v52 = vadd.f32 %v3036_v6, %v2913_v41 }
 0x3ce   : > { %3587 = vmatmul.msk.f32.gmra.mxu2 %vm2919_vm0, %v2768_v36  ;;  %3600 = vmatmul.msk.f32.gmra.mxu1 %vm2919_vm0, %v2753_v46  ;;  %v5413_v12 = vpop.f32.mrf.mxu0 }
 0x3d0   : > { %3304 = vmatmul.f32.gmra.mxu0 %v5853_v9  ;;  %v5448_v30 = vpop.f32.mrf.mxu1  ;;  %v2992_v9 = vadd.f32 %v5384_v33, %v2883_v0  ;;  %v5494_v33 = vld [vmem:[#allocation7 + $0x1a8] sm:$0xff] }
 0x3d1   : > { %v2886_v0 = vld [vmem:[#allocation9 + $0x18] sm:$0xff] }
 0x3d2   : > { %3236 = vmatmul.f32.gmra.mxu3 %v5852_v61  ;;  %v3104_v45 = vpop.f32.mrf.mxu3  ;;  %v3039_v19 = vpop.f32.mrf.mxu2  ;;  %v5482_v61 = vld [vmem:[#allocation7 + $0x190] sm:$0xff]  ;;  %v3063_v2 = vadd.f32 %v5400_v27, %v2992_v9 }
 0x3d3   : > { %v5437_v15 = vadd.f32 %v3104_v45, %v3034_v59  ;;  %v3040_v63 = vadd.f32 %v3039_v19, %v2915_v28  ;;  %v2885_v59 = vld [vmem:[#allocation9 + $0x10] sm:$0xff]  ;;  %v5863_v45 = vld [vmem:[#allocation57_spill] sm:$0xff] }
 0x3d4   : > { %v2889_v28 = vld [vmem:[#allocation9 + $0x30] sm:$0xff] }
 0x3d6   : > { %3588 = vmatmul.msk.f32.gmra.mxu2 %vm2919_vm0, %v5404_v3  ;;  %3601 = vmatmul.msk.f32.gmra.mxu1 %vm2919_vm0, %v2756_v44  ;;  %v5426_v48 = vpop.f32.mrf.mxu0 }
 0x3d8   : > { %3307 = vmatmul.f32.gmra.mxu0 %v5855_v37 }
 0x3da   : > { %3239 = vmatmul.f32.gmra.mxu3 %v5854_v40  ;;  %v3042_v47 = vpop.f32.mrf.mxu2 }
 0x3de   : > { %3589 = vmatmul.msk.f32.gmra.mxu2 %vm2919_vm0, %v5417_v5  ;;  %3602 = vmatmul.msk.f32.gmra.mxu1 %vm2919_vm0, %v2759_v58  ;;  %v5439_v46 = vpop.f32.mrf.mxu0  ;;  %v5461_v58 = vpop.f32.mrf.mxu1 }
 0x3e0   : > { %3310 = vmatmul.f32.gmra.mxu0 %v5857_v29 }
 0x3e2   : > { %3242 = vmatmul.f32.gmra.mxu3 %v5856_v8  ;;  %v3107_v57 = vpop.f32.mrf.mxu3 }
 0x3e3   : > { %v5450_v55 = vadd.f32 %v3107_v57, %v3037_v52  ;;  %v2887_v52 = vld [vmem:[#allocation9 + $0x20] sm:$0xff] }
 0x3e4   : > { %v2998_v29 = vadd.f32 %v5402_v39, %v2887_v52 }
 0x3e6   : > { %3590 = vmatmul.msk.f32.gmra.mxu2 %vm2919_vm0, %v5428_v13  ;;  %3603 = vmatmul.msk.f32.gmra.mxu1 %vm2919_vm0, %v2762_v10  ;;  %v5452_v11 = vpop.f32.mrf.mxu0  ;;  %v5480_v43 = vpop.f32.mrf.mxu1 }
 0x3e8   : > { %3313 = vmatmul.f32.gmra.mxu0 %v5859_v60 }
 0x3ea   : > { %3245 = vmatmul.f32.gmra.mxu3 %v5858_v34  ;;  %v3001_v34 = vadd.f32 %v5413_v12, %v2889_v28 }
 0x3ec   : > { %v3072_v39 = vadd.f32 %v5448_v30, %v3001_v34 }
 0x3ed   : > { %v3110_v44 = vpop.f32.mrf.mxu3 }
 0x3ee   : > { %3591 = vmatmul.msk.f32.gmra.mxu2 %vm2919_vm0, %v5441_v54  ;;  %3604 = vmatmul.msk.f32.gmra.mxu1 %vm2919_vm0, %v2765_v20  ;;  %v5463_v10 = vadd.f32 %v3110_v44, %v3040_v63  ;;  %v2917_v20 = vld [vmem:[#allocation9 + $0x110] sm:$0xff]  ;;  %v5465_v16 = vpop.f32.mrf.mxu0  ;;  %v5500_v6 = vpop.f32.mrf.mxu1  ;;  %v2891_v44 = vld [vmem:[#allocation9 + $0x40] sm:$0xff] }
 0x3ef   : > { %v3043_v51 = vadd.f32 %v3042_v47, %v2917_v20  ;;  %v2884_v20 = vld [vmem:[#allocation9 + $0x8] sm:$0xff] }
 0x3f0   : > { %3316 = vmatmul.f32.gmra.mxu0 %v5861_v4 }
 0x3f2   : > { %3248 = vmatmul.f32.gmra.mxu3 %v5860_v42 }
 0x3f6   : > { %3592 = vmatmul.msk.f32.gmra.mxu2 %vm2919_vm0, %v5454_v62  ;;  %3605 = vmatmul.msk.f32.gmra.mxu1 %vm2919_vm0, %v2768_v36  ;;  %v3113_v36 = vpop.f32.mrf.mxu3  ;;  %v5477_v7 = vpop.f32.mrf.mxu0 }
 0x3f7   : > { %v5475_v23 = vadd.f32 %v3113_v36, %v3043_v51  ;;  %v3004_v51 = vadd.f32 %v5426_v48, %v2891_v44  ;;  %v2893_v36 = vld [vmem:[#allocation9 + $0x50] sm:$0xff] }
 0x3f8   : > { %3319 = vmatmul.f32.gmra.mxu0 %v5239_v53  ;;  %v2995_v53 = vadd.f32 %v5392_v32, %v2885_v59 }
 0x3fa   : > { %3251 = vmatmul.f32.gmra.mxu3 %v5862_v24 }
 0x3fe   : > { %3593 = vmatmul.msk.f32.gmra.mxu2 %vm2919_vm0, %v5467_v38  ;;  %3606 = vmatmul.msk.f32.gmra.mxu1 %vm2919_vm0, %v5404_v3  ;;  %v3204_v3 = vpop.f32.mrf.mxu3  ;;  %v3275_v40 = vpop.f32.mrf.mxu0 }
 0x3ff   : > { %v3205_v42 = vadd.f32 %v3204_v3, %v2884_v20 }
 0x400   : > { %3322 = vmatmul.f32.gmra.mxu0 %v5267_v35  ;;  %v5514_v35 = vpop.f32.mrf.mxu1 }
 0x401   : > { %v3276_v30 = vadd.f32 %v3275_v40, %v3205_v42  ;;  %v2895_v40 = vld [vmem:[#allocation9 + $0x60] sm:$0xff] }
 0x402   : > { %3254 = vmatmul.f32.gmra.mxu3 %v5863_v45 }
 0x406   : > { %3594 = vmatmul.msk.f32.gmra.mxu2 %vm2919_vm0, %v5482_v61  ;;  %3607 = vmatmul.msk.f32.gmra.mxu1 %vm2919_vm0, %v5417_v5  ;;  %v3207_v27 = vpop.f32.mrf.mxu3  ;;  %v3066_v5 = vadd.f32 %v5415_v18, %v2995_v53  ;;  %v3278_v8 = vpop.f32.mrf.mxu0 }
 0x407   : > { %v3208_v59 = vadd.f32 %v3207_v27, %v2886_v0 }
 0x408   : > { %3325 = vmatmul.f32.gmra.mxu0 %v5285_v25 }
 0x409   : > { %v3133_v21 = vpop.f32.mrf.mxu2 }
 0x40a   : > { %v3134_v37 = vadd.f32 %v3133_v21, %v3063_v2  ;;  %v3007_v21 = vadd.f32 %v5439_v46, %v2893_v36  ;;  %v3010_v46 = vadd.f32 %v5452_v11, %v2895_v40 }
 0x40c   : > { %3400 = vst [vmem:[%s5496_s13] sm:$0xff] %v3134_v37  ;;  %v2888_v37 = vld [vmem:[#allocation9 + $0x28] sm:$0xff] }
 0x40e   : > { %3595 = vmatmul.msk.f32.gmra.mxu2 %vm2919_vm0, %v5494_v33  ;;  %3608 = vmatmul.msk.f32.gmra.mxu1 %vm2919_vm0, %v5428_v13  ;;  %v3210_v57 = vpop.f32.mrf.mxu3  ;;  %v3069_v13 = vadd.f32 %v5430_v49, %v2998_v29  ;;  %v3281_v19 = vpop.f32.mrf.mxu0  ;;  %v2890_v29 = vld [vmem:[#allocation9 + $0x38] sm:$0xff] }
 0x40f   : > { %v3211_v27 = vadd.f32 %v3210_v57, %v2888_v37 }
 0x411   : > { %v3136_v41 = vpop.f32.mrf.mxu2 }
 0x412   : > { %v3137_v32 = vadd.f32 %v3136_v41, %v3066_v5 }
 0x414   : > { %3402 = vst [vmem:[%s5496_s13 + $0x10] sm:$0xff] %v3137_v32  ;;  %v2897_v32 = vld [vmem:[#allocation9 + $0x70] sm:$0xff] }
 0x415   : > { %v3013_v11 = vadd.f32 %v5465_v16, %v2897_v32 }
 0x416   : > { %3609 = vmatmul.msk.f32.gmra.mxu1 %vm2919_vm0, %v5441_v54  ;;  %v3213_v25 = vpop.f32.mrf.mxu3  ;;  %v5522_v54 = vpop.f32.mrf.mxu1 }
 0x417   : > { %v3284_v49 = vpop.f32.mrf.mxu0 }
 0x419   : > { %v3139_v18 = vpop.f32.mrf.mxu2 }
 0x41a   : > { %v3140_v63 = vadd.f32 %v3139_v18, %v3069_v13 }
 0x41c   : > { %3404 = vst [vmem:[%s5496_s13 + $0x20] sm:$0xff] %v3140_v63  ;;  %v3214_v63 = vadd.f32 %v3213_v25, %v2890_v29 }
 0x41e   : > { %3610 = vmatmul.msk.f32.gmra.mxu1 %vm2919_vm0, %v5454_v62  ;;  %v3216_v12 = vpop.f32.mrf.mxu3  ;;  %v3075_v62 = vadd.f32 %v5461_v58, %v3004_v51  ;;  %v3078_v58 = vadd.f32 %v5480_v43, %v3007_v21  ;;  %v3081_v43 = vadd.f32 %v5500_v6, %v3010_v46  ;;  %v2898_v46 = vld [vmem:[#allocation9 + $0x78] sm:$0xff] }
 0x41f   : > { %v3287_v2 = vpop.f32.mrf.mxu0 }
 0x421   : > { %v3142_v60 = vpop.f32.mrf.mxu2 }
 0x422   : > { %v3143_v47 = vadd.f32 %v3142_v60, %v3072_v39  ;;  %v3285_v39 = vadd.f32 %v3284_v49, %v3214_v63  ;;  %v2892_v60 = vld [vmem:[#allocation9 + $0x48] sm:$0xff]  ;;  %v2894_v49 = vld [vmem:[#allocation9 + $0x58] sm:$0xff] }
 0x423   : > { %v3217_v16 = vadd.f32 %v3216_v12, %v2892_v60 }
 0x424   : > { %3406 = vst [vmem:[%s5496_s13 + $0x30] sm:$0xff] %v3143_v47 }
 0x426   : > { %3611 = vmatmul.msk.f32.gmra.mxu1 %vm2919_vm0, %v5467_v38  ;;  %v3279_v38 = vadd.f32 %v3278_v8, %v3208_v59  ;;  %v3219_v53 = vpop.f32.mrf.mxu3  ;;  %v2896_v59 = vld [vmem:[#allocation9 + $0x68] sm:$0xff] }
 0x427   : > { %v3290_v52 = vpop.f32.mrf.mxu0 }
 0x429   : > { %v3145_v4 = vpop.f32.mrf.mxu2 }
 0x42a   : > { %v3146_v9 = vadd.f32 %v3145_v4, %v3075_v62  ;;  %v3288_v62 = vadd.f32 %v3287_v2, %v3217_v16 }
 0x42b   : > { %v3346_v24 = vpop.f32.mrf.mxu1 }
 0x42c   : > { %3408 = vst [vmem:[%s5496_s13 + $0x40] sm:$0xff] %v3146_v9  ;;  %v3347_v48 = vadd.f32 %v3346_v24, %v3276_v30  ;;  %v2901_v30 = vld [vmem:[#allocation9 + $0x90] sm:$0xff] }
 0x42d   : > { %v3019_v9 = vadd.f32 %v5361_v22, %v2901_v30 }
 0x42e   : > { %3401 = vst [vmem:[%s5496_s13 + $0x8] sm:$0xff] %v3347_v48  ;;  %3612 = vmatmul.msk.f32.gmra.mxu1 %vm2919_vm0, %v5482_v61  ;;  %v3282_v61 = vadd.f32 %v3281_v19, %v3211_v27  ;;  %v3222_v28 = vpop.f32.mrf.mxu3  ;;  %v2899_v19 = vld [vmem:[#allocation9 + $0x80] sm:$0xff] }
 0x42f   : > { %v3293_v34 = vpop.f32.mrf.mxu0  ;;  %v3016_v47 = vadd.f32 %v5477_v7, %v2899_v19  ;;  %v3220_v7 = vadd.f32 %v3219_v53, %v2894_v49  ;;  %v3090_v21 = vadd.f32 %v5382_v56, %v3019_v9  ;;  %v3223_v37 = vadd.f32 %v3222_v28, %v2896_v59 }
 0x431   : > { %v3148_v3 = vpop.f32.mrf.mxu2  ;;  %v3087_v25 = vadd.f32 %v5522_v54, %v3016_v47  ;;  %v3291_v48 = vadd.f32 %v3290_v52, %v3220_v7  ;;  %v2903_v54 = vld [vmem:[#allocation9 + $0xa0] sm:$0xff] }
 0x432   : > { %v3149_v45 = vadd.f32 %v3148_v3, %v3078_v58  ;;  %v3022_v40 = vadd.f32 %v5370_v14, %v2903_v54 }
 0x433   : > { %v3349_v5 = vpop.f32.mrf.mxu1 }
 0x434   : > { %3410 = vst [vmem:[%s5496_s13 + $0x50] sm:$0xff] %v3149_v45  ;;  %v3350_v41 = vadd.f32 %v3349_v5, %v3279_v38  ;;  %v3093_v53 = vadd.f32 %v5390_v1, %v3022_v40  ;;  %v3294_v45 = vadd.f32 %v3293_v34, %v3223_v37  ;;  %v2905_v5 = vld [vmem:[#allocation9 + $0xb0] sm:$0xff]  ;;  %v2910_v40 = vld [vmem:[#allocation9 + $0xd8] sm:$0xff] }
 0x436   : > { %3403 = vst [vmem:[%s5496_s13 + $0x18] sm:$0xff] %v3350_v41  ;;  %3613 = vmatmul.msk.f32.gmra.mxu1 %vm2919_vm0, %v5494_v33  ;;  %v3084_v33 = vadd.f32 %v5514_v35, %v3013_v11  ;;  %v3225_v42 = vpop.f32.mrf.mxu3 }
 0x437   : > { %v3296_v4 = vpop.f32.mrf.mxu0 }
 0x439   : > { %v3151_v8 = vpop.f32.mrf.mxu2 }
 0x43a   : > { %v3152_v13 = vadd.f32 %v3151_v8, %v3081_v43  ;;  %v3025_v43 = vadd.f32 %v5380_v31, %v2905_v5 }
 0x43b   : > { %v3352_v18 = vpop.f32.mrf.mxu1 }
 0x43c   : > { %3412 = vst [vmem:[%s5496_s13 + $0x60] sm:$0xff] %v3152_v13  ;;  %v3353_v57 = vadd.f32 %v3352_v18, %v3282_v61  ;;  %v3226_v61 = vadd.f32 %v3225_v42, %v2898_v46  ;;  %v3096_v32 = vadd.f32 %v5398_v17, %v3025_v43  ;;  %v2900_v13 = vld [vmem:[#allocation9 + $0x88] sm:$0xff] }
 0x43e   : > { %3405 = vst [vmem:[%s5496_s13 + $0x28] sm:$0xff] %v3353_v57  ;;  %v3228_v12 = vpop.f32.mrf.mxu3  ;;  %v3297_v29 = vadd.f32 %v3296_v4, %v3226_v61  ;;  %v2906_v4 = vld [vmem:[#allocation9 + $0xb8] sm:$0xff] }
 0x43f   : > { %v3299_v3 = vpop.f32.mrf.mxu0  ;;  %v3229_v63 = vadd.f32 %v3228_v12, %v2900_v13 }
 0x441   : > { %v3154_v6 = vpop.f32.mrf.mxu2  ;;  %v3300_v34 = vadd.f32 %v3299_v3, %v3229_v63 }
 0x442   : > { %v3155_v44 = vadd.f32 %v3154_v6, %v3084_v33 }
 0x443   : > { %v3355_v20 = vpop.f32.mrf.mxu1 }
 0x444   : > { %3414 = vst [vmem:[%s5496_s13 + $0x70] sm:$0xff] %v3155_v44  ;;  %v3356_v51 = vadd.f32 %v3355_v20, %v3285_v39  ;;  %v2902_v39 = vld [vmem:[#allocation9 + $0x98] sm:$0xff] }
 0x446   : > { %3407 = vst [vmem:[%s5496_s13 + $0x38] sm:$0xff] %v3356_v51  ;;  %v3231_v41 = vpop.f32.mrf.mxu3  ;;  %v2904_v51 = vld [vmem:[#allocation9 + $0xa8] sm:$0xff] }
 0x447   : > { %v3302_v8 = vpop.f32.mrf.mxu0  ;;  %v3232_v60 = vadd.f32 %v3231_v41, %v2902_v39  ;;  %v2912_v41 = vld [vmem:[#allocation9 + $0xe8] sm:$0xff] }
 0x449   : > { %v3157_v35 = vpop.f32.mrf.mxu2  ;;  %v3303_v20 = vadd.f32 %v3302_v8, %v3232_v60  ;;  %v2914_v8 = vld [vmem:[#allocation9 + $0xf8] sm:$0xff] }
 0x44a   : > { %v3158_v36 = vadd.f32 %v3157_v35, %v3087_v25 }
 0x44b   : > { %v3358_v0 = vpop.f32.mrf.mxu1 }
 0x44c   : > { %3416 = vst [vmem:[%s5496_s13 + $0x80] sm:$0xff] %v3158_v36  ;;  %v3359_v24 = vadd.f32 %v3358_v0, %v3288_v62 }
 0x44e   : > { %3409 = vst [vmem:[%s5496_s13 + $0x48] sm:$0xff] %v3359_v24  ;;  %v3234_v11 = vpop.f32.mrf.mxu3 }
 0x44f   : > { %v3305_v31 = vpop.f32.mrf.mxu0  ;;  %v3235_v30 = vadd.f32 %v3234_v11, %v2904_v51  ;;  %v2916_v11 = vld [vmem:[#allocation9 + $0x108] sm:$0xff] }
 0x451   : > { %v3160_v2 = vpop.f32.mrf.mxu2  ;;  %v3306_v35 = vadd.f32 %v3305_v31, %v3235_v30 }
 0x452   : > { %v3161_v58 = vadd.f32 %v3160_v2, %v3090_v21  ;;  %v2908_v21 = vld [vmem:[#allocation9 + $0xc8] sm:$0xff] }
 0x453   : > { %v3361_v38 = vpop.f32.mrf.mxu1 }
 0x454   : > { %3418 = vst [vmem:[%s5496_s13 + $0x90] sm:$0xff] %v3161_v58  ;;  %v3362_v22 = vadd.f32 %v3361_v38, %v3291_v48 }
 0x456   : > { %3411 = vst [vmem:[%s5496_s13 + $0x58] sm:$0xff] %v3362_v22  ;;  %v3237_v44 = vpop.f32.mrf.mxu3 }
 0x457   : > { %v3308_v16 = vpop.f32.mrf.mxu0  ;;  %v3238_v7 = vadd.f32 %v3237_v44, %v2906_v4 }
 0x459   : > { %v3163_v56 = vpop.f32.mrf.mxu2 }
 0x45a   : > { %v3164_v27 = vadd.f32 %v3163_v56, %v3093_v53 }
 0x45b   : > { %v3364_v52 = vpop.f32.mrf.mxu1 }
 0x45c   : > { %3420 = vst [vmem:[%s5496_s13 + $0xa0] sm:$0xff] %v3164_v27  ;;  %v3365_v14 = vadd.f32 %v3364_v52, %v3294_v45 }
 0x45e   : > { %3413 = vst [vmem:[%s5496_s13 + $0x68] sm:$0xff] %v3365_v14 }
 0x45f   : > { %v3311_v9 = vpop.f32.mrf.mxu0 }
 0x461   : > { %v3166_v1 = vpop.f32.mrf.mxu2 }
 0x462   : > { %v3167_v18 = vadd.f32 %v3166_v1, %v3096_v32 }
 0x463   : > { %v3367_v28 = vpop.f32.mrf.mxu1 }
 0x464   : > { %3422 = vst [vmem:[%s5496_s13 + $0xb0] sm:$0xff] %v3167_v18  ;;  %v3368_v57 = vadd.f32 %v3367_v28, %v3297_v29 }
 0x466   : > { %3415 = vst [vmem:[%s5496_s13 + $0x78] sm:$0xff] %v3368_v57 }
 0x469   : > { %v3169_v33 = vpop.f32.mrf.mxu2 }
 0x46a   : > { %v3170_v6 = vadd.f32 %v3169_v33, %v5411_v26  ;;  %v3240_v26 = vpop.f32.mrf.mxu3  ;;  %v2918_v33 = vld [vmem:[#allocation9 + $0x118] sm:$0xff] }
 0x46b   : > { %v3370_v17 = vpop.f32.mrf.mxu1  ;;  %v3241_v58 = vadd.f32 %v3240_v26, %v2908_v21 }
 0x46c   : > { %3424 = vst [vmem:[%s5496_s13 + $0xc0] sm:$0xff] %v3170_v6  ;;  %v3371_v19 = vadd.f32 %v3370_v17, %v3300_v34 }
 0x46d   : > { %v3312_v38 = vadd.f32 %v3311_v9, %v3241_v58 }
 0x46e   : > { %3417 = vst [vmem:[%s5496_s13 + $0x88] sm:$0xff] %v3371_v19 }
 0x471   : > { %v3172_v47 = vpop.f32.mrf.mxu2 }
 0x472   : > { %v3173_v42 = vadd.f32 %v3172_v47, %v5424_v50  ;;  %v3309_v50 = vadd.f32 %v3308_v16, %v3238_v7  ;;  %v3243_v48 = vpop.f32.mrf.mxu3 }
 0x473   : > { %v3373_v25 = vpop.f32.mrf.mxu1  ;;  %v3244_v5 = vadd.f32 %v3243_v48, %v2910_v40 }
 0x474   : > { %3426 = vst [vmem:[%s5496_s13 + $0xd0] sm:$0xff] %v3173_v42  ;;  %v3374_v62 = vadd.f32 %v3373_v25, %v3303_v20 }
 0x476   : > { %3419 = vst [vmem:[%s5496_s13 + $0x98] sm:$0xff] %v3374_v62 }
 0x479   : > { %v3175_v49 = vpop.f32.mrf.mxu2 }
 0x47a   : > { %v3176_v36 = vadd.f32 %v3175_v49, %v5437_v15  ;;  %v3314_v15 = vpop.f32.mrf.mxu0  ;;  %v3246_v53 = vpop.f32.mrf.mxu3 }
 0x47b   : > { %v3376_v0 = vpop.f32.mrf.mxu1  ;;  %v3315_v56 = vadd.f32 %v3314_v15, %v3244_v5  ;;  %v3247_v14 = vadd.f32 %v3246_v53, %v2912_v41 }
 0x47c   : > { %3428 = vst [vmem:[%s5496_s13 + $0xe0] sm:$0xff] %v3176_v36  ;;  %v3377_v24 = vadd.f32 %v3376_v0, %v3306_v35 }
 0x47e   : > { %3421 = vst [vmem:[%s5496_s13 + $0xa8] sm:$0xff] %v3377_v24 }
 0x481   : > { %v3178_v12 = vpop.f32.mrf.mxu2 }
 0x482   : > { %v3179_v54 = vadd.f32 %v3178_v12, %v5450_v55  ;;  %v3317_v55 = vpop.f32.mrf.mxu0  ;;  %v3249_v61 = vpop.f32.mrf.mxu3 }
 0x483   : > { %v3379_v2 = vpop.f32.mrf.mxu1  ;;  %v3250_v13 = vadd.f32 %v3249_v61, %v2914_v8 }
 0x484   : > { %3430 = vst [vmem:[%s5496_s13 + $0xf0] sm:$0xff] %v3179_v54  ;;  %v3380_v59 = vadd.f32 %v3379_v2, %v3309_v50 }
 0x486   : > { %3423 = vst [vmem:[%s5496_s13 + $0xb8] sm:$0xff] %v3380_v59 }
 0x489   : > { %v3181_v3 = vpop.f32.mrf.mxu2 }
 0x48a   : > { %v3182_v22 = vadd.f32 %v3181_v3, %v5463_v10  ;;  %v3318_v10 = vadd.f32 %v3317_v55, %v3247_v14  ;;  %v3320_v32 = vpop.f32.mrf.mxu0  ;;  %v3252_v18 = vpop.f32.mrf.mxu3 }
 0x48b   : > { %v3382_v37 = vpop.f32.mrf.mxu1  ;;  %v3321_v28 = vadd.f32 %v3320_v32, %v3250_v13  ;;  %v3253_v31 = vadd.f32 %v3252_v18, %v2916_v11 }
 0x48c   : > { %3432 = vst [vmem:[%s5496_s13 + $0x100] sm:$0xff] %v3182_v22  ;;  %v3383_v45 = vadd.f32 %v3382_v37, %v3312_v38 }
 0x48e   : > { %3425 = vst [vmem:[%s5496_s13 + $0xc8] sm:$0xff] %v3383_v45 }
 0x491   : > { %v3184_v46 = vpop.f32.mrf.mxu2 }
 0x492   : > { %v3185_v27 = vadd.f32 %v3184_v46, %v5475_v23  ;;  %v3323_v57 = vpop.f32.mrf.mxu0  ;;  %v3255_v39 = vpop.f32.mrf.mxu3 }
 0x493   : > { %v3385_v52 = vpop.f32.mrf.mxu1  ;;  %v3324_v34 = vadd.f32 %v3323_v57, %v3253_v31  ;;  %v3256_v19 = vadd.f32 %v3255_v39, %v2918_v33 }
 0x494   : > { %3434 = vst [vmem:[%s5496_s13 + $0x110] sm:$0xff] %v3185_v27  ;;  %v3386_v43 = vadd.f32 %v3385_v52, %v3315_v56 }
 0x496   : > { %3427 = vst [vmem:[%s5496_s13 + $0xd8] sm:$0xff] %v3386_v43 }
 0x49a   : > { %v3326_v60 = vpop.f32.mrf.mxu0 }
 0x49b   : > { %v3388_v29 = vpop.f32.mrf.mxu1  ;;  %v3327_v44 = vadd.f32 %v3326_v60, %v3256_v19 }
 0x49c   : > { %v3389_v1 = vadd.f32 %v3388_v29, %v3318_v10 }
 0x49e   : > { %3429 = vst [vmem:[%s5496_s13 + $0xe8] sm:$0xff] %v3389_v1 }
 0x4a3   : > { %v3391_v23 = vpop.f32.mrf.mxu1 }
 0x4a4   : > { %v3392_v63 = vadd.f32 %v3391_v23, %v3321_v28 }
 0x4a6   : > { %3431 = vst [vmem:[%s5496_s13 + $0xf8] sm:$0xff] %v3392_v63 }
 0x4ab   : > { %v3394_v6 = vpop.f32.mrf.mxu1 }
 0x4ac   : > { %v3395_v17 = vadd.f32 %v3394_v6, %v3324_v34 }
 0x4ae   : > { %3433 = vst [vmem:[%s5496_s13 + $0x108] sm:$0xff] %v3395_v17 }
 0x4b3   : > { %v3397_v20 = vpop.f32.mrf.mxu1 }
 0x4b4   : > { %v3398_v47 = vadd.f32 %v3397_v20, %v3327_v44 }
 0x4b6   : > { %3435 = vst [vmem:[%s5496_s13 + $0x118] sm:$0xff] %v3398_v47 }
 0x4b7   : > { %3946 = shalt.err (!%p3943_p8)
}
 0x4b8   : > { %s4001_s7 = smov 256   ;;  %s4002_s10 = smov 16  }
 0x4b9   : > { %3667 = dma.vmem_to_hbm [thread:$0]  (%p4066_p5), %s3451_s28, 4608, %s3453_s29, %s3437_s19, %s4001_s7, %s4001_s7, %s4002_s10  }
 0x4ba PF: > { %p3689_p9 = scmp.ge.s32.totalorder %s3989_s18, 2  ;;  %s3467_s11 = sand.u32 1, %s3977_s15  }
 0x4bb   : > { %s3468_s12 = scalar_lea.sflag [#allocation6], %s3467_s11 }
 0x4bc   : > { %p3680_p10 = pnand %p3689_p9, %p4070_p6 }
 0x4be   : > { %p3681_p11 = pneg %p3680_p10 }
 0x4c0   : > { %3972 = dma.done.wait (%p3681_p11), %s3468_s12, 4608  }
 0x4c1   : > { %3974 = vsyncadd (%p3681_p11), %s3468_s12, 4294962688  ;;  %p16_p12 = scmp.ge.s32.totalorder %s4053_s21, 4   ;;  %s5864_s15 = smov %s3981_s16 }
 0x4c2   : > { %s5865_s16 = smov %s3985_s17  ;;  %s5866_s17 = smov %s4064_s24 }
 0x4c3   : > { %s5867_s18 = smov %s4053_s21  ;;  %18 = sbr.rel (!%p16_p12) target bundleno = 7 (0x7), region = 85 }
 0x4c8   :  { %3474 = vsyncpa [#allocation5], 1 }
 0x4c9   :  { %3476 = vsyncpa [#allocation5 + $0x1], 1 }
 0x4ca   :  { %3477 = vsyncpa [#allocation8], 1 }
 0x4cb   :  { %3478 = vsyncpa [#allocation6], 1 }
 0x4cc   :  { %3480 = vsyncpa [#allocation6 + $0x1], 1 }

</bundles_post_ra>
